<compile_context>
chip_gen: v7x
topology: tpu7x:2x2x1
jax: 0.10.0
libtpu: 0.0.40
codegen_flags: <defaults>
</compile_context>

<pallas_src>
from functools import partial

import numpy as np
import jax
import jax.numpy as jnp
from jax.experimental import pallas as pl
from jax.experimental.pallas import tpu as pltpu

EPS = 1e-5
XOFF = 8          # aligned column offset of the image inside the halo scratch


def _pvec_rows(M):
    """Row layout of the fused 'vector parameters' array."""
    n_wconv = 9 * M
    return dict(WCONV=0, BNA_S=n_wconv, BNA_B=n_wconv + M,
                BN1_S=n_wconv + 2 * M, BN1_B=n_wconv + 2 * M + 1,
                TOTAL=n_wconv + 2 * M + 2)


def _bt(C):
    """Images packed side-by-side on the 128-lane axis."""
    return max(1, 128 // C)


def skconv_kernel(x_hbm, pvec_ref, pmat_ref, v_ref, xpad_ref, br_ref, dma_sem,
                  *, H, W, C, D, M, Bt, SH):
    L = Bt * C                 # packed lane width of activations
    Dp = Bt * D                # packed lane width of the fc hidden layer
    PAD = M                    # max dilation
    CW = W + 2 * XOFF          # scratch column (sublane) extent
    NS = H // SH               # number of row strips
    R = _pvec_rows(M)
    g = pl.program_id(0)

    # ---- DMA the input tile straight from HBM into the interior of the halo
    #      scratch (no VMEM->VMEM staging copy); overlap it with halo zeroing.
    cp = pltpu.make_async_copy(
        x_hbm.at[g],
        xpad_ref.at[pl.ds(PAD, H), pl.ds(XOFF, W), :],
        dma_sem.at[0])
    cp.start()

    # ---- zero only the halo ring (interior is fully overwritten by the DMA).
    #      Re-zeroed every step: the grid axis is "parallel" so scratch reuse
    #      across steps cannot be assumed.  All stores are sublane-aligned and
    #      touch (8,128)-tiles disjoint from the in-flight DMA window.
    xpad_ref[0:PAD, :, :] = jnp.zeros((PAD, CW, L), jnp.float32)
    xpad_ref[PAD + H:, :, :] = jnp.zeros((PAD, CW, L), jnp.float32)
    xpad_ref[PAD:PAD + H, 0:XOFF, :] = jnp.zeros((H, XOFF, L), jnp.float32)
    xpad_ref[PAD:PAD + H, XOFF + W:, :] = jnp.zeros((H, XOFF, L), jnp.float32)

    cp.wait()

    # ---- phase 1: M dilated depthwise 3x3 convs + folded BN + ReLU,
    #      strip-tiled over H; branches land in VMEM scratch; pooled on the
    #      fly (U is never materialized).
    pool = jnp.zeros((W, L), jnp.float32)            # running sum over branches
    for m in range(M):
        dil = m + 1
        # Hoisted per-branch parameter loads.  Rows are pre-broadcast to
        # (W, L) host-side, so these are plain aligned loads and the MAC loop
        # below needs no sublane splats / broadcast filler.
        wtap = [[pvec_ref[R["WCONV"] + (m * 3 + ky) * 3 + kx, :, 0:L]
                 for kx in range(3)] for ky in range(3)]
        scale_m = pvec_ref[R["BNA_S"] + m, :, 0:L]
        bias_m = pvec_ref[R["BNA_B"] + m, :, 0:L]

        for s in range(NS):
            r0 = s * SH
            acc = jnp.zeros((SH, W, L), jnp.float32)
            for kx in range(3):
                # one W(sublane)-shifted slab load per kx, reused by all 3 ky
                xs = XOFF + (kx - 1) * dil
                slab = xpad_ref[PAD + r0 - dil:PAD + r0 + SH + dil,
                                xs:xs + W, :]
                for ky in range(3):
                    acc = acc + slab[ky * dil:ky * dil + SH] * wtap[ky][kx]
            bstrip = jnp.maximum(acc * scale_m + bias_m, 0.0)
            br_ref[m, r0:r0 + SH, :, :] = bstrip
            pool = pool + jnp.sum(bstrip, axis=0)        # (W, L) partial pool

    # ---- phase 2: global average pool -> fc1 -> fc2 -> softmax over M -------
    s2 = jnp.sum(pool, axis=0, keepdims=True) * (1.0 / (H * W))      # (1, L)
    z = jnp.dot(s2, pmat_ref[0:L, 0:Dp],
                preferred_element_type=jnp.float32)                  # (1, Dp)
    bn1s = pvec_ref[R["BN1_S"], 0:1, 0:Dp]
    bn1b = pvec_ref[R["BN1_B"], 0:1, 0:Dp]
    z = jnp.maximum(z * bn1s + bn1b, 0.0)
    a = jnp.dot(z, pmat_ref[0:Dp, Dp:Dp + M * L],
                preferred_element_type=jnp.float32)                  # (1, M*L)

    parts = [a[:, m * L:(m + 1) * L] for m in range(M)]
    mx = parts[0]
    for m in range(1, M):
        mx = jnp.maximum(mx, parts[m])
    exps = [jnp.exp(p - mx) for p in parts]
    den = exps[0]
    for m in range(1, M):
        den = den + exps[m]
    inv = pl.reciprocal(den, approx=True)          # EUP slot, off the VALUs
    inv = inv * (2.0 - den * inv)                  # one Newton step on (1, L)
    # pre-broadcast the attention row vectors once; reused by every strip
    attw = [jnp.broadcast_to(exps[m] * inv, (W, L)) for m in range(M)]

    # ---- phase 3: attention-weighted combine, strip-wise from the branch
    #      scratch, full-width lane-dense stores.
    for s in range(NS):
        r0 = s * SH
        V = br_ref[0, r0:r0 + SH, :, :] * attw[0]
        for m in range(1, M):
            V = V + br_ref[m, r0:r0 + SH, :, :] * attw[m]
        v_ref[0, r0:r0 + SH, :, :] = V.astype(v_ref.dtype)


def pack_params(params, *, C, D, M, Bt, W):
    """Pack all small parameters into two arrays.  Runs ONCE per parameter
    set, outside the jitted forward (hoisted per the perf review)."""
    L = Bt * C
    Dp = Bt * D
    Wv = max(L, Dp)
    R = _pvec_rows(M)

    def lane_pack(v):                     # (C,) or (D,) -> packed lane layout
        t = jnp.tile(v, Bt)
        return jnp.pad(t, (0, Wv - t.shape[0]))

    rows = []
    for m in range(M):                    # depthwise conv taps
        wm = params["wconv"][m][:, 0]                      # (C, 3, 3)
        for ky in range(3):
            for kx in range(3):
                rows.append(lane_pack(wm[:, ky, kx]))
    for m in range(M):
        rows.append(lane_pack(params["bnA_scale"][m]))
    for m in range(M):
        rows.append(lane_pack(params["bnA_bias"][m]))
    rows.append(lane_pack(params["bn1_scale"]))
    rows.append(lane_pack(params["bn1_bias"]))
    pvec2d = jnp.stack(rows).astype(jnp.float32)           # (11M+2, Wv)
    assert pvec2d.shape[0] == R["TOTAL"]
    # Pre-broadcast every row across W sublanes so in-kernel tap loads are
    # plain aligned (W, L) loads (no sublane splats in the hot loop).
    pvec = jnp.broadcast_to(pvec2d[:, None, :],
                            (R["TOTAL"], W, Wv)).astype(jnp.float32)
    pvec = pvec + 0.0                      # force materialization

    eye = jnp.eye(Bt, dtype=jnp.float32)
    w1bd = jnp.kron(eye, params["w1"].T)                   # (L, Dp) block-diag
    w2_r = params["w2"].reshape(M, C, D)
    w2bd = jnp.concatenate(
        [jnp.kron(eye, w2_r[m].T) for m in range(M)], axis=1)   # (Dp, M*L)
    Rm = max(L, Dp)
    pmat = jnp.zeros((Rm, Dp + M * L), jnp.float32)
    pmat = pmat.at[:L, :Dp].set(w1bd)
    pmat = pmat.at[:Dp, Dp:].set(w2bd)
    return pvec, pmat


def skconv_forward(x_nchw, pvec, pmat, *, M=2, D=32):
    B, C, H, W = x_nchw.shape

    # The module uses groups=32; with in==out==32 channels this is depthwise.
    assert C == 32, "kernel assumes groups == in_channels == out_channels == 32"
    assert M <= XOFF, "halo larger than scratch alignment offset"
    # TODO(synk): general grouped conv (group size > 1) not implemented.

    Bt = _bt(C)                          # images packed onto the lane axis
    G = -(-B // Bt)                      # grid length
    Bp = G * Bt
    L = Bt * C
    PAD = M
    SH = min(8, H)                       # strip height (fits the vreg file)
    while H % SH:
        SH -= 1

    # ---- pack the batch onto the lane axis: (B,C,H,W) -> (G,H,W,Bt*C) --------
    xb = x_nchw
    if Bp != B:
        xb = jnp.pad(xb, ((0, Bp - B), (0, 0), (0, 0), (0, 0)))
    xp = xb.reshape(G, Bt, C, H, W).transpose(0, 3, 4, 1, 2).reshape(G, H, W, L)

    kernel = partial(skconv_kernel, H=H, W=W, C=C, D=D, M=M, Bt=Bt, SH=SH)

    v = pl.pallas_call(
        kernel,
        out_shape=jax.ShapeDtypeStruct((G, H, W, L), jnp.float32),
        grid_spec=pltpu.PrefetchScalarGridSpec(
            num_scalar_prefetch=0,
            grid=(G,),
            in_specs=[
                pl.BlockSpec(memory_space=pl.ANY),            # x stays in HBM
                pl.BlockSpec(pvec.shape, lambda g: (0, 0, 0)),
                pl.BlockSpec(pmat.shape, lambda g: (0, 0)),
            ],
            out_specs=pl.BlockSpec((1, H, W, L), lambda g: (g, 0, 0, 0)),
            scratch_shapes=[
                pltpu.VMEM((H + 2 * PAD, W + 2 * XOFF, L), jnp.float32),
                pltpu.VMEM((M, H, W, L), jnp.float32),
                pltpu.SemaphoreType.DMA((1,)),
            ],
        ),
        compiler_params=pltpu.CompilerParams(
            dimension_semantics=("parallel",)),
    )(xp, pvec, pmat)

    # ---- unpack: (G,H,W,Bt*C) -> (B,C,H,W) -----------------------------------
    out = v.reshape(G, H, W, Bt, C).transpose(0, 3, 4, 1, 2).reshape(Bp, C, H, W)
    return out[:B]


def init_params(key, C, D, M):
    ks = jax.random.split(key, 16)

    def bn_fold(kg, kb, km, kv, n):
        gamma = 1.0 + 0.1 * jax.random.normal(kg, (n,), jnp.float32)
        beta = 0.1 * jax.random.normal(kb, (n,), jnp.float32)
        mean = 0.1 * jax.random.normal(km, (n,), jnp.float32)
        var = 0.5 + jnp.abs(jax.random.normal(kv, (n,), jnp.float32))
        scale = gamma / jnp.sqrt(var + EPS)
        bias = beta - mean * scale
        return scale, bias

    wconv = [0.2 * jax.random.normal(ks[m], (C, 1, 3, 3), jnp.float32)
             for m in range(M)]
    bnA = [bn_fold(ks[2 + 4 * m], ks[3 + 4 * m], ks[4 + 4 * m], ks[5 + 4 * m], C)
           for m in range(M)]
    bnA_scale = jnp.stack([b[0] for b in bnA])
    bnA_bias = jnp.stack([b[1] for b in bnA])

    w1 = 0.2 * jax.random.normal(ks[10], (D, C), jnp.float32)
    bn1_scale, bn1_bias = bn_fold(ks[11], ks[12], ks[13], ks[14], D)
    w2 = 0.2 * jax.random.normal(ks[15], (M * C, D), jnp.float32)

    return dict(wconv=wconv, bnA_scale=bnA_scale, bnA_bias=bnA_bias,
                w1=w1, bn1_scale=bn1_scale, bn1_bias=bn1_bias, w2=w2)


def ref_forward(x_nchw, params, M=2):
    """Pure-JAX reference mirroring the PyTorch forward (inference BN)."""
    B, C, H, W = x_nchw.shape
    outs = []
    for m in range(M):
        dil = m + 1
        y = jax.lax.conv_general_dilated(
            x_nchw, params["wconv"][m],
            window_strides=(1, 1),
            padding=[(dil, dil), (dil, dil)],
            rhs_dilation=(dil, dil),
            feature_group_count=C,
            dimension_numbers=("NCHW", "OIHW", "NCHW"),
            precision=jax.lax.Precision.HIGHEST)
        y = (y * params["bnA_scale"][m][None, :, None, None]
             + params["bnA_bias"][m][None, :, None, None])
        outs.append(jnp.maximum(y, 0.0))
    U = outs[0]
    for m in range(1, M):
        U = U + outs[m]
    s = jnp.mean(U, axis=(2, 3))                                  # (B, C)
    z = jnp.maximum(
        jnp.dot(s, params["w1"].T, precision=jax.lax.Precision.HIGHEST)
        * params["bn1_scale"] + params["bn1_bias"], 0.0)          # (B, D)
    a = jnp.dot(z, params["w2"].T, precision=jax.lax.Precision.HIGHEST)
    a = jax.nn.softmax(a.reshape(B, M, C), axis=1)
    V = outs[0] * a[:, 0][:, :, None, None]
    for m in range(1, M):
        V = V + outs[m] * a[:, m][:, :, None, None]
    return V


if __name__ == "__main__":
    # groups=32 requires C == 32; B = 8 gives 4 images per lane-packed tile
    # and a grid of 2 (keeps both v7x TensorCores busy; 2 cheap serial steps
    # on single-TC v5e/v6e).
    B, C, H, W = 8, 32, 16, 16
    M, r, Lmin = 2, 16, 32
    D = max(C // r, Lmin)           # = 32

    key = jax.random.PRNGKey(0)
    kx_, kp_ = jax.random.split(key)
    x = jax.random.normal(kx_, (B, C, H, W), jnp.float32)
    params = init_params(kp_, C, D, M)

    # Parameter packing hoisted out of the per-call path (once per param set).
    pvec, pmat = pack_params(params, C=C, D=D, M=M, Bt=_bt(C), W=W)

    fwd = jax.jit(partial(skconv_forward, M=M, D=D))
    out = jax.block_until_ready(fwd(x, pvec, pmat))

    ref = ref_forward(x, params, M=M)
    np.testing.assert_allclose(np.asarray(out), np.asarray(ref),
                               atol=2e-3, rtol=2e-3)
    print("KERNEL_OK")
</pallas_src>

<mosaic_0001>
module attributes {stable_mosaic.version = 11 : i64} {
  func.func @skconv_kernel(%arg0: i32, %arg1: memref<2x16x16x128xf32, #tpu.memory_space<any>>, %arg2: memref<24x16x128xf32, #tpu.memory_space<vmem>>, %arg3: memref<128x384xf32, #tpu.memory_space<vmem>>, %arg4: memref<1x16x16x128xf32, #tpu.memory_space<vmem>>, %arg5: memref<20x32x128xf32, #tpu.memory_space<vmem>>, %arg6: memref<2x16x16x128xf32, #tpu.memory_space<vmem>>, %arg7: memref<1x!tpu.dma_semaphore, #tpu.memory_space<semaphore_mem>>) attributes {dimension_semantics = [#tpu.dimension_semantics<parallel>], iteration_bounds = array<i64: 2>, scalar_prefetch = 0 : i64, scratch_operands = 3 : i64, tpu.core_type = #tpu.core_type<tc>, window_params = [{}, {pipeline_mode = #tpu.pipeline_mode<synchronous>, transform_indices = @transform_1, window_bounds = array<i64: 24, 16, 128>}, {pipeline_mode = #tpu.pipeline_mode<synchronous>, transform_indices = @transform_2, window_bounds = array<i64: 128, 384>}, {transform_indices = @transform_3, window_bounds = array<i64: 1, 16, 16, 128>}]} {
    %c0_i32 = arith.constant 0 : i32
    %c0_i32_0 = arith.constant 0 : i32
    %c0_i32_1 = arith.constant 0 : i32
    %c0_i32_2 = arith.constant 0 : i32
    %0 = tpu.memref_slice %arg1[%arg0, %c0_i32_0, %c0_i32_1, %c0_i32_2] : memref<2x16x16x128xf32, #tpu.memory_space<any>> -> memref<1x16x16x128xf32, #tpu.memory_space<any>>
    %1 = tpu.memref_squeeze %0 : memref<1x16x16x128xf32, #tpu.memory_space<any>> -> memref<16x16x128xf32, #tpu.memory_space<any>>
    %c2_i32 = arith.constant 2 : i32
    %c8_i32 = arith.constant 8 : i32
    %c0_i32_3 = arith.constant 0 : i32
    %2 = tpu.memref_slice %arg5[%c2_i32, %c8_i32, %c0_i32_3] : memref<20x32x128xf32, #tpu.memory_space<vmem>> -> memref<16x16x128xf32, #tpu.memory_space<vmem>>
    %3 = tpu.memref_slice %arg7[%c0_i32] : memref<1x!tpu.dma_semaphore, #tpu.memory_space<semaphore_mem>> -> memref<1x!tpu.dma_semaphore, #tpu.memory_space<semaphore_mem>>
    %4 = tpu.memref_squeeze %3 : memref<1x!tpu.dma_semaphore, #tpu.memory_space<semaphore_mem>> -> memref<!tpu.dma_semaphore, #tpu.memory_space<semaphore_mem>>
    tpu.enqueue_dma source(%1 : memref<16x16x128xf32, #tpu.memory_space<any>>) target(%2 : memref<16x16x128xf32, #tpu.memory_space<vmem>>) target_semaphore(%4 : memref<!tpu.dma_semaphore, #tpu.memory_space<semaphore_mem>>)
    %cst = arith.constant 0.000000e+00 : f32
    %5 = vector.broadcast %cst : f32 to vector<2x32x128xf32>
    %c0 = arith.constant 0 : index
    %c0_4 = arith.constant 0 : index
    %c0_5 = arith.constant 0 : index
    %6 = vector.load %arg5[%c0, %c0_4, %c0_5] : memref<20x32x128xf32, #tpu.memory_space<vmem>>, vector<2x32x128xf32>
    tpu.vector_store %arg5[%c0, %c0_4, %c0_5], %5 {strides = array<i32>} : memref<20x32x128xf32, #tpu.memory_space<vmem>>, vector<2x32x128xf32>,
    %cst_6 = arith.constant 0.000000e+00 : f32
    %7 = vector.broadcast %cst_6 : f32 to vector<2x32x128xf32>
    %c18 = arith.constant 18 : index
    %c0_7 = arith.constant 0 : index
    %c0_8 = arith.constant 0 : index
    %8 = vector.load %arg5[%c18, %c0_7, %c0_8] : memref<20x32x128xf32, #tpu.memory_space<vmem>>, vector<2x32x128xf32>
    tpu.vector_store %arg5[%c18, %c0_7, %c0_8], %7 {strides = array<i32>} : memref<20x32x128xf32, #tpu.memory_space<vmem>>, vector<2x32x128xf32>,
    %cst_9 = arith.constant 0.000000e+00 : f32
    %9 = vector.broadcast %cst_9 : f32 to vector<16x8x128xf32>
    %c2 = arith.constant 2 : index
    %c0_10 = arith.constant 0 : index
    %c0_11 = arith.constant 0 : index
    %10 = vector.load %arg5[%c2, %c0_10, %c0_11] : memref<20x32x128xf32, #tpu.memory_space<vmem>>, vector<16x8x128xf32>
    tpu.vector_store %arg5[%c2, %c0_10, %c0_11], %9 {strides = array<i32>} : memref<20x32x128xf32, #tpu.memory_space<vmem>>, vector<16x8x128xf32>,
    %cst_12 = arith.constant 0.000000e+00 : f32
    %11 = vector.broadcast %cst_12 : f32 to vector<16x8x128xf32>
    %c2_13 = arith.constant 2 : index
    %c24 = arith.constant 24 : index
    %c0_14 = arith.constant 0 : index
    %12 = vector.load %arg5[%c2_13, %c24, %c0_14] : memref<20x32x128xf32, #tpu.memory_space<vmem>>, vector<16x8x128xf32>
    tpu.vector_store %arg5[%c2_13, %c24, %c0_14], %11 {strides = array<i32>} : memref<20x32x128xf32, #tpu.memory_space<vmem>>, vector<16x8x128xf32>,
    %c0_i32_15 = arith.constant 0 : i32
    %c0_i32_16 = arith.constant 0 : i32
    %c0_i32_17 = arith.constant 0 : i32
    %c0_i32_18 = arith.constant 0 : i32
    %13 = tpu.memref_slice %arg1[%arg0, %c0_i32_16, %c0_i32_17, %c0_i32_18] : memref<2x16x16x128xf32, #tpu.memory_space<any>> -> memref<1x16x16x128xf32, #tpu.memory_space<any>>
    %14 = tpu.memref_squeeze %13 : memref<1x16x16x128xf32, #tpu.memory_space<any>> -> memref<16x16x128xf32, #tpu.memory_space<any>>
    %c2_i32_19 = arith.constant 2 : i32
    %c8_i32_20 = arith.constant 8 : i32
    %c0_i32_21 = arith.constant 0 : i32
    %15 = tpu.memref_slice %arg5[%c2_i32_19, %c8_i32_20, %c0_i32_21] : memref<20x32x128xf32, #tpu.memory_space<vmem>> -> memref<16x16x128xf32, #tpu.memory_space<vmem>>
    %16 = tpu.memref_slice %arg7[%c0_i32_15] : memref<1x!tpu.dma_semaphore, #tpu.memory_space<semaphore_mem>> -> memref<1x!tpu.dma_semaphore, #tpu.memory_space<semaphore_mem>>
    %17 = tpu.memref_squeeze %16 : memref<1x!tpu.dma_semaphore, #tpu.memory_space<semaphore_mem>> -> memref<!tpu.dma_semaphore, #tpu.memory_space<semaphore_mem>>
    tpu.wait_dma2 semaphore(%17 : memref<!tpu.dma_semaphore, #tpu.memory_space<semaphore_mem>>) src(%14 : memref<16x16x128xf32, #tpu.memory_space<any>>) dst(%15 : memref<16x16x128xf32, #tpu.memory_space<vmem>>)
    %cst_22 = arith.constant 0.000000e+00 : f32
    %18 = vector.broadcast %cst_22 : f32 to vector<16x128xf32>
    %c0_23 = arith.constant 0 : index
    %c0_24 = arith.constant 0 : index
    %c0_25 = arith.constant 0 : index
    %19 = vector.load %arg2[%c0_23, %c0_24, %c0_25] : memref<24x16x128xf32, #tpu.memory_space<vmem>>, vector<1x16x128xf32>
    %20 = vector.shape_cast %19 : vector<1x16x128xf32> to vector<16x128xf32>
    %c1 = arith.constant 1 : index
    %c0_26 = arith.constant 0 : index
    %c0_27 = arith.constant 0 : index
    %21 = vector.load %arg2[%c1, %c0_26, %c0_27] : memref<24x16x128xf32, #tpu.memory_space<vmem>>, vector<1x16x128xf32>
    %22 = vector.shape_cast %21 : vector<1x16x128xf32> to vector<16x128xf32>
    %c2_28 = arith.constant 2 : index
    %c0_29 = arith.constant 0 : index
    %c0_30 = arith.constant 0 : index
    %23 = vector.load %arg2[%c2_28, %c0_29, %c0_30] : memref<24x16x128xf32, #tpu.memory_space<vmem>>, vector<1x16x128xf32>
    %24 = vector.shape_cast %23 : vector<1x16x128xf32> to vector<16x128xf32>
    %c3 = arith.constant 3 : index
    %c0_31 = arith.constant 0 : index
    %c0_32 = arith.constant 0 : index
    %25 = vector.load %arg2[%c3, %c0_31, %c0_32] : memref<24x16x128xf32, #tpu.memory_space<vmem>>, vector<1x16x128xf32>
    %26 = vector.shape_cast %25 : vector<1x16x128xf32> to vector<16x128xf32>
    %c4 = arith.constant 4 : index
    %c0_33 = arith.constant 0 : index
    %c0_34 = arith.constant 0 : index
    %27 = vector.load %arg2[%c4, %c0_33, %c0_34] : memref<24x16x128xf32, #tpu.memory_space<vmem>>, vector<1x16x128xf32>
    %28 = vector.shape_cast %27 : vector<1x16x128xf32> to vector<16x128xf32>
    %c5 = arith.constant 5 : index
    %c0_35 = arith.constant 0 : index
    %c0_36 = arith.constant 0 : index
    %29 = vector.load %arg2[%c5, %c0_35, %c0_36] : memref<24x16x128xf32, #tpu.memory_space<vmem>>, vector<1x16x128xf32>
    %30 = vector.shape_cast %29 : vector<1x16x128xf32> to vector<16x128xf32>
    %c6 = arith.constant 6 : index
    %c0_37 = arith.constant 0 : index
    %c0_38 = arith.constant 0 : index
    %31 = vector.load %arg2[%c6, %c0_37, %c0_38] : memref<24x16x128xf32, #tpu.memory_space<vmem>>, vector<1x16x128xf32>
    %32 = vector.shape_cast %31 : vector<1x16x128xf32> to vector<16x128xf32>
    %c7 = arith.constant 7 : index
    %c0_39 = arith.constant 0 : index
    %c0_40 = arith.constant 0 : index
    %33 = vector.load %arg2[%c7, %c0_39, %c0_40] : memref<24x16x128xf32, #tpu.memory_space<vmem>>, vector<1x16x128xf32>
    %34 = vector.shape_cast %33 : vector<1x16x128xf32> to vector<16x128xf32>
    %c8 = arith.constant 8 : index
    %c0_41 = arith.constant 0 : index
    %c0_42 = arith.constant 0 : index
    %35 = vector.load %arg2[%c8, %c0_41, %c0_42] : memref<24x16x128xf32, #tpu.memory_space<vmem>>, vector<1x16x128xf32>
    %36 = vector.shape_cast %35 : vector<1x16x128xf32> to vector<16x128xf32>
    %c18_43 = arith.constant 18 : index
    %c0_44 = arith.constant 0 : index
    %c0_45 = arith.constant 0 : index
    %37 = vector.load %arg2[%c18_43, %c0_44, %c0_45] : memref<24x16x128xf32, #tpu.memory_space<vmem>>, vector<1x16x128xf32>
    %38 = vector.shape_cast %37 : vector<1x16x128xf32> to vector<16x128xf32>
    %c20 = arith.constant 20 : index
    %c0_46 = arith.constant 0 : index
    %c0_47 = arith.constant 0 : index
    %39 = vector.load %arg2[%c20, %c0_46, %c0_47] : memref<24x16x128xf32, #tpu.memory_space<vmem>>, vector<1x16x128xf32>
    %40 = vector.shape_cast %39 : vector<1x16x128xf32> to vector<16x128xf32>
    %cst_48 = arith.constant 0.000000e+00 : f32
    %41 = vector.broadcast %cst_48 : f32 to vector<8x16x128xf32>
    %c1_49 = arith.constant 1 : index
    %c7_50 = arith.constant 7 : index
    %c0_51 = arith.constant 0 : index
    %42 = vector.load %arg5[%c1_49, %c7_50, %c0_51] : memref<20x32x128xf32, #tpu.memory_space<vmem>>, vector<10x16x128xf32>
    %43 = vector.extract_strided_slice %42 {offsets = [0, 0, 0], sizes = [8, 16, 128], strides = [1, 1, 1]} : vector<10x16x128xf32> to vector<8x16x128xf32>
    %44 = vector.shape_cast %20 : vector<16x128xf32> to vector<1x16x128xf32>
    %45 = vector.broadcast %44 : vector<1x16x128xf32> to vector<8x16x128xf32>
    %46 = arith.mulf %43, %45 : vector<8x16x128xf32>
    %47 = arith.addf %41, %46 : vector<8x16x128xf32>
    %48 = vector.extract_strided_slice %42 {offsets = [1, 0, 0], sizes = [8, 16, 128], strides = [1, 1, 1]} : vector<10x16x128xf32> to vector<8x16x128xf32>
    %49 = vector.shape_cast %26 : vector<16x128xf32> to vector<1x16x128xf32>
    %50 = vector.broadcast %49 : vector<1x16x128xf32> to vector<8x16x128xf32>
    %51 = arith.mulf %48, %50 : vector<8x16x128xf32>
    %52 = arith.addf %47, %51 : vector<8x16x128xf32>
    %53 = vector.extract_strided_slice %42 {offsets = [2, 0, 0], sizes = [8, 16, 128], strides = [1, 1, 1]} : vector<10x16x128xf32> to vector<8x16x128xf32>
    %54 = vector.shape_cast %32 : vector<16x128xf32> to vector<1x16x128xf32>
    %55 = vector.broadcast %54 : vector<1x16x128xf32> to vector<8x16x128xf32>
    %56 = arith.mulf %53, %55 : vector<8x16x128xf32>
    %57 = arith.addf %52, %56 : vector<8x16x128xf32>
    %c1_52 = arith.constant 1 : index
    %c8_53 = arith.constant 8 : index
    %c0_54 = arith.constant 0 : index
    %58 = vector.load %arg5[%c1_52, %c8_53, %c0_54] : memref<20x32x128xf32, #tpu.memory_space<vmem>>, vector<10x16x128xf32>
    %59 = vector.extract_strided_slice %58 {offsets = [0, 0, 0], sizes = [8, 16, 128], strides = [1, 1, 1]} : vector<10x16x128xf32> to vector<8x16x128xf32>
    %60 = vector.shape_cast %22 : vector<16x128xf32> to vector<1x16x128xf32>
    %61 = vector.broadcast %60 : vector<1x16x128xf32> to vector<8x16x128xf32>
    %62 = arith.mulf %59, %61 : vector<8x16x128xf32>
    %63 = arith.addf %57, %62 : vector<8x16x128xf32>
    %64 = vector.extract_strided_slice %58 {offsets = [1, 0, 0], sizes = [8, 16, 128], strides = [1, 1, 1]} : vector<10x16x128xf32> to vector<8x16x128xf32>
    %65 = vector.shape_cast %28 : vector<16x128xf32> to vector<1x16x128xf32>
    %66 = vector.broadcast %65 : vector<1x16x128xf32> to vector<8x16x128xf32>
    %67 = arith.mulf %64, %66 : vector<8x16x128xf32>
    %68 = arith.addf %63, %67 : vector<8x16x128xf32>
    %69 = vector.extract_strided_slice %58 {offsets = [2, 0, 0], sizes = [8, 16, 128], strides = [1, 1, 1]} : vector<10x16x128xf32> to vector<8x16x128xf32>
    %70 = vector.shape_cast %34 : vector<16x128xf32> to vector<1x16x128xf32>
    %71 = vector.broadcast %70 : vector<1x16x128xf32> to vector<8x16x128xf32>
    %72 = arith.mulf %69, %71 : vector<8x16x128xf32>
    %73 = arith.addf %68, %72 : vector<8x16x128xf32>
    %c1_55 = arith.constant 1 : index
    %c9 = arith.constant 9 : index
    %c0_56 = arith.constant 0 : index
    %74 = vector.load %arg5[%c1_55, %c9, %c0_56] : memref<20x32x128xf32, #tpu.memory_space<vmem>>, vector<10x16x128xf32>
    %75 = vector.extract_strided_slice %74 {offsets = [0, 0, 0], sizes = [8, 16, 128], strides = [1, 1, 1]} : vector<10x16x128xf32> to vector<8x16x128xf32>
    %76 = vector.shape_cast %24 : vector<16x128xf32> to vector<1x16x128xf32>
    %77 = vector.broadcast %76 : vector<1x16x128xf32> to vector<8x16x128xf32>
    %78 = arith.mulf %75, %77 : vector<8x16x128xf32>
    %79 = arith.addf %73, %78 : vector<8x16x128xf32>
    %80 = vector.extract_strided_slice %74 {offsets = [1, 0, 0], sizes = [8, 16, 128], strides = [1, 1, 1]} : vector<10x16x128xf32> to vector<8x16x128xf32>
    %81 = vector.shape_cast %30 : vector<16x128xf32> to vector<1x16x128xf32>
    %82 = vector.broadcast %81 : vector<1x16x128xf32> to vector<8x16x128xf32>
    %83 = arith.mulf %80, %82 : vector<8x16x128xf32>
    %84 = arith.addf %79, %83 : vector<8x16x128xf32>
    %85 = vector.extract_strided_slice %74 {offsets = [2, 0, 0], sizes = [8, 16, 128], strides = [1, 1, 1]} : vector<10x16x128xf32> to vector<8x16x128xf32>
    %86 = vector.shape_cast %36 : vector<16x128xf32> to vector<1x16x128xf32>
    %87 = vector.broadcast %86 : vector<1x16x128xf32> to vector<8x16x128xf32>
    %88 = arith.mulf %85, %87 : vector<8x16x128xf32>
    %89 = arith.addf %84, %88 : vector<8x16x128xf32>
    %90 = vector.shape_cast %38 : vector<16x128xf32> to vector<1x16x128xf32>
    %91 = vector.broadcast %90 : vector<1x16x128xf32> to vector<8x16x128xf32>
    %92 = arith.mulf %89, %91 : vector<8x16x128xf32>
    %93 = vector.shape_cast %40 : vector<16x128xf32> to vector<1x16x128xf32>
    %94 = vector.broadcast %93 : vector<1x16x128xf32> to vector<8x16x128xf32>
    %95 = arith.addf %92, %94 : vector<8x16x128xf32>
    %cst_57 = arith.constant 0.000000e+00 : f32
    %96 = vector.broadcast %cst_57 : f32 to vector<8x16x128xf32>
    %97 = arith.maximumf %95, %96 : vector<8x16x128xf32>
    %c0_58 = arith.constant 0 : index
    %c0_59 = arith.constant 0 : index
    %c0_60 = arith.constant 0 : index
    %c0_61 = arith.constant 0 : index
    %98 = vector.load %arg6[%c0_58, %c0_59, %c0_60, %c0_61] : memref<2x16x16x128xf32, #tpu.memory_space<vmem>>, vector<1x8x16x128xf32>
    %99 = vector.shape_cast %98 : vector<1x8x16x128xf32> to vector<8x16x128xf32>
    %100 = vector.shape_cast %97 : vector<8x16x128xf32> to vector<1x8x16x128xf32>
    tpu.vector_store %arg6[%c0_58, %c0_59, %c0_60, %c0_61], %100 {strides = array<i32>} : memref<2x16x16x128xf32, #tpu.memory_space<vmem>>, vector<1x8x16x128xf32>,
    %cst_62 = arith.constant dense<0.000000e+00> : vector<16x128xf32>
    %101 = vector.multi_reduction <add>, %97, %cst_62 [0] : vector<8x16x128xf32> to vector<16x128xf32>
    %102 = arith.addf %18, %101 : vector<16x128xf32>
    %cst_63 = arith.constant 0.000000e+00 : f32
    %103 = vector.broadcast %cst_63 : f32 to vector<8x16x128xf32>
    %c9_64 = arith.constant 9 : index
    %c7_65 = arith.constant 7 : index
    %c0_66 = arith.constant 0 : index
    %104 = vector.load %arg5[%c9_64, %c7_65, %c0_66] : memref<20x32x128xf32, #tpu.memory_space<vmem>>, vector<10x16x128xf32>
    %105 = vector.extract_strided_slice %104 {offsets = [0, 0, 0], sizes = [8, 16, 128], strides = [1, 1, 1]} : vector<10x16x128xf32> to vector<8x16x128xf32>
    %106 = vector.shape_cast %20 : vector<16x128xf32> to vector<1x16x128xf32>
    %107 = vector.broadcast %106 : vector<1x16x128xf32> to vector<8x16x128xf32>
    %108 = arith.mulf %105, %107 : vector<8x16x128xf32>
    %109 = arith.addf %103, %108 : vector<8x16x128xf32>
    %110 = vector.extract_strided_slice %104 {offsets = [1, 0, 0], sizes = [8, 16, 128], strides = [1, 1, 1]} : vector<10x16x128xf32> to vector<8x16x128xf32>
    %111 = vector.shape_cast %26 : vector<16x128xf32> to vector<1x16x128xf32>
    %112 = vector.broadcast %111 : vector<1x16x128xf32> to vector<8x16x128xf32>
    %113 = arith.mulf %110, %112 : vector<8x16x128xf32>
    %114 = arith.addf %109, %113 : vector<8x16x128xf32>
    %115 = vector.extract_strided_slice %104 {offsets = [2, 0, 0], sizes = [8, 16, 128], strides = [1, 1, 1]} : vector<10x16x128xf32> to vector<8x16x128xf32>
    %116 = vector.shape_cast %32 : vector<16x128xf32> to vector<1x16x128xf32>
    %117 = vector.broadcast %116 : vector<1x16x128xf32> to vector<8x16x128xf32>
    %118 = arith.mulf %115, %117 : vector<8x16x128xf32>
    %119 = arith.addf %114, %118 : vector<8x16x128xf32>
    %c9_67 = arith.constant 9 : index
    %c8_68 = arith.constant 8 : index
    %c0_69 = arith.constant 0 : index
    %120 = vector.load %arg5[%c9_67, %c8_68, %c0_69] : memref<20x32x128xf32, #tpu.memory_space<vmem>>, vector<10x16x128xf32>
    %121 = vector.extract_strided_slice %120 {offsets = [0, 0, 0], sizes = [8, 16, 128], strides = [1, 1, 1]} : vector<10x16x128xf32> to vector<8x16x128xf32>
    %122 = vector.shape_cast %22 : vector<16x128xf32> to vector<1x16x128xf32>
    %123 = vector.broadcast %122 : vector<1x16x128xf32> to vector<8x16x128xf32>
    %124 = arith.mulf %121, %123 : vector<8x16x128xf32>
    %125 = arith.addf %119, %124 : vector<8x16x128xf32>
    %126 = vector.extract_strided_slice %120 {offsets = [1, 0, 0], sizes = [8, 16, 128], strides = [1, 1, 1]} : vector<10x16x128xf32> to vector<8x16x128xf32>
    %127 = vector.shape_cast %28 : vector<16x128xf32> to vector<1x16x128xf32>
    %128 = vector.broadcast %127 : vector<1x16x128xf32> to vector<8x16x128xf32>
    %129 = arith.mulf %126, %128 : vector<8x16x128xf32>
    %130 = arith.addf %125, %129 : vector<8x16x128xf32>
    %131 = vector.extract_strided_slice %120 {offsets = [2, 0, 0], sizes = [8, 16, 128], strides = [1, 1, 1]} : vector<10x16x128xf32> to vector<8x16x128xf32>
    %132 = vector.shape_cast %34 : vector<16x128xf32> to vector<1x16x128xf32>
    %133 = vector.broadcast %132 : vector<1x16x128xf32> to vector<8x16x128xf32>
    %134 = arith.mulf %131, %133 : vector<8x16x128xf32>
    %135 = arith.addf %130, %134 : vector<8x16x128xf32>
    %c9_70 = arith.constant 9 : index
    %c9_71 = arith.constant 9 : index
    %c0_72 = arith.constant 0 : index
    %136 = vector.load %arg5[%c9_70, %c9_71, %c0_72] : memref<20x32x128xf32, #tpu.memory_space<vmem>>, vector<10x16x128xf32>
    %137 = vector.extract_strided_slice %136 {offsets = [0, 0, 0], sizes = [8, 16, 128], strides = [1, 1, 1]} : vector<10x16x128xf32> to vector<8x16x128xf32>
    %138 = vector.shape_cast %24 : vector<16x128xf32> to vector<1x16x128xf32>
    %139 = vector.broadcast %138 : vector<1x16x128xf32> to vector<8x16x128xf32>
    %140 = arith.mulf %137, %139 : vector<8x16x128xf32>
    %141 = arith.addf %135, %140 : vector<8x16x128xf32>
    %142 = vector.extract_strided_slice %136 {offsets = [1, 0, 0], sizes = [8, 16, 128], strides = [1, 1, 1]} : vector<10x16x128xf32> to vector<8x16x128xf32>
    %143 = vector.shape_cast %30 : vector<16x128xf32> to vector<1x16x128xf32>
    %144 = vector.broadcast %143 : vector<1x16x128xf32> to vector<8x16x128xf32>
    %145 = arith.mulf %142, %144 : vector<8x16x128xf32>
    %146 = arith.addf %141, %145 : vector<8x16x128xf32>
    %147 = vector.extract_strided_slice %136 {offsets = [2, 0, 0], sizes = [8, 16, 128], strides = [1, 1, 1]} : vector<10x16x128xf32> to vector<8x16x128xf32>
    %148 = vector.shape_cast %36 : vector<16x128xf32> to vector<1x16x128xf32>
    %149 = vector.broadcast %148 : vector<1x16x128xf32> to vector<8x16x128xf32>
    %150 = arith.mulf %147, %149 : vector<8x16x128xf32>
    %151 = arith.addf %146, %150 : vector<8x16x128xf32>
    %152 = vector.shape_cast %38 : vector<16x128xf32> to vector<1x16x128xf32>
    %153 = vector.broadcast %152 : vector<1x16x128xf32> to vector<8x16x128xf32>
    %154 = arith.mulf %151, %153 : vector<8x16x128xf32>
    %155 = vector.shape_cast %40 : vector<16x128xf32> to vector<1x16x128xf32>
    %156 = vector.broadcast %155 : vector<1x16x128xf32> to vector<8x16x128xf32>
    %157 = arith.addf %154, %156 : vector<8x16x128xf32>
    %cst_73 = arith.constant 0.000000e+00 : f32
    %158 = vector.broadcast %cst_73 : f32 to vector<8x16x128xf32>
    %159 = arith.maximumf %157, %158 : vector<8x16x128xf32>
    %c0_74 = arith.constant 0 : index
    %c8_75 = arith.constant 8 : index
    %c0_76 = arith.constant 0 : index
    %c0_77 = arith.constant 0 : index
    %160 = vector.load %arg6[%c0_74, %c8_75, %c0_76, %c0_77] : memref<2x16x16x128xf32, #tpu.memory_space<vmem>>, vector<1x8x16x128xf32>
    %161 = vector.shape_cast %160 : vector<1x8x16x128xf32> to vector<8x16x128xf32>
    %162 = vector.shape_cast %159 : vector<8x16x128xf32> to vector<1x8x16x128xf32>
    tpu.vector_store %arg6[%c0_74, %c8_75, %c0_76, %c0_77], %162 {strides = array<i32>} : memref<2x16x16x128xf32, #tpu.memory_space<vmem>>, vector<1x8x16x128xf32>,
    %cst_78 = arith.constant dense<0.000000e+00> : vector<16x128xf32>
    %163 = vector.multi_reduction <add>, %159, %cst_78 [0] : vector<8x16x128xf32> to vector<16x128xf32>
    %164 = arith.addf %102, %163 : vector<16x128xf32>
    %c9_79 = arith.constant 9 : index
    %c0_80 = arith.constant 0 : index
    %c0_81 = arith.constant 0 : index
    %165 = vector.load %arg2[%c9_79, %c0_80, %c0_81] : memref<24x16x128xf32, #tpu.memory_space<vmem>>, vector<1x16x128xf32>
    %166 = vector.shape_cast %165 : vector<1x16x128xf32> to vector<16x128xf32>
    %c10 = arith.constant 10 : index
    %c0_82 = arith.constant 0 : index
    %c0_83 = arith.constant 0 : index
    %167 = vector.load %arg2[%c10, %c0_82, %c0_83] : memref<24x16x128xf32, #tpu.memory_space<vmem>>, vector<1x16x128xf32>
    %168 = vector.shape_cast %167 : vector<1x16x128xf32> to vector<16x128xf32>
    %c11 = arith.constant 11 : index
    %c0_84 = arith.constant 0 : index
    %c0_85 = arith.constant 0 : index
    %169 = vector.load %arg2[%c11, %c0_84, %c0_85] : memref<24x16x128xf32, #tpu.memory_space<vmem>>, vector<1x16x128xf32>
    %170 = vector.shape_cast %169 : vector<1x16x128xf32> to vector<16x128xf32>
    %c12 = arith.constant 12 : index
    %c0_86 = arith.constant 0 : index
    %c0_87 = arith.constant 0 : index
    %171 = vector.load %arg2[%c12, %c0_86, %c0_87] : memref<24x16x128xf32, #tpu.memory_space<vmem>>, vector<1x16x128xf32>
    %172 = vector.shape_cast %171 : vector<1x16x128xf32> to vector<16x128xf32>
    %c13 = arith.constant 13 : index
    %c0_88 = arith.constant 0 : index
    %c0_89 = arith.constant 0 : index
    %173 = vector.load %arg2[%c13, %c0_88, %c0_89] : memref<24x16x128xf32, #tpu.memory_space<vmem>>, vector<1x16x128xf32>
    %174 = vector.shape_cast %173 : vector<1x16x128xf32> to vector<16x128xf32>
    %c14 = arith.constant 14 : index
    %c0_90 = arith.constant 0 : index
    %c0_91 = arith.constant 0 : index
    %175 = vector.load %arg2[%c14, %c0_90, %c0_91] : memref<24x16x128xf32, #tpu.memory_space<vmem>>, vector<1x16x128xf32>
    %176 = vector.shape_cast %175 : vector<1x16x128xf32> to vector<16x128xf32>
    %c15 = arith.constant 15 : index
    %c0_92 = arith.constant 0 : index
    %c0_93 = arith.constant 0 : index
    %177 = vector.load %arg2[%c15, %c0_92, %c0_93] : memref<24x16x128xf32, #tpu.memory_space<vmem>>, vector<1x16x128xf32>
    %178 = vector.shape_cast %177 : vector<1x16x128xf32> to vector<16x128xf32>
    %c16 = arith.constant 16 : index
    %c0_94 = arith.constant 0 : index
    %c0_95 = arith.constant 0 : index
    %179 = vector.load %arg2[%c16, %c0_94, %c0_95] : memref<24x16x128xf32, #tpu.memory_space<vmem>>, vector<1x16x128xf32>
    %180 = vector.shape_cast %179 : vector<1x16x128xf32> to vector<16x128xf32>
    %c17 = arith.constant 17 : index
    %c0_96 = arith.constant 0 : index
    %c0_97 = arith.constant 0 : index
    %181 = vector.load %arg2[%c17, %c0_96, %c0_97] : memref<24x16x128xf32, #tpu.memory_space<vmem>>, vector<1x16x128xf32>
    %182 = vector.shape_cast %181 : vector<1x16x128xf32> to vector<16x128xf32>
    %c19 = arith.constant 19 : index
    %c0_98 = arith.constant 0 : index
    %c0_99 = arith.constant 0 : index
    %183 = vector.load %arg2[%c19, %c0_98, %c0_99] : memref<24x16x128xf32, #tpu.memory_space<vmem>>, vector<1x16x128xf32>
    %184 = vector.shape_cast %183 : vector<1x16x128xf32> to vector<16x128xf32>
    %c21 = arith.constant 21 : index
    %c0_100 = arith.constant 0 : index
    %c0_101 = arith.constant 0 : index
    %185 = vector.load %arg2[%c21, %c0_100, %c0_101] : memref<24x16x128xf32, #tpu.memory_space<vmem>>, vector<1x16x128xf32>
    %186 = vector.shape_cast %185 : vector<1x16x128xf32> to vector<16x128xf32>
    %cst_102 = arith.constant 0.000000e+00 : f32
    %187 = vector.broadcast %cst_102 : f32 to vector<8x16x128xf32>
    %c0_103 = arith.constant 0 : index
    %c6_104 = arith.constant 6 : index
    %c0_105 = arith.constant 0 : index
    %188 = vector.load %arg5[%c0_103, %c6_104, %c0_105] : memref<20x32x128xf32, #tpu.memory_space<vmem>>, vector<12x16x128xf32>
    %189 = vector.extract_strided_slice %188 {offsets = [0, 0, 0], sizes = [8, 16, 128], strides = [1, 1, 1]} : vector<12x16x128xf32> to vector<8x16x128xf32>
    %190 = vector.shape_cast %166 : vector<16x128xf32> to vector<1x16x128xf32>
    %191 = vector.broadcast %190 : vector<1x16x128xf32> to vector<8x16x128xf32>
    %192 = arith.mulf %189, %191 : vector<8x16x128xf32>
    %193 = arith.addf %187, %192 : vector<8x16x128xf32>
    %194 = vector.extract_strided_slice %188 {offsets = [2, 0, 0], sizes = [8, 16, 128], strides = [1, 1, 1]} : vector<12x16x128xf32> to vector<8x16x128xf32>
    %195 = vector.shape_cast %172 : vector<16x128xf32> to vector<1x16x128xf32>
    %196 = vector.broadcast %195 : vector<1x16x128xf32> to vector<8x16x128xf32>
    %197 = arith.mulf %194, %196 : vector<8x16x128xf32>
    %198 = arith.addf %193, %197 : vector<8x16x128xf32>
    %199 = vector.extract_strided_slice %188 {offsets = [4, 0, 0], sizes = [8, 16, 128], strides = [1, 1, 1]} : vector<12x16x128xf32> to vector<8x16x128xf32>
    %200 = vector.shape_cast %178 : vector<16x128xf32> to vector<1x16x128xf32>
    %201 = vector.broadcast %200 : vector<1x16x128xf32> to vector<8x16x128xf32>
    %202 = arith.mulf %199, %201 : vector<8x16x128xf32>
    %203 = arith.addf %198, %202 : vector<8x16x128xf32>
    %c0_106 = arith.constant 0 : index
    %c8_107 = arith.constant 8 : index
    %c0_108 = arith.constant 0 : index
    %204 = vector.load %arg5[%c0_106, %c8_107, %c0_108] : memref<20x32x128xf32, #tpu.memory_space<vmem>>, vector<12x16x128xf32>
    %205 = vector.extract_strided_slice %204 {offsets = [0, 0, 0], sizes = [8, 16, 128], strides = [1, 1, 1]} : vector<12x16x128xf32> to vector<8x16x128xf32>
    %206 = vector.shape_cast %168 : vector<16x128xf32> to vector<1x16x128xf32>
    %207 = vector.broadcast %206 : vector<1x16x128xf32> to vector<8x16x128xf32>
    %208 = arith.mulf %205, %207 : vector<8x16x128xf32>
    %209 = arith.addf %203, %208 : vector<8x16x128xf32>
    %210 = vector.extract_strided_slice %204 {offsets = [2, 0, 0], sizes = [8, 16, 128], strides = [1, 1, 1]} : vector<12x16x128xf32> to vector<8x16x128xf32>
    %211 = vector.shape_cast %174 : vector<16x128xf32> to vector<1x16x128xf32>
    %212 = vector.broadcast %211 : vector<1x16x128xf32> to vector<8x16x128xf32>
    %213 = arith.mulf %210, %212 : vector<8x16x128xf32>
    %214 = arith.addf %209, %213 : vector<8x16x128xf32>
    %215 = vector.extract_strided_slice %204 {offsets = [4, 0, 0], sizes = [8, 16, 128], strides = [1, 1, 1]} : vector<12x16x128xf32> to vector<8x16x128xf32>
    %216 = vector.shape_cast %180 : vector<16x128xf32> to vector<1x16x128xf32>
    %217 = vector.broadcast %216 : vector<1x16x128xf32> to vector<8x16x128xf32>
    %218 = arith.mulf %215, %217 : vector<8x16x128xf32>
    %219 = arith.addf %214, %218 : vector<8x16x128xf32>
    %c0_109 = arith.constant 0 : index
    %c10_110 = arith.constant 10 : index
    %c0_111 = arith.constant 0 : index
    %220 = vector.load %arg5[%c0_109, %c10_110, %c0_111] : memref<20x32x128xf32, #tpu.memory_space<vmem>>, vector<12x16x128xf32>
    %221 = vector.extract_strided_slice %220 {offsets = [0, 0, 0], sizes = [8, 16, 128], strides = [1, 1, 1]} : vector<12x16x128xf32> to vector<8x16x128xf32>
    %222 = vector.shape_cast %170 : vector<16x128xf32> to vector<1x16x128xf32>
    %223 = vector.broadcast %222 : vector<1x16x128xf32> to vector<8x16x128xf32>
    %224 = arith.mulf %221, %223 : vector<8x16x128xf32>
    %225 = arith.addf %219, %224 : vector<8x16x128xf32>
    %226 = vector.extract_strided_slice %220 {offsets = [2, 0, 0], sizes = [8, 16, 128], strides = [1, 1, 1]} : vector<12x16x128xf32> to vector<8x16x128xf32>
    %227 = vector.shape_cast %176 : vector<16x128xf32> to vector<1x16x128xf32>
    %228 = vector.broadcast %227 : vector<1x16x128xf32> to vector<8x16x128xf32>
    %229 = arith.mulf %226, %228 : vector<8x16x128xf32>
    %230 = arith.addf %225, %229 : vector<8x16x128xf32>
    %231 = vector.extract_strided_slice %220 {offsets = [4, 0, 0], sizes = [8, 16, 128], strides = [1, 1, 1]} : vector<12x16x128xf32> to vector<8x16x128xf32>
    %232 = vector.shape_cast %182 : vector<16x128xf32> to vector<1x16x128xf32>
    %233 = vector.broadcast %232 : vector<1x16x128xf32> to vector<8x16x128xf32>
    %234 = arith.mulf %231, %233 : vector<8x16x128xf32>
    %235 = arith.addf %230, %234 : vector<8x16x128xf32>
    %236 = vector.shape_cast %184 : vector<16x128xf32> to vector<1x16x128xf32>
    %237 = vector.broadcast %236 : vector<1x16x128xf32> to vector<8x16x128xf32>
    %238 = arith.mulf %235, %237 : vector<8x16x128xf32>
    %239 = vector.shape_cast %186 : vector<16x128xf32> to vector<1x16x128xf32>
    %240 = vector.broadcast %239 : vector<1x16x128xf32> to vector<8x16x128xf32>
    %241 = arith.addf %238, %240 : vector<8x16x128xf32>
    %cst_112 = arith.constant 0.000000e+00 : f32
    %242 = vector.broadcast %cst_112 : f32 to vector<8x16x128xf32>
    %243 = arith.maximumf %241, %242 : vector<8x16x128xf32>
    %c1_113 = arith.constant 1 : index
    %c0_114 = arith.constant 0 : index
    %c0_115 = arith.constant 0 : index
    %c0_116 = arith.constant 0 : index
    %244 = vector.load %arg6[%c1_113, %c0_114, %c0_115, %c0_116] : memref<2x16x16x128xf32, #tpu.memory_space<vmem>>, vector<1x8x16x128xf32>
    %245 = vector.shape_cast %244 : vector<1x8x16x128xf32> to vector<8x16x128xf32>
    %246 = vector.shape_cast %243 : vector<8x16x128xf32> to vector<1x8x16x128xf32>
    tpu.vector_store %arg6[%c1_113, %c0_114, %c0_115, %c0_116], %246 {strides = array<i32>} : memref<2x16x16x128xf32, #tpu.memory_space<vmem>>, vector<1x8x16x128xf32>,
    %cst_117 = arith.constant dense<0.000000e+00> : vector<16x128xf32>
    %247 = vector.multi_reduction <add>, %243, %cst_117 [0] : vector<8x16x128xf32> to vector<16x128xf32>
    %248 = arith.addf %164, %247 : vector<16x128xf32>
    %cst_118 = arith.constant 0.000000e+00 : f32
    %249 = vector.broadcast %cst_118 : f32 to vector<8x16x128xf32>
    %c8_119 = arith.constant 8 : index
    %c6_120 = arith.constant 6 : index
    %c0_121 = arith.constant 0 : index
    %250 = vector.load %arg5[%c8_119, %c6_120, %c0_121] : memref<20x32x128xf32, #tpu.memory_space<vmem>>, vector<12x16x128xf32>
    %251 = vector.extract_strided_slice %250 {offsets = [0, 0, 0], sizes = [8, 16, 128], strides = [1, 1, 1]} : vector<12x16x128xf32> to vector<8x16x128xf32>
    %252 = vector.shape_cast %166 : vector<16x128xf32> to vector<1x16x128xf32>
    %253 = vector.broadcast %252 : vector<1x16x128xf32> to vector<8x16x128xf32>
    %254 = arith.mulf %251, %253 : vector<8x16x128xf32>
    %255 = arith.addf %249, %254 : vector<8x16x128xf32>
    %256 = vector.extract_strided_slice %250 {offsets = [2, 0, 0], sizes = [8, 16, 128], strides = [1, 1, 1]} : vector<12x16x128xf32> to vector<8x16x128xf32>
    %257 = vector.shape_cast %172 : vector<16x128xf32> to vector<1x16x128xf32>
    %258 = vector.broadcast %257 : vector<1x16x128xf32> to vector<8x16x128xf32>
    %259 = arith.mulf %256, %258 : vector<8x16x128xf32>
    %260 = arith.addf %255, %259 : vector<8x16x128xf32>
    %261 = vector.extract_strided_slice %250 {offsets = [4, 0, 0], sizes = [8, 16, 128], strides = [1, 1, 1]} : vector<12x16x128xf32> to vector<8x16x128xf32>
    %262 = vector.shape_cast %178 : vector<16x128xf32> to vector<1x16x128xf32>
    %263 = vector.broadcast %262 : vector<1x16x128xf32> to vector<8x16x128xf32>
    %264 = arith.mulf %261, %263 : vector<8x16x128xf32>
    %265 = arith.addf %260, %264 : vector<8x16x128xf32>
    %c8_122 = arith.constant 8 : index
    %c8_123 = arith.constant 8 : index
    %c0_124 = arith.constant 0 : index
    %266 = vector.load %arg5[%c8_122, %c8_123, %c0_124] : memref<20x32x128xf32, #tpu.memory_space<vmem>>, vector<12x16x128xf32>
    %267 = vector.extract_strided_slice %266 {offsets = [0, 0, 0], sizes = [8, 16, 128], strides = [1, 1, 1]} : vector<12x16x128xf32> to vector<8x16x128xf32>
    %268 = vector.shape_cast %168 : vector<16x128xf32> to vector<1x16x128xf32>
    %269 = vector.broadcast %268 : vector<1x16x128xf32> to vector<8x16x128xf32>
    %270 = arith.mulf %267, %269 : vector<8x16x128xf32>
    %271 = arith.addf %265, %270 : vector<8x16x128xf32>
    %272 = vector.extract_strided_slice %266 {offsets = [2, 0, 0], sizes = [8, 16, 128], strides = [1, 1, 1]} : vector<12x16x128xf32> to vector<8x16x128xf32>
    %273 = vector.shape_cast %174 : vector<16x128xf32> to vector<1x16x128xf32>
    %274 = vector.broadcast %273 : vector<1x16x128xf32> to vector<8x16x128xf32>
    %275 = arith.mulf %272, %274 : vector<8x16x128xf32>
    %276 = arith.addf %271, %275 : vector<8x16x128xf32>
    %277 = vector.extract_strided_slice %266 {offsets = [4, 0, 0], sizes = [8, 16, 128], strides = [1, 1, 1]} : vector<12x16x128xf32> to vector<8x16x128xf32>
    %278 = vector.shape_cast %180 : vector<16x128xf32> to vector<1x16x128xf32>
    %279 = vector.broadcast %278 : vector<1x16x128xf32> to vector<8x16x128xf32>
    %280 = arith.mulf %277, %279 : vector<8x16x128xf32>
    %281 = arith.addf %276, %280 : vector<8x16x128xf32>
    %c8_125 = arith.constant 8 : index
    %c10_126 = arith.constant 10 : index
    %c0_127 = arith.constant 0 : index
    %282 = vector.load %arg5[%c8_125, %c10_126, %c0_127] : memref<20x32x128xf32, #tpu.memory_space<vmem>>, vector<12x16x128xf32>
    %283 = vector.extract_strided_slice %282 {offsets = [0, 0, 0], sizes = [8, 16, 128], strides = [1, 1, 1]} : vector<12x16x128xf32> to vector<8x16x128xf32>
    %284 = vector.shape_cast %170 : vector<16x128xf32> to vector<1x16x128xf32>
    %285 = vector.broadcast %284 : vector<1x16x128xf32> to vector<8x16x128xf32>
    %286 = arith.mulf %283, %285 : vector<8x16x128xf32>
    %287 = arith.addf %281, %286 : vector<8x16x128xf32>
    %288 = vector.extract_strided_slice %282 {offsets = [2, 0, 0], sizes = [8, 16, 128], strides = [1, 1, 1]} : vector<12x16x128xf32> to vector<8x16x128xf32>
    %289 = vector.shape_cast %176 : vector<16x128xf32> to vector<1x16x128xf32>
    %290 = vector.broadcast %289 : vector<1x16x128xf32> to vector<8x16x128xf32>
    %291 = arith.mulf %288, %290 : vector<8x16x128xf32>
    %292 = arith.addf %287, %291 : vector<8x16x128xf32>
    %293 = vector.extract_strided_slice %282 {offsets = [4, 0, 0], sizes = [8, 16, 128], strides = [1, 1, 1]} : vector<12x16x128xf32> to vector<8x16x128xf32>
    %294 = vector.shape_cast %182 : vector<16x128xf32> to vector<1x16x128xf32>
    %295 = vector.broadcast %294 : vector<1x16x128xf32> to vector<8x16x128xf32>
    %296 = arith.mulf %293, %295 : vector<8x16x128xf32>
    %297 = arith.addf %292, %296 : vector<8x16x128xf32>
    %298 = vector.shape_cast %184 : vector<16x128xf32> to vector<1x16x128xf32>
    %299 = vector.broadcast %298 : vector<1x16x128xf32> to vector<8x16x128xf32>
    %300 = arith.mulf %297, %299 : vector<8x16x128xf32>
    %301 = vector.shape_cast %186 : vector<16x128xf32> to vector<1x16x128xf32>
    %302 = vector.broadcast %301 : vector<1x16x128xf32> to vector<8x16x128xf32>
    %303 = arith.addf %300, %302 : vector<8x16x128xf32>
    %cst_128 = arith.constant 0.000000e+00 : f32
    %304 = vector.broadcast %cst_128 : f32 to vector<8x16x128xf32>
    %305 = arith.maximumf %303, %304 : vector<8x16x128xf32>
    %c1_129 = arith.constant 1 : index
    %c8_130 = arith.constant 8 : index
    %c0_131 = arith.constant 0 : index
    %c0_132 = arith.constant 0 : index
    %306 = vector.load %arg6[%c1_129, %c8_130, %c0_131, %c0_132] : memref<2x16x16x128xf32, #tpu.memory_space<vmem>>, vector<1x8x16x128xf32>
    %307 = vector.shape_cast %306 : vector<1x8x16x128xf32> to vector<8x16x128xf32>
    %308 = vector.shape_cast %305 : vector<8x16x128xf32> to vector<1x8x16x128xf32>
    tpu.vector_store %arg6[%c1_129, %c8_130, %c0_131, %c0_132], %308 {strides = array<i32>} : memref<2x16x16x128xf32, #tpu.memory_space<vmem>>, vector<1x8x16x128xf32>,
    %cst_133 = arith.constant dense<0.000000e+00> : vector<16x128xf32>
    %309 = vector.multi_reduction <add>, %305, %cst_133 [0] : vector<8x16x128xf32> to vector<16x128xf32>
    %310 = arith.addf %248, %309 : vector<16x128xf32>
    %cst_134 = arith.constant dense<0.000000e+00> : vector<128xf32>
    %311 = vector.multi_reduction <add>, %310, %cst_134 [0] : vector<16x128xf32> to vector<128xf32>
    %312 = vector.shape_cast %311 : vector<128xf32> to vector<1x128xf32>
    %cst_135 = arith.constant 3.906250e-03 : f32
    %313 = vector.broadcast %cst_135 : f32 to vector<1x128xf32>
    %314 = arith.mulf %312, %313 : vector<1x128xf32>
    %c0_136 = arith.constant 0 : index
    %c0_137 = arith.constant 0 : index
    %315 = vector.load %arg3[%c0_136, %c0_137] : memref<128x384xf32, #tpu.memory_space<vmem>>, vector<128x128xf32>
    %cst_138 = arith.constant dense<0.000000e+00> : vector<1x128xf32>
    %316 = tpu.matmul %314, %315, %cst_138 {dimension_numbers = #tpu.dot_dimension_numbers<[1], [0], [0], [1], [0, 0, 1, 1], [], []>} : vector<1x128xf32>, vector<128x128xf32>, vector<1x128xf32> -> vector<1x128xf32>
    %c22 = arith.constant 22 : index
    %c0_139 = arith.constant 0 : index
    %c0_140 = arith.constant 0 : index
    %317 = vector.load %arg2[%c22, %c0_139, %c0_140] : memref<24x16x128xf32, #tpu.memory_space<vmem>>, vector<1x1x128xf32>
    %318 = vector.shape_cast %317 : vector<1x1x128xf32> to vector<1x128xf32>
    %c23 = arith.constant 23 : index
    %c0_141 = arith.constant 0 : index
    %c0_142 = arith.constant 0 : index
    %319 = vector.load %arg2[%c23, %c0_141, %c0_142] : memref<24x16x128xf32, #tpu.memory_space<vmem>>, vector<1x1x128xf32>
    %320 = vector.shape_cast %319 : vector<1x1x128xf32> to vector<1x128xf32>
    %321 = arith.mulf %316, %318 : vector<1x128xf32>
    %322 = arith.addf %321, %320 : vector<1x128xf32>
    %cst_143 = arith.constant 0.000000e+00 : f32
    %323 = vector.broadcast %cst_143 : f32 to vector<1x128xf32>
    %324 = arith.maximumf %322, %323 : vector<1x128xf32>
    %c0_144 = arith.constant 0 : index
    %c128 = arith.constant 128 : index
    %325 = vector.load %arg3[%c0_144, %c128] : memref<128x384xf32, #tpu.memory_space<vmem>>, vector<128x256xf32>
    %cst_145 = arith.constant dense<0.000000e+00> : vector<1x256xf32>
    %326 = tpu.matmul %324, %325, %cst_145 {dimension_numbers = #tpu.dot_dimension_numbers<[1], [0], [0], [1], [0, 0, 1, 1], [], []>} : vector<1x128xf32>, vector<128x256xf32>, vector<1x256xf32> -> vector<1x256xf32>
    %327 = vector.extract_strided_slice %326 {offsets = [0, 0], sizes = [1, 128], strides = [1, 1]} : vector<1x256xf32> to vector<1x128xf32>
    %328 = vector.extract_strided_slice %326 {offsets = [0, 128], sizes = [1, 128], strides = [1, 1]} : vector<1x256xf32> to vector<1x128xf32>
    %329 = arith.maximumf %327, %328 : vector<1x128xf32>
    %330 = arith.subf %327, %329 : vector<1x128xf32>
    %331 = math.exp %330 : vector<1x128xf32>
    %332 = arith.subf %328, %329 : vector<1x128xf32>
    %333 = math.exp %332 : vector<1x128xf32>
    %334 = arith.addf %331, %333 : vector<1x128xf32>
    %335 = tpu.reciprocal %334 {approx = true} : vector<1x128xf32> -> vector<1x128xf32>
    %336 = arith.mulf %334, %335 : vector<1x128xf32>
    %cst_146 = arith.constant 2.000000e+00 : f32
    %337 = vector.broadcast %cst_146 : f32 to vector<1x128xf32>
    %338 = arith.subf %337, %336 : vector<1x128xf32>
    %339 = arith.mulf %335, %338 : vector<1x128xf32>
    %340 = arith.mulf %331, %339 : vector<1x128xf32>
    %341 = vector.shape_cast %340 : vector<1x128xf32> to vector<1x128xf32>
    %342 = vector.broadcast %341 : vector<1x128xf32> to vector<16x128xf32>
    %343 = arith.mulf %333, %339 : vector<1x128xf32>
    %344 = vector.shape_cast %343 : vector<1x128xf32> to vector<1x128xf32>
    %345 = vector.broadcast %344 : vector<1x128xf32> to vector<16x128xf32>
    %c0_147 = arith.constant 0 : index
    %c0_148 = arith.constant 0 : index
    %c0_149 = arith.constant 0 : index
    %c0_150 = arith.constant 0 : index
    %346 = vector.load %arg6[%c0_147, %c0_148, %c0_149, %c0_150] : memref<2x16x16x128xf32, #tpu.memory_space<vmem>>, vector<1x8x16x128xf32>
    %347 = vector.shape_cast %346 : vector<1x8x16x128xf32> to vector<8x16x128xf32>
    %348 = vector.shape_cast %342 : vector<16x128xf32> to vector<1x16x128xf32>
    %349 = vector.broadcast %348 : vector<1x16x128xf32> to vector<8x16x128xf32>
    %350 = arith.mulf %347, %349 : vector<8x16x128xf32>
    %c1_151 = arith.constant 1 : index
    %c0_152 = arith.constant 0 : index
    %c0_153 = arith.constant 0 : index
    %c0_154 = arith.constant 0 : index
    %351 = vector.load %arg6[%c1_151, %c0_152, %c0_153, %c0_154] : memref<2x16x16x128xf32, #tpu.memory_space<vmem>>, vector<1x8x16x128xf32>
    %352 = vector.shape_cast %351 : vector<1x8x16x128xf32> to vector<8x16x128xf32>
    %353 = vector.shape_cast %345 : vector<16x128xf32> to vector<1x16x128xf32>
    %354 = vector.broadcast %353 : vector<1x16x128xf32> to vector<8x16x128xf32>
    %355 = arith.mulf %352, %354 : vector<8x16x128xf32>
    %356 = arith.addf %350, %355 : vector<8x16x128xf32>
    %c0_155 = arith.constant 0 : index
    %c0_156 = arith.constant 0 : index
    %c0_157 = arith.constant 0 : index
    %c0_158 = arith.constant 0 : index
    %357 = vector.load %arg4[%c0_155, %c0_156, %c0_157, %c0_158] : memref<1x16x16x128xf32, #tpu.memory_space<vmem>>, vector<1x8x16x128xf32>
    %358 = vector.shape_cast %357 : vector<1x8x16x128xf32> to vector<8x16x128xf32>
    %359 = vector.shape_cast %356 : vector<8x16x128xf32> to vector<1x8x16x128xf32>
    tpu.vector_store %arg4[%c0_155, %c0_156, %c0_157, %c0_158], %359 {strides = array<i32>} : memref<1x16x16x128xf32, #tpu.memory_space<vmem>>, vector<1x8x16x128xf32>,
    %c0_159 = arith.constant 0 : index
    %c8_160 = arith.constant 8 : index
    %c0_161 = arith.constant 0 : index
    %c0_162 = arith.constant 0 : index
    %360 = vector.load %arg6[%c0_159, %c8_160, %c0_161, %c0_162] : memref<2x16x16x128xf32, #tpu.memory_space<vmem>>, vector<1x8x16x128xf32>
    %361 = vector.shape_cast %360 : vector<1x8x16x128xf32> to vector<8x16x128xf32>
    %362 = vector.shape_cast %342 : vector<16x128xf32> to vector<1x16x128xf32>
    %363 = vector.broadcast %362 : vector<1x16x128xf32> to vector<8x16x128xf32>
    %364 = arith.mulf %361, %363 : vector<8x16x128xf32>
    %c1_163 = arith.constant 1 : index
    %c8_164 = arith.constant 8 : index
    %c0_165 = arith.constant 0 : index
    %c0_166 = arith.constant 0 : index
    %365 = vector.load %arg6[%c1_163, %c8_164, %c0_165, %c0_166] : memref<2x16x16x128xf32, #tpu.memory_space<vmem>>, vector<1x8x16x128xf32>
    %366 = vector.shape_cast %365 : vector<1x8x16x128xf32> to vector<8x16x128xf32>
    %367 = vector.shape_cast %345 : vector<16x128xf32> to vector<1x16x128xf32>
    %368 = vector.broadcast %367 : vector<1x16x128xf32> to vector<8x16x128xf32>
    %369 = arith.mulf %366, %368 : vector<8x16x128xf32>
    %370 = arith.addf %364, %369 : vector<8x16x128xf32>
    %c0_167 = arith.constant 0 : index
    %c8_168 = arith.constant 8 : index
    %c0_169 = arith.constant 0 : index
    %c0_170 = arith.constant 0 : index
    %371 = vector.load %arg4[%c0_167, %c8_168, %c0_169, %c0_170] : memref<1x16x16x128xf32, #tpu.memory_space<vmem>>, vector<1x8x16x128xf32>
    %372 = vector.shape_cast %371 : vector<1x8x16x128xf32> to vector<8x16x128xf32>
    %373 = vector.shape_cast %370 : vector<8x16x128xf32> to vector<1x8x16x128xf32>
    tpu.vector_store %arg4[%c0_167, %c8_168, %c0_169, %c0_170], %373 {strides = array<i32>} : memref<1x16x16x128xf32, #tpu.memory_space<vmem>>, vector<1x8x16x128xf32>,
    return
  }
  func.func @transform_1(%arg0: i32) -> (i32, i32, i32) {
    %c0_i32 = arith.constant 0 : i32
    %c0_i32_0 = arith.constant 0 : i32
    %c0_i32_1 = arith.constant 0 : i32
    %c0_i32_2 = arith.constant 0 : i32
    return %c0_i32, %c0_i32_0, %c0_i32_1 : i32, i32, i32
  }
  func.func @transform_2(%arg0: i32) -> (i32, i32) {
    %c0_i32 = arith.constant 0 : i32
    %c0_i32_0 = arith.constant 0 : i32
    %c0_i32_1 = arith.constant 0 : i32
    return %c0_i32, %c0_i32_0 : i32, i32
  }
  func.func @transform_3(%arg0: i32) -> (i32, i32, i32, i32) {
    %c0_i32 = arith.constant 0 : i32
    %c0_i32_0 = arith.constant 0 : i32
    %c0_i32_1 = arith.constant 0 : i32
    %c0_i32_2 = arith.constant 0 : i32
    return %arg0, %c0_i32, %c0_i32_0, %c0_i32_1 : i32, i32, i32, i32
  }
}

</mosaic_0001>

<bundles_post_ra>
// kernel: skconv_forward.1
= control target key start
LH: loop header
LB: loop body
LE: loop exit
PB: predicated region body
PF: predicated region fallthrough
CT: control target
= control target key end

     0   :  { %s2832_s12 = smov 0   ;;  %s5204_s0 = inlined_call_operand.vmem [shape: f32[2,16,16,128], index: 0, kind: input, shape index: {}]   ;;  %s5205_s1 = inlined_call_operand.vmem [shape: f32[24,16,128], index: 1, kind: input, shape index: {}]   ;;  %s5206_s2 = inlined_call_operand.vmem [shape: f32[128,384], index: 2, kind: input, shape index: {}]   ;;  %s5207_s3 = inlined_call_operand.vmem [shape: f32[2,16,16,128], index: 3, kind: output, shape index: {}]  }
   0x1 LB: > { %s2601_s13 = sadd.s32 4294967295, %s2807_s12   ;;  %p2604_p0 = scmp.ge.s32.totalorder %s2807_s12, 1  ;;  %s2807_s12 = sphi %s2832_s12, %s13_s12  }
   0x2   : > { %p103_p1 = scmp.lt.s32.totalorder %s2807_s12, 3 }
   0x4   : > { %p104_p2 = pnand %p2604_p0, %p103_p1 }
   0x6   : > { %107 = sbr.rel (%p104_p2) target bundleno = 942 (0x3ae), region = 28 }
   0xd   : > { %p120_p3 = scmp.lt.s32.totalorder %s2601_s13, 1  ;;  %s2607_s14 = sshll.u32 %s2601_s13, 8 }
   0xe   : > { %s2843_s17 = scalar_lea.vmem %s5204_s0, %s2607_s14 }
   0xf   : > { %s5816_s13 = smov (!%p120_p3, %s2601_s13), 1  ;;  %v190_v0 = vld [vmem:[%s2843_s17] sm:$0xff]  ;;  %v192_v1 = vld [vmem:[%s2843_s17 + $0x8] sm:$0xff]  ;;  %v194_v2 = vld [vmem:[%s2843_s17 + $0x10] sm:$0xff] }
  0x10   : > { %191 = vst [vmem:[#allocation2 + $0x48] sm:$0xff] %v190_v0  ;;  %193 = vst [vmem:[#allocation2 + $0x50] sm:$0xff] %v192_v1  ;;  %v196_v3 = vld [vmem:[%s2843_s17 + $0x18] sm:$0xff]  ;;  %v198_v4 = vld [vmem:[%s2843_s17 + $0x20] sm:$0xff]  ;;  %s2671_s18 = sshll.u32 %s5816_s13, 8 }
  0x11   : > { %195 = vst [vmem:[#allocation2 + $0x68] sm:$0xff] %v194_v2  ;;  %v200_v5 = vld [vmem:[%s2843_s17 + $0x28] sm:$0xff]  ;;  %197 = vst [vmem:[#allocation2 + $0x70] sm:$0xff] %v196_v3  ;;  %v202_v6 = vld [vmem:[%s2843_s17 + $0x30] sm:$0xff]  ;;  %s2857_s21 = scalar_lea.vmem %s5207_s3, %s2671_s18 }
  0x12   : > { %199 = vst [vmem:[#allocation2 + $0x88] sm:$0xff] %v198_v4  ;;  %201 = vst [vmem:[#allocation2 + $0x90] sm:$0xff] %v200_v5  ;;  %v204_v7 = vld [vmem:[%s2843_s17 + $0x38] sm:$0xff]  ;;  %v206_v8 = vld [vmem:[%s2843_s17 + $0x40] sm:$0xff] }
  0x13   : > { %203 = vst [vmem:[#allocation2 + $0xa8] sm:$0xff] %v202_v6  ;;  %205 = vst [vmem:[#allocation2 + $0xb0] sm:$0xff] %v204_v7  ;;  %v208_v9 = vld [vmem:[%s2843_s17 + $0x48] sm:$0xff]  ;;  %v210_v10 = vld [vmem:[%s2843_s17 + $0x50] sm:$0xff] }
  0x14   : > { %207 = vst [vmem:[#allocation2 + $0xc8] sm:$0xff] %v206_v8  ;;  %v212_v11 = vld [vmem:[%s2843_s17 + $0x58] sm:$0xff]  ;;  %209 = vst [vmem:[#allocation2 + $0xd0] sm:$0xff] %v208_v9  ;;  %v214_v12 = vld [vmem:[%s2843_s17 + $0x60] sm:$0xff] }
  0x15   : > { %211 = vst [vmem:[#allocation2 + $0xe8] sm:$0xff] %v210_v10  ;;  %213 = vst [vmem:[#allocation2 + $0xf0] sm:$0xff] %v212_v11  ;;  %v216_v13 = vld [vmem:[%s2843_s17 + $0x68] sm:$0xff]  ;;  %v218_v14 = vld [vmem:[%s2843_s17 + $0x70] sm:$0xff] }
  0x16   : > { %215 = vst [vmem:[#allocation2 + $0x108] sm:$0xff] %v214_v12  ;;  %217 = vst [vmem:[#allocation2 + $0x110] sm:$0xff] %v216_v13  ;;  %v220_v15 = vld [vmem:[%s2843_s17 + $0x78] sm:$0xff]  ;;  %v222_v16 = vld [vmem:[%s2843_s17 + $0x80] sm:$0xff] }
  0x17   : > { %219 = vst [vmem:[#allocation2 + $0x128] sm:$0xff] %v218_v14  ;;  %v224_v17 = vld [vmem:[%s2843_s17 + $0x88] sm:$0xff]  ;;  %221 = vst [vmem:[#allocation2 + $0x130] sm:$0xff] %v220_v15  ;;  %v226_v18 = vld [vmem:[%s2843_s17 + $0x90] sm:$0xff] }
  0x18   : > { %223 = vst [vmem:[#allocation2 + $0x148] sm:$0xff] %v222_v16  ;;  %225 = vst [vmem:[#allocation2 + $0x150] sm:$0xff] %v224_v17  ;;  %v228_v19 = vld [vmem:[%s2843_s17 + $0x98] sm:$0xff]  ;;  %v230_v20 = vld [vmem:[%s2843_s17 + $0xa0] sm:$0xff] }
  0x19   : > { %227 = vst [vmem:[#allocation2 + $0x168] sm:$0xff] %v226_v18  ;;  %229 = vst [vmem:[#allocation2 + $0x170] sm:$0xff] %v228_v19  ;;  %v232_v21 = vld [vmem:[%s2843_s17 + $0xa8] sm:$0xff]  ;;  %v234_v22 = vld [vmem:[%s2843_s17 + $0xb0] sm:$0xff] }
  0x1a   : > { %231 = vst [vmem:[#allocation2 + $0x188] sm:$0xff] %v230_v20  ;;  %v236_v23 = vld [vmem:[%s2843_s17 + $0xb8] sm:$0xff]  ;;  %233 = vst [vmem:[#allocation2 + $0x190] sm:$0xff] %v232_v21  ;;  %v238_v24 = vld [vmem:[%s2843_s17 + $0xc0] sm:$0xff] }
  0x1b   : > { %235 = vst [vmem:[#allocation2 + $0x1a8] sm:$0xff] %v234_v22  ;;  %237 = vst [vmem:[#allocation2 + $0x1b0] sm:$0xff] %v236_v23  ;;  %v240_v25 = vld [vmem:[%s2843_s17 + $0xc8] sm:$0xff]  ;;  %v242_v26 = vld [vmem:[%s2843_s17 + $0xd0] sm:$0xff] }
  0x1c   : > { %239 = vst [vmem:[#allocation2 + $0x1c8] sm:$0xff] %v238_v24  ;;  %241 = vst [vmem:[#allocation2 + $0x1d0] sm:$0xff] %v240_v25  ;;  %v244_v27 = vld [vmem:[%s2843_s17 + $0xd8] sm:$0xff]  ;;  %v246_v28 = vld [vmem:[%s2843_s17 + $0xe0] sm:$0xff] }
  0x1d   : > { %243 = vst [vmem:[#allocation2 + $0x1e8] sm:$0xff] %v242_v26  ;;  %v248_v29 = vld [vmem:[%s2843_s17 + $0xe8] sm:$0xff]  ;;  %245 = vst [vmem:[#allocation2 + $0x1f0] sm:$0xff] %v244_v27  ;;  %v250_v30 = vld [vmem:[%s2843_s17 + $0xf0] sm:$0xff] }
  0x1e   : > { %247 = vst [vmem:[#allocation2 + $0x208] sm:$0xff] %v246_v28  ;;  %249 = vst [vmem:[#allocation2 + $0x210] sm:$0xff] %v248_v29  ;;  %v252_v31 = vld [vmem:[%s2843_s17 + $0xf8] sm:$0xff] }
  0x1f   : > { %251 = vst [vmem:[#allocation2 + $0x228] sm:$0xff] %v250_v30  ;;  %253 = vst [vmem:[#allocation2 + $0x230] sm:$0xff] %v252_v31 }
  0x20   : > { %261 = vsyncadd [#allocation4], 4096  ;;  %v2809_v32 = vmov 0.0  }
  0x21   : > { %262 = vst [vmem:[#allocation2] sm:$0xff] %v2809_v32  ;;  %263 = vst [vmem:[#allocation2 + $0x8] sm:$0xff] %v2809_v32 }
  0x22   : > { %264 = vst [vmem:[#allocation2 + $0x10] sm:$0xff] %v2809_v32  ;;  %265 = vst [vmem:[#allocation2 + $0x18] sm:$0xff] %v2809_v32 }
  0x23   : > { %266 = vst [vmem:[#allocation2 + $0x20] sm:$0xff] %v2809_v32  ;;  %267 = vst [vmem:[#allocation2 + $0x28] sm:$0xff] %v2809_v32 }
  0x24   : > { %268 = vst [vmem:[#allocation2 + $0x30] sm:$0xff] %v2809_v32  ;;  %269 = vst [vmem:[#allocation2 + $0x38] sm:$0xff] %v2809_v32 }
  0x25   : > { %271 = vst [vmem:[#allocation2 + $0x240] sm:$0xff] %v2809_v32  ;;  %272 = vst [vmem:[#allocation2 + $0x248] sm:$0xff] %v2809_v32 }
  0x26   : > { %273 = vst [vmem:[#allocation2 + $0x250] sm:$0xff] %v2809_v32  ;;  %274 = vst [vmem:[#allocation2 + $0x258] sm:$0xff] %v2809_v32 }
  0x27   : > { %275 = vst [vmem:[#allocation2 + $0x260] sm:$0xff] %v2809_v32  ;;  %276 = vst [vmem:[#allocation2 + $0x268] sm:$0xff] %v2809_v32 }
  0x28   : > { %277 = vst [vmem:[#allocation2 + $0x270] sm:$0xff] %v2809_v32  ;;  %278 = vst [vmem:[#allocation2 + $0x278] sm:$0xff] %v2809_v32 }
  0x29   : > { %280 = vst [vmem:[#allocation2 + $0x40] sm:$0xff] %v2809_v32  ;;  %281 = vst [vmem:[#allocation2 + $0x60] sm:$0xff] %v2809_v32 }
  0x2a   : > { %282 = vst [vmem:[#allocation2 + $0x80] sm:$0xff] %v2809_v32  ;;  %283 = vst [vmem:[#allocation2 + $0xa0] sm:$0xff] %v2809_v32 }
  0x2b   : > { %284 = vst [vmem:[#allocation2 + $0xc0] sm:$0xff] %v2809_v32  ;;  %285 = vst [vmem:[#allocation2 + $0xe0] sm:$0xff] %v2809_v32 }
  0x2c   : > { %286 = vst [vmem:[#allocation2 + $0x100] sm:$0xff] %v2809_v32  ;;  %287 = vst [vmem:[#allocation2 + $0x120] sm:$0xff] %v2809_v32 }
  0x2d   : > { %288 = vst [vmem:[#allocation2 + $0x140] sm:$0xff] %v2809_v32  ;;  %289 = vst [vmem:[#allocation2 + $0x160] sm:$0xff] %v2809_v32 }
  0x2e   : > { %290 = vst [vmem:[#allocation2 + $0x180] sm:$0xff] %v2809_v32  ;;  %291 = vst [vmem:[#allocation2 + $0x1a0] sm:$0xff] %v2809_v32 }
  0x2f   : > { %292 = vst [vmem:[#allocation2 + $0x1c0] sm:$0xff] %v2809_v32  ;;  %293 = vst [vmem:[#allocation2 + $0x1e0] sm:$0xff] %v2809_v32 }
  0x30   : > { %294 = vst [vmem:[#allocation2 + $0x200] sm:$0xff] %v2809_v32  ;;  %295 = vst [vmem:[#allocation2 + $0x220] sm:$0xff] %v2809_v32 }
  0x31   : > { %296 = vst [vmem:[#allocation2 + $0x58] sm:$0xff] %v2809_v32  ;;  %297 = vst [vmem:[#allocation2 + $0x78] sm:$0xff] %v2809_v32 }
  0x32   : > { %298 = vst [vmem:[#allocation2 + $0x98] sm:$0xff] %v2809_v32  ;;  %299 = vst [vmem:[#allocation2 + $0xb8] sm:$0xff] %v2809_v32 }
  0x33   : > { %300 = vst [vmem:[#allocation2 + $0xd8] sm:$0xff] %v2809_v32  ;;  %301 = vst [vmem:[#allocation2 + $0xf8] sm:$0xff] %v2809_v32 }
  0x34   : > { %302 = vst [vmem:[#allocation2 + $0x118] sm:$0xff] %v2809_v32  ;;  %303 = vst [vmem:[#allocation2 + $0x138] sm:$0xff] %v2809_v32 }
  0x35   : > { %304 = vst [vmem:[#allocation2 + $0x158] sm:$0xff] %v2809_v32  ;;  %305 = vst [vmem:[#allocation2 + $0x178] sm:$0xff] %v2809_v32 }
  0x36   : > { %306 = vst [vmem:[#allocation2 + $0x198] sm:$0xff] %v2809_v32  ;;  %307 = vst [vmem:[#allocation2 + $0x1b8] sm:$0xff] %v2809_v32 }
  0x37   : > { %308 = vst [vmem:[#allocation2 + $0x1d8] sm:$0xff] %v2809_v32  ;;  %309 = vst [vmem:[#allocation2 + $0x1f8] sm:$0xff] %v2809_v32 }
  0x38   : > { %310 = vst [vmem:[#allocation2 + $0x218] sm:$0xff] %v2809_v32  ;;  %311 = vst [vmem:[#allocation2 + $0x238] sm:$0xff] %v2809_v32 }
  0x39   : > { %2803 = dma.done.wait [#allocation4], 4096 }
  0x3a   : > { %2804 = vsyncadd [#allocation4], 4294963200  ;;  %2320 = vmatprep.mubr.f32.mxu1 %v2809_v32  ;;  %v5208_v33 = vmov 0.0|0.0   ;;  %vm2811_vm0 = vmmov 0   ;;  %v2131_v34 = vld [vmem:[%s5206_s2] sm:$0xff]  ;;  %v2132_v35 = vld [vmem:[%s5206_s2 + $0x18] sm:$0xff] }
  0x3b   : > { %2724 = vmatprep.subr.bf16.mxu0 %v5208_v33  ;;  %2721 = vmatprep.mubr.msk.f32.mxu0 %vm2811_vm0, %v2809_v32  ;;  %v2133_v36 = vld [vmem:[%s5206_s2 + $0x30] sm:$0xff]  ;;  %v2725_v37 = vpack.c.bf16 %v2132_v35, %v2131_v34  ;;  %v2134_v38 = vld [vmem:[%s5206_s2 + $0x48] sm:$0xff]  ;;  %v2135_v40 = vld [vmem:[%s5206_s2 + $0x60] sm:$0xff] }
  0x3c   : > { %v2728_v39 = vpack.c.bf16 %v2134_v38, %v2133_v36  ;;  %v2136_v41 = vld [vmem:[%s5206_s2 + $0x78] sm:$0xff]  ;;  %v2137_v43 = vld [vmem:[%s5206_s2 + $0x90] sm:$0xff]  ;;  %v2138_v44 = vld [vmem:[%s5206_s2 + $0xa8] sm:$0xff] }
  0x3d   : > { %2726 = vmatpush3.bf16.msra.mxu0 %v2725_v37  ;;  %v2731_v42 = vpack.c.bf16 %v2136_v41, %v2135_v40  ;;  %v2139_v45 = vld [vmem:[%s5206_s2 + $0xc0] sm:$0xff]  ;;  %v2140_v46 = vld [vmem:[%s5206_s2 + $0xd8] sm:$0xff]  ;;  %v2734_v47 = vpack.c.bf16 %v2138_v44, %v2137_v43  ;;  %v2141_v48 = vld [vmem:[%s5206_s2 + $0xf0] sm:$0xff] }
  0x3e   : > { %2727 = vmatprep.subr.bf16.mxu0 %v5208_v33  ;;  %v2142_v49 = vld [vmem:[%s5206_s2 + $0x108] sm:$0xff]  ;;  %v2924_v50 = vld [vmem:[%s5206_s2 + $0x120] sm:$0xff]  ;;  %v2929_v51 = vld [vmem:[%s5206_s2 + $0x138] sm:$0xff]  ;;  %v2737_v61 = vpack.c.bf16 %v2140_v46, %v2139_v45 }
  0x3f   : > { %v2935_v52 = vld [vmem:[%s5206_s2 + $0x150] sm:$0xff]  ;;  %v2940_v53 = vld [vmem:[%s5206_s2 + $0x168] sm:$0xff]  ;;  %v2945_v54 = vld [vmem:[%s5205_s1] sm:$0xff]  ;;  %v2740_v63 = vpack.c.bf16 %v2142_v49, %v2141_v48 }
  0x40   : > { %v2950_v55 = vld [vmem:[%s5205_s1 + $0x8] sm:$0xff]  ;;  %v2955_v56 = vld [vmem:[%s5205_s1 + $0x30] sm:$0xff]  ;;  %v2960_v62 = vld [vmem:[%s5205_s1 + $0x38] sm:$0xff] }
  0x41   : > { %2729 = vmatpush3.bf16.msra.mxu0 %v2728_v39  ;;  %5451 = vst [vmem:[#allocation7_spill] sm:$0xff] %v2950_v55  ;;  %5452 = vst [vmem:[#allocation8_spill] sm:$0xff] %v2955_v56  ;;  %v349_v57 = vld [vmem:[#allocation2 + $0x27] sm:$0xff]  ;;  %v350_v58 = vld [vmem:[#allocation2 + $0x2f] sm:$0xff] }
  0x42   : > { %2730 = vmatprep.subr.bf16.mxu0 %v5208_v33  ;;  %v351_v59 = vld [vmem:[#allocation2 + $0x47] sm:$0xff]  ;;  %v352_v60 = vld [vmem:[#allocation2 + $0x4f] sm:$0xff]  ;;  %5453 = vst [vmem:[#allocation9_spill] sm:$0xff] %v2960_v62  ;;  %v369_v3 = vmul.f32 %v349_v57, %v2945_v54  ;;  %v370_v6 = vmul.f32 %v350_v58, %v2950_v55 }
  0x43   : > { %v2967_v2 = vld [vmem:[#allocation2 + $0x67] sm:$0xff]  ;;  %v2970_v4 = vld [vmem:[#allocation2 + $0x6f] sm:$0xff]  ;;  %v371_v7 = vmul.f32 %v351_v59, %v2945_v54  ;;  %v372_v8 = vmul.f32 %v352_v60, %v2950_v55  ;;  %v401_v9 = vmul.f32 %v2955_v56, %v351_v59  ;;  %v402_v16 = vmul.f32 %v2960_v62, %v352_v60 }
  0x44   : > { %v2972_v5 = vld [vmem:[#allocation2 + $0x87] sm:$0xff]  ;;  %v2978_v10 = vld [vmem:[#allocation2 + $0x8f] sm:$0xff]  ;;  %v373_v13 = vmul.f32 %v2967_v2, %v2945_v54  ;;  %v374_v14 = vmul.f32 %v2970_v4, %v2950_v55  ;;  %v403_v23 = vmul.f32 %v2955_v56, %v2967_v2  ;;  %v404_v30 = vmul.f32 %v2960_v62, %v2970_v4 }
  0x45   : > { %2732 = vmatpush3.bf16.msra.mxu0 %v2731_v42  ;;  %v2980_v11 = vld [vmem:[#allocation2 + $0xa7] sm:$0xff]  ;;  %v2982_v12 = vld [vmem:[#allocation2 + $0xaf] sm:$0xff]  ;;  %v375_v15 = vmul.f32 %v2972_v5, %v2945_v54  ;;  %v376_v20 = vmul.f32 %v2978_v10, %v2950_v55  ;;  %v405_v35 = vmul.f32 %v2955_v56, %v2972_v5  ;;  %v406_v36 = vmul.f32 %v2960_v62, %v2978_v10 }
  0x46   : > { %2733 = vmatprep.subr.bf16.mxu0 %v5208_v33  ;;  %v359_v17 = vld [vmem:[#allocation2 + $0xc7] sm:$0xff]  ;;  %v360_v18 = vld [vmem:[#allocation2 + $0xcf] sm:$0xff]  ;;  %v377_v21 = vmul.f32 %v2980_v11, %v2945_v54  ;;  %v378_v22 = vmul.f32 %v2982_v12, %v2950_v55  ;;  %v407_v37 = vmul.f32 %v2955_v56, %v2980_v11  ;;  %v408_v38 = vmul.f32 %v2960_v62, %v2982_v12 }
  0x47   : > { %v361_v19 = vld [vmem:[#allocation2 + $0xe7] sm:$0xff]  ;;  %v362_v24 = vld [vmem:[#allocation2 + $0xef] sm:$0xff]  ;;  %v379_v27 = vmul.f32 %v359_v17, %v2945_v54  ;;  %v380_v28 = vmul.f32 %v360_v18, %v2950_v55  ;;  %v409_v39 = vmul.f32 %v2955_v56, %v359_v17  ;;  %v410_v42 = vmul.f32 %v2960_v62, %v360_v18 }
  0x48   : > { %v363_v25 = vld [vmem:[#allocation2 + $0x107] sm:$0xff]  ;;  %v364_v26 = vld [vmem:[#allocation2 + $0x10f] sm:$0xff]  ;;  %v381_v29 = vmul.f32 %v361_v19, %v2945_v54  ;;  %v382_v31 = vmul.f32 %v362_v24, %v2950_v55  ;;  %v411_v43 = vmul.f32 %v2955_v56, %v361_v19  ;;  %v412_v44 = vmul.f32 %v2960_v62, %v362_v24 }
  0x49   : > { %2735 = vmatpush3.bf16.msra.mxu0 %v2734_v47  ;;  %v383_v32 = vmul.f32 %v363_v25, %v2945_v54  ;;  %v384_v34 = vmul.f32 %v364_v26, %v2950_v55  ;;  %v3017_v40 = vld [vmem:[#allocation2 + $0x127] sm:$0xff]  ;;  %v3019_v41 = vld [vmem:[#allocation2 + $0x12f] sm:$0xff]  ;;  %v413_v45 = vmul.f32 %v2955_v56, %v363_v25  ;;  %v414_v46 = vmul.f32 %v2960_v62, %v364_v26 }
  0x4a   : > { %2736 = vmatprep.subr.bf16.mxu0 %v5208_v33  ;;  %5454 = vst [vmem:[#allocation10_spill] sm:$0xff] %v3019_v41  ;;  %v415_v47 = vmul.f32 %v2955_v56, %v3017_v40  ;;  %v416_v48 = vmul.f32 %v2960_v62, %v3019_v41  ;;  %v417_v49 = vadd.f32 %v401_v9, %v369_v3  ;;  %v3034_v57 = vld [vmem:[%s5205_s1 + $0x60] sm:$0xff] }
  0x4b   : > { %5455 = vst [vmem:[#allocation11_spill] sm:$0xff] %v3034_v57  ;;  %v418_v58 = vadd.f32 %v402_v16, %v370_v6  ;;  %v419_v59 = vadd.f32 %v403_v23, %v371_v7  ;;  %v420_v60 = vadd.f32 %v404_v30, %v372_v8  ;;  %v422_v1 = vadd.f32 %v406_v36, %v374_v14 }
  0x4c   : > { %v424_v0 = vadd.f32 %v408_v38, %v376_v20  ;;  %v425_v56 = vadd.f32 %v409_v39, %v377_v21  ;;  %v5457_v3 = vpack.c.bf16 %v2929_v51, %v2924_v50  ;;  %v426_v9 = vadd.f32 %v410_v42, %v378_v22  ;;  %v3088_v42 = vld [vmem:[#allocation2 + $0x68] sm:$0xff] }
  0x4d   : > { %2738 = vmatpush3.bf16.msra.mxu0 %v2737_v61  ;;  %v421_v61 = vadd.f32 %v405_v35, %v373_v13  ;;  %v427_v62 = vadd.f32 %v411_v43, %v379_v27  ;;  %v428_v55 = vadd.f32 %v412_v44, %v380_v28  ;;  %v429_v6 = vadd.f32 %v413_v45, %v381_v29  ;;  %v3065_v27 = vld [vmem:[#allocation2 + $0x14f] sm:$0xff] }
  0x4e   : > { %2739 = vmatprep.subr.bf16.mxu0 %v5208_v33  ;;  %v5458_v7 = vmov 0.0|0.0   ;;  %v430_v8 = vadd.f32 %v414_v46, %v382_v31  ;;  %v431_v13 = vadd.f32 %v415_v47, %v383_v32  ;;  %v432_v16 = vadd.f32 %v416_v48, %v384_v34  ;;  %5461 = vst [vmem:[#allocation14_spill] sm:$0xff] %v3065_v27  ;;  %v466_v32 = vld [vmem:[#allocation2 + $0x30] sm:$0xff]  ;;  %v467_v34 = vld [vmem:[#allocation2 + $0x48] sm:$0xff] }
  0x4f   : > { %v433_v23 = vmul.f32 %v3034_v57, %v2967_v2  ;;  %v437_v51 = vmul.f32 %v3034_v57, %v2980_v11  ;;  %v439_v21 = vmul.f32 %v3034_v57, %v359_v17  ;;  %v441_v2 = vmul.f32 %v3034_v57, %v361_v19  ;;  %v468_v35 = vld [vmem:[#allocation2 + $0x50] sm:$0xff]  ;;  %v3092_v44 = vld [vmem:[#allocation2 + $0x88] sm:$0xff] }
  0x50   : > { %v443_v11 = vmul.f32 %v3034_v57, %v363_v25  ;;  %v445_v17 = vmul.f32 %v3034_v57, %v3017_v40  ;;  %v3090_v43 = vld [vmem:[#allocation2 + $0x70] sm:$0xff] }
  0x51   : > { %2741 = vmatpush3.bf16.msra.mxu0 %v2740_v63  ;;  %v3039_v63 = vld [vmem:[%s5205_s1 + $0x68] sm:$0xff]  ;;  %v449_v25 = vadd.f32 %v433_v23, %v417_v49  ;;  %v453_v31 = vadd.f32 %v437_v51, %v421_v61  ;;  %v457_v39 = vadd.f32 %v441_v2, %v425_v56  ;;  %v3094_v49 = vld [vmem:[#allocation2 + $0x90] sm:$0xff] }
  0x52   : > { %2742 = vmatprep.subr.bf16.mxu0 %v5208_v33  ;;  %5456 = vst [vmem:[#allocation12_spill] sm:$0xff] %v3039_v63  ;;  %v423_v33 = vadd.f32 %v407_v37, %v375_v15  ;;  %v434_v14 = vmul.f32 %v3039_v63, %v2970_v4  ;;  %v435_v15 = vmul.f32 %v3034_v57, %v2972_v5  ;;  %v3063_v5 = vld [vmem:[#allocation2 + $0x147] sm:$0xff] }
  0x53   : > { %v436_v50 = vmul.f32 %v3039_v63, %v2978_v10  ;;  %v438_v20 = vmul.f32 %v3039_v63, %v2982_v12  ;;  %v440_v22 = vmul.f32 %v3039_v63, %v360_v18  ;;  %v5459_v4 = vpack.c.bf16 %v2940_v53, %v2935_v52  ;;  %5460 = vst [vmem:[#allocation13_spill] sm:$0xff] %v3063_v5  ;;  %v3075_v18 = vld [vmem:[%s5205_s1 + $0x10] sm:$0xff]  ;;  %v3080_v52 = vld [vmem:[%s5205_s1 + $0x18] sm:$0xff]  ;;  %v3100_v56 = vld [vmem:[#allocation2 + $0xc8] sm:$0xff] }
  0x54   : > { %v442_v10 = vmul.f32 %v3039_v63, %v362_v24  ;;  %v444_v12 = vmul.f32 %v3039_v63, %v364_v26  ;;  %5462 = vst [vmem:[#allocation15_spill] sm:$0xff] %v3075_v18  ;;  %5463 = vst [vmem:[#allocation16_spill] sm:$0xff] %v3080_v52  ;;  %v446_v53 = vmul.f32 %v3039_v63, %v3019_v41  ;;  %v465_v26 = vld [vmem:[#allocation2 + $0x28] sm:$0xff] }
  0x55   : > { %2744 = vmatpush3.bf16.msra.mxu0 %v5457_v3  ;;  %v447_v19 = vmul.f32 %v3034_v57, %v3063_v5  ;;  %v448_v24 = vmul.f32 %v3039_v63, %v3065_v27  ;;  %v450_v28 = vadd.f32 %v434_v14, %v418_v58  ;;  %v451_v29 = vadd.f32 %v435_v15, %v419_v59  ;;  %v3096_v58 = vld [vmem:[#allocation2 + $0xa8] sm:$0xff]  ;;  %v3098_v59 = vld [vmem:[#allocation2 + $0xb0] sm:$0xff] }
  0x56   : > { %2745 = vmatprep.subr.bf16.mxu0 %v5458_v7  ;;  %v452_v30 = vadd.f32 %v436_v50, %v420_v60  ;;  %v454_v36 = vadd.f32 %v438_v20, %v422_v1  ;;  %v455_v37 = vadd.f32 %v439_v21, %v423_v33  ;;  %v456_v38 = vadd.f32 %v440_v22, %v424_v0  ;;  %v3102_v60 = vld [vmem:[#allocation2 + $0xd0] sm:$0xff]  ;;  %v3104_v61 = vld [vmem:[#allocation2 + $0xe8] sm:$0xff] }
  0x57   : > { %v458_v45 = vadd.f32 %v442_v10, %v426_v9  ;;  %v459_v46 = vadd.f32 %v443_v11, %v427_v62  ;;  %v460_v47 = vadd.f32 %v444_v12, %v428_v55  ;;  %v461_v48 = vadd.f32 %v445_v17, %v429_v6  ;;  %v3107_v62 = vld [vmem:[#allocation2 + $0xf0] sm:$0xff]  ;;  %v3109_v55 = vld [vmem:[#allocation2 + $0x108] sm:$0xff]  ;;  %v3143_v11 = vld [vmem:[%s5205_s1 + $0x40] sm:$0xff] }
  0x58   : > { %v462_v1 = vadd.f32 %v446_v53, %v430_v8  ;;  %v463_v33 = vadd.f32 %v447_v19, %v431_v13  ;;  %v464_v0 = vadd.f32 %v448_v24, %v432_v16  ;;  %v485_v3 = vmul.f32 %v3075_v18, %v465_v26  ;;  %v3111_v9 = vld [vmem:[#allocation2 + $0x110] sm:$0xff]  ;;  %5464 = vst [vmem:[#allocation17_spill] sm:$0xff] %v3143_v11  ;;  %v3148_v24 = vld [vmem:[%s5205_s1 + $0x48] sm:$0xff] }
  0x59   : > { %2747 = vmatpush3.bf16.msra.mxu0 %v5459_v4  ;;  %v486_v6 = vmul.f32 %v3080_v52, %v466_v32  ;;  %v487_v7 = vmul.f32 %v3075_v18, %v467_v34  ;;  %v488_v8 = vmul.f32 %v3080_v52, %v468_v35  ;;  %v489_v13 = vmul.f32 %v3075_v18, %v3088_v42 }
  0x5a   : > { %v490_v16 = vmul.f32 %v3080_v52, %v3090_v43  ;;  %v491_v23 = vmul.f32 %v3075_v18, %v3092_v44  ;;  %v492_v14 = vmul.f32 %v3080_v52, %v3094_v49  ;;  %v493_v15 = vmul.f32 %v3075_v18, %v3096_v58  ;;  %5465 = vst [vmem:[#allocation18_spill] sm:$0xff] %v3148_v24 }
  0x5b   : > { %v494_v50 = vmul.f32 %v3080_v52, %v3098_v59  ;;  %v495_v51 = vmul.f32 %v3075_v18, %v3100_v56  ;;  %v496_v20 = vmul.f32 %v3080_v52, %v3102_v60  ;;  %v497_v21 = vmul.f32 %v3075_v18, %v3104_v61 }
  0x5c   : > { %v498_v22 = vmul.f32 %v3080_v52, %v3107_v62  ;;  %v499_v2 = vmul.f32 %v3075_v18, %v3109_v55  ;;  %v500_v4 = vmul.f32 %v3080_v52, %v3111_v9  ;;  %v501_v10 = vadd.f32 %v485_v3, %v449_v25 }
  0x5d   : > { %v502_v12 = vadd.f32 %v486_v6, %v450_v28  ;;  %v503_v17 = vadd.f32 %v487_v7, %v451_v29  ;;  %v504_v53 = vadd.f32 %v488_v8, %v452_v30  ;;  %v505_v19 = vadd.f32 %v489_v13, %v453_v31  ;;  %v3187_v8 = vld [vmem:[%s5205_s1 + $0x70] sm:$0xff] }
  0x5e   : > { %v506_v26 = vadd.f32 %v490_v16, %v454_v36  ;;  %v507_v32 = vadd.f32 %v491_v23, %v455_v37  ;;  %v508_v18 = vadd.f32 %v492_v14, %v456_v38  ;;  %v509_v63 = vadd.f32 %v493_v15, %v457_v39  ;;  %v3166_v39 = vld [vmem:[#allocation2 + $0x128] sm:$0xff]  ;;  %5468 = vst [vmem:[#allocation21_spill] sm:$0xff] %v3187_v8  ;;  %v3192_v15 = vld [vmem:[%s5205_s1 + $0x78] sm:$0xff] }
  0x5f   : > { %v510_v52 = vadd.f32 %v494_v50, %v458_v45  ;;  %v511_v25 = vadd.f32 %v495_v51, %v459_v46  ;;  %v512_v3 = vadd.f32 %v496_v20, %v460_v47  ;;  %v513_v57 = vadd.f32 %v497_v21, %v461_v48  ;;  %5466 = vst [vmem:[#allocation19_spill] sm:$0xff] %v3166_v39  ;;  %v3168_v45 = vld [vmem:[#allocation2 + $0x130] sm:$0xff] }
  0x60   : > { %v514_v27 = vadd.f32 %v498_v22, %v462_v1  ;;  %v515_v5 = vadd.f32 %v499_v2, %v463_v33  ;;  %v516_v41 = vadd.f32 %v500_v4, %v464_v0  ;;  %v517_v28 = vmul.f32 %v3143_v11, %v467_v34  ;;  %5467 = vst [vmem:[#allocation20_spill] sm:$0xff] %v3168_v45 }
  0x61   : > { %v518_v29 = vmul.f32 %v3148_v24, %v468_v35  ;;  %v519_v30 = vmul.f32 %v3143_v11, %v3088_v42  ;;  %v520_v31 = vmul.f32 %v3148_v24, %v3090_v43  ;;  %v521_v36 = vmul.f32 %v3143_v11, %v3092_v44  ;;  %5469 = vst [vmem:[#allocation22_spill] sm:$0xff] %v3192_v15 }
  0x62   : > { %v522_v37 = vmul.f32 %v3148_v24, %v3094_v49  ;;  %v523_v38 = vmul.f32 %v3143_v11, %v3096_v58  ;;  %v524_v34 = vmul.f32 %v3148_v24, %v3098_v59  ;;  %v525_v35 = vmul.f32 %v3143_v11, %v3100_v56 }
  0x63   : > { %v526_v46 = vmul.f32 %v3148_v24, %v3102_v60  ;;  %v527_v47 = vmul.f32 %v3143_v11, %v3104_v61  ;;  %v528_v48 = vmul.f32 %v3148_v24, %v3107_v62  ;;  %v529_v1 = vmul.f32 %v3143_v11, %v3109_v55 }
  0x64   : > { %v530_v33 = vmul.f32 %v3148_v24, %v3111_v9  ;;  %v531_v0 = vmul.f32 %v3143_v11, %v3166_v39  ;;  %v532_v6 = vmul.f32 %v3148_v24, %v3168_v45  ;;  %v533_v7 = vadd.f32 %v517_v28, %v501_v10 }
  0x65   : > { %v534_v13 = vadd.f32 %v518_v29, %v502_v12  ;;  %v535_v16 = vadd.f32 %v519_v30, %v503_v17  ;;  %v536_v23 = vadd.f32 %v520_v31, %v504_v53  ;;  %v537_v14 = vadd.f32 %v521_v36, %v505_v19  ;;  %v583_v29 = vld [vmem:[#allocation2 + $0x49] sm:$0xff]  ;;  %v584_v30 = vld [vmem:[#allocation2 + $0x51] sm:$0xff] }
  0x66   : > { %v538_v50 = vadd.f32 %v522_v37, %v506_v26  ;;  %v539_v51 = vadd.f32 %v523_v38, %v507_v32  ;;  %v540_v20 = vadd.f32 %v524_v34, %v508_v18  ;;  %v541_v21 = vadd.f32 %v525_v35, %v509_v63  ;;  %v3240_v34 = vld [vmem:[#allocation2 + $0x69] sm:$0xff]  ;;  %v3242_v35 = vld [vmem:[#allocation2 + $0x71] sm:$0xff] }
  0x67   : > { %v542_v22 = vadd.f32 %v526_v46, %v510_v52  ;;  %v543_v2 = vadd.f32 %v527_v47, %v511_v25  ;;  %v544_v4 = vadd.f32 %v528_v48, %v512_v3  ;;  %v545_v10 = vadd.f32 %v529_v1, %v513_v57  ;;  %v3212_v52 = vld [vmem:[#allocation2 + $0x148] sm:$0xff]  ;;  %v582_v3 = vld [vmem:[#allocation2 + $0x31] sm:$0xff] }
  0x68   : > { %v546_v28 = vadd.f32 %v530_v33, %v514_v27  ;;  %v547_v24 = vadd.f32 %v531_v0, %v515_v5  ;;  %v548_v11 = vadd.f32 %v532_v6, %v516_v41  ;;  %v549_v12 = vmul.f32 %v3187_v8, %v3088_v42  ;;  %5470 = vst [vmem:[#allocation23_spill] sm:$0xff] %v3212_v52  ;;  %v3214_v42 = vld [vmem:[#allocation2 + $0x150] sm:$0xff] }
  0x69   : > { %v550_v17 = vmul.f32 %v3192_v15, %v3090_v43  ;;  %v551_v53 = vmul.f32 %v3187_v8, %v3092_v44  ;;  %v552_v18 = vmul.f32 %v3192_v15, %v3094_v49  ;;  %v553_v63 = vmul.f32 %v3187_v8, %v3096_v58  ;;  %5471 = vst [vmem:[#allocation24_spill] sm:$0xff] %v3214_v42  ;;  %v3244_v46 = vld [vmem:[#allocation2 + $0x89] sm:$0xff]  ;;  %v3246_v0 = vld [vmem:[#allocation2 + $0x91] sm:$0xff] }
  0x6a   : > { %v554_v57 = vmul.f32 %v3192_v15, %v3098_v59  ;;  %v555_v41 = vmul.f32 %v3187_v8, %v3100_v56  ;;  %v556_v5 = vmul.f32 %v3192_v15, %v3102_v60  ;;  %v557_v27 = vmul.f32 %v3187_v8, %v3104_v61  ;;  %v3227_v59 = vld [vmem:[%s5205_s1 + $0x20] sm:$0xff]  ;;  %v3232_v56 = vld [vmem:[%s5205_s1 + $0x28] sm:$0xff] }
  0x6b   : > { %v558_v43 = vmul.f32 %v3192_v15, %v3107_v62  ;;  %v559_v44 = vmul.f32 %v3187_v8, %v3109_v55  ;;  %v560_v49 = vmul.f32 %v3192_v15, %v3111_v9  ;;  %v561_v58 = vmul.f32 %v3187_v8, %v3166_v39  ;;  %5472 = vst [vmem:[#allocation25_spill] sm:$0xff] %v3227_v59  ;;  %v581_v9 = vld [vmem:[#allocation2 + $0x29] sm:$0xff] }
  0x6c   : > { %5473 = vst [vmem:[#allocation26_spill] sm:$0xff] %v3232_v56  ;;  %v562_v60 = vmul.f32 %v3192_v15, %v3168_v45  ;;  %v563_v61 = vmul.f32 %v3187_v8, %v3212_v52  ;;  %v564_v62 = vmul.f32 %v3192_v15, %v3214_v42  ;;  %v565_v55 = vadd.f32 %v549_v12, %v533_v7  ;;  %v3248_v6 = vld [vmem:[#allocation2 + $0xa9] sm:$0xff]  ;;  %v3250_v7 = vld [vmem:[#allocation2 + $0xb1] sm:$0xff] }
  0x6d   : > { %v566_v19 = vadd.f32 %v550_v17, %v534_v13  ;;  %v567_v26 = vadd.f32 %v551_v53, %v535_v16  ;;  %v568_v32 = vadd.f32 %v552_v18, %v536_v23  ;;  %v569_v25 = vadd.f32 %v553_v63, %v537_v14  ;;  %v3252_v14 = vld [vmem:[#allocation2 + $0xc9] sm:$0xff] }
  0x6e   : > { %v570_v31 = vadd.f32 %v554_v57, %v538_v50  ;;  %v571_v36 = vadd.f32 %v555_v41, %v539_v51  ;;  %v572_v37 = vadd.f32 %v556_v5, %v540_v20  ;;  %v573_v38 = vadd.f32 %v557_v27, %v541_v21  ;;  %v3254_v50 = vld [vmem:[#allocation2 + $0xd1] sm:$0xff]  ;;  %v3256_v51 = vld [vmem:[#allocation2 + $0xe9] sm:$0xff] }
  0x6f   : > { %v574_v47 = vadd.f32 %v558_v43, %v542_v22  ;;  %v575_v48 = vadd.f32 %v559_v44, %v543_v2  ;;  %v576_v1 = vadd.f32 %v560_v49, %v544_v4  ;;  %v577_v33 = vadd.f32 %v561_v58, %v545_v10  ;;  %v3259_v21 = vld [vmem:[#allocation2 + $0xf1] sm:$0xff]  ;;  %v3261_v22 = vld [vmem:[#allocation2 + $0x109] sm:$0xff] }
  0x70   : > { %v578_v13 = vadd.f32 %v562_v60, %v546_v28  ;;  %v579_v16 = vadd.f32 %v563_v61, %v547_v24  ;;  %v580_v23 = vadd.f32 %v564_v62, %v548_v11  ;;  %v601_v20 = vmul.f32 %v3227_v59, %v581_v9  ;;  %v3263_v2 = vld [vmem:[#allocation2 + $0x111] sm:$0xff] }
  0x71   : > { %v602_v4 = vmul.f32 %v3232_v56, %v582_v3  ;;  %v603_v10 = vmul.f32 %v3227_v59, %v583_v29  ;;  %v604_v11 = vmul.f32 %v3232_v56, %v584_v30  ;;  %v605_v24 = vmul.f32 %v3227_v59, %v3240_v34  ;;  %v3295_v49 = vld [vmem:[%s5205_s1 + $0x50] sm:$0xff]  ;;  %v3300_v9 = vld [vmem:[%s5205_s1 + $0x58] sm:$0xff] }
  0x72   : > { %v606_v28 = vmul.f32 %v3232_v56, %v3242_v35  ;;  %v607_v12 = vmul.f32 %v3227_v59, %v3244_v46  ;;  %v608_v17 = vmul.f32 %v3232_v56, %v3246_v0  ;;  %v609_v53 = vmul.f32 %v3227_v59, %v3248_v6  ;;  %5474 = vst [vmem:[#allocation27_spill] sm:$0xff] %v3295_v49 }
  0x73   : > { %v610_v18 = vmul.f32 %v3232_v56, %v3250_v7  ;;  %v611_v63 = vmul.f32 %v3227_v59, %v3252_v14  ;;  %v612_v57 = vmul.f32 %v3232_v56, %v3254_v50  ;;  %v613_v41 = vmul.f32 %v3227_v59, %v3256_v51  ;;  %5475 = vst [vmem:[#allocation28_spill] sm:$0xff] %v3300_v9 }
  0x74   : > { %v614_v5 = vmul.f32 %v3232_v56, %v3259_v21  ;;  %v615_v27 = vmul.f32 %v3227_v59, %v3261_v22  ;;  %v616_v43 = vmul.f32 %v3232_v56, %v3263_v2  ;;  %v617_v44 = vadd.f32 %v601_v20, %v565_v55 }
  0x75   : > { %v618_v58 = vadd.f32 %v602_v4, %v566_v19  ;;  %v619_v60 = vadd.f32 %v603_v10, %v567_v26  ;;  %v620_v61 = vadd.f32 %v604_v11, %v568_v32  ;;  %v621_v62 = vadd.f32 %v605_v24, %v569_v25 }
  0x76   : > { %v622_v3 = vadd.f32 %v606_v28, %v570_v31  ;;  %v623_v59 = vadd.f32 %v607_v12, %v571_v36  ;;  %v624_v15 = vadd.f32 %v608_v17, %v572_v37  ;;  %v625_v8 = vadd.f32 %v609_v53, %v573_v38  ;;  %v3313_v36 = vld [vmem:[%s5205_s1 + $0x80] sm:$0xff] }
  0x77   : > { %v626_v56 = vadd.f32 %v610_v18, %v574_v47  ;;  %v627_v55 = vadd.f32 %v611_v63, %v575_v48  ;;  %v628_v20 = vadd.f32 %v612_v57, %v576_v1  ;;  %v629_v42 = vadd.f32 %v613_v41, %v577_v33  ;;  %5476 = vst [vmem:[#allocation29_spill] sm:$0xff] %v3313_v36  ;;  %v3326_v47 = vld [vmem:[%s5205_s1 + $0x88] sm:$0xff]  ;;  %v3330_v1 = vld [vmem:[#allocation2 + $0x131] sm:$0xff] }
  0x78   : > { %v630_v52 = vadd.f32 %v614_v5, %v578_v13  ;;  %v631_v45 = vadd.f32 %v615_v27, %v579_v16  ;;  %v632_v39 = vadd.f32 %v616_v43, %v580_v23  ;;  %v633_v19 = vmul.f32 %v3295_v49, %v583_v29  ;;  %5477 = vst [vmem:[#allocation30_spill] sm:$0xff] %v3326_v47  ;;  %v3328_v48 = vld [vmem:[#allocation2 + $0x129] sm:$0xff] }
  0x79   : > { %v634_v26 = vmul.f32 %v3300_v9, %v584_v30  ;;  %v635_v32 = vmul.f32 %v3295_v49, %v3240_v34  ;;  %v636_v25 = vmul.f32 %v3300_v9, %v3242_v35  ;;  %v637_v31 = vmul.f32 %v3295_v49, %v3244_v46  ;;  %5478 = vst [vmem:[#allocation31_spill] sm:$0xff] %v3328_v48 }
  0x7a   : > { %v638_v37 = vmul.f32 %v3300_v9, %v3246_v0  ;;  %v639_v29 = vmul.f32 %v3295_v49, %v3248_v6  ;;  %v640_v30 = vmul.f32 %v3300_v9, %v3250_v7  ;;  %v641_v38 = vmul.f32 %v3295_v49, %v3252_v14  ;;  %5479 = vst [vmem:[#allocation32_spill] sm:$0xff] %v3330_v1 }
  0x7b   : > { %v642_v33 = vmul.f32 %v3300_v9, %v3254_v50  ;;  %v643_v13 = vmul.f32 %v3295_v49, %v3256_v51  ;;  %v644_v16 = vmul.f32 %v3300_v9, %v3259_v21  ;;  %v645_v23 = vmul.f32 %v3295_v49, %v3261_v22 }
  0x7c   : > { %v646_v4 = vmul.f32 %v3300_v9, %v3263_v2  ;;  %v647_v10 = vmul.f32 %v3295_v49, %v3328_v48  ;;  %v648_v11 = vmul.f32 %v3300_v9, %v3330_v1  ;;  %v649_v24 = vadd.f32 %v633_v19, %v617_v44 }
  0x7d   : > { %v650_v28 = vadd.f32 %v634_v26, %v618_v58  ;;  %v651_v12 = vadd.f32 %v635_v32, %v619_v60  ;;  %v652_v17 = vadd.f32 %v636_v25, %v620_v61  ;;  %v665_v53 = vmul.f32 %v3313_v36, %v3240_v34  ;;  %v3388_v25 = vld [vmem:[#allocation2 + $0x149] sm:$0xff] }
  0x7e   : > { %v653_v18 = vadd.f32 %v637_v31, %v621_v62  ;;  %v666_v63 = vmul.f32 %v3326_v47, %v3242_v35  ;;  %v667_v57 = vmul.f32 %v3313_v36, %v3244_v46  ;;  %v668_v41 = vmul.f32 %v3326_v47, %v3246_v0  ;;  %5483 = vst [vmem:[#allocation36_spill] sm:$0xff] %v3388_v25 }
  0x7f   : > { %v654_v5 = vadd.f32 %v638_v37, %v622_v3  ;;  %v655_v27 = vadd.f32 %v639_v29, %v623_v59  ;;  %v656_v43 = vadd.f32 %v640_v30, %v624_v15  ;;  %v669_v44 = vmul.f32 %v3313_v36, %v3248_v6  ;;  %v3363_v59 = vld [vmem:[%s5205_s1 + $0x120] sm:$0xff]  ;;  %v3400_v29 = vld [vmem:[%s5205_s1 + $0x148] sm:$0xff] }
  0x80   : > { %v657_v58 = vadd.f32 %v641_v38, %v625_v8  ;;  %v658_v60 = vadd.f32 %v642_v33, %v626_v56  ;;  %v659_v61 = vadd.f32 %v643_v13, %v627_v55  ;;  %v670_v34 = vmul.f32 %v3326_v47, %v3250_v7  ;;  %5480 = vst [vmem:[#allocation33_spill] sm:$0xff] %v3363_v59  ;;  %v3368_v56 = vld [vmem:[%s5205_s1 + $0x128] sm:$0xff] }
  0x81   : > { %v660_v62 = vadd.f32 %v644_v16, %v628_v20  ;;  %v661_v35 = vadd.f32 %v645_v23, %v629_v42  ;;  %v671_v46 = vmul.f32 %v3313_v36, %v3252_v14  ;;  %v681_v19 = vadd.f32 %v665_v53, %v649_v24  ;;  %5481 = vst [vmem:[#allocation34_spill] sm:$0xff] %v3368_v56 }
  0x82   : > { %v662_v15 = vadd.f32 %v646_v4, %v630_v52  ;;  %v682_v0 = vadd.f32 %v666_v63, %v650_v28  ;;  %v683_v6 = vadd.f32 %v667_v57, %v651_v12  ;;  %v684_v8 = vadd.f32 %v668_v41, %v652_v17  ;;  %5485 = vst [vmem:[#allocation38_spill] sm:$0xff] %v3400_v29 }
  0x83   : > { %v663_v7 = vadd.f32 %v647_v10, %v631_v45  ;;  %v664_v42 = vadd.f32 %v648_v11, %v632_v39  ;;  %v672_v14 = vmul.f32 %v3326_v47, %v3254_v50  ;;  %v685_v3 = vadd.f32 %v669_v44, %v653_v18 }
  0x84   : > { %v673_v55 = vmul.f32 %v3313_v36, %v3256_v51  ;;  %v674_v52 = vmul.f32 %v3326_v47, %v3259_v21  ;;  %v675_v20 = vmul.f32 %v3313_v36, %v3261_v22  ;;  %v686_v26 = vadd.f32 %v670_v34, %v654_v5  ;;  %v3386_v51 = vld [vmem:[%s5205_s1 + $0x140] sm:$0xff]  ;;  %v3390_v21 = vld [vmem:[#allocation2 + $0x151] sm:$0xff] }
  0x85   : > { %v676_v32 = vmul.f32 %v3326_v47, %v3263_v2  ;;  %v677_v39 = vmul.f32 %v3313_v36, %v3328_v48  ;;  %v687_v45 = vadd.f32 %v671_v46, %v655_v27  ;;  %v697_v50 = vmul.f32 %v3363_v59, %v681_v19  ;;  %5482 = vst [vmem:[#allocation35_spill] sm:$0xff] %v3386_v51 }
  0x86   : > { %5484 = vst [vmem:[#allocation37_spill] sm:$0xff] %v3390_v21  ;;  %v678_v22 = vmul.f32 %v3326_v47, %v3330_v1  ;;  %v698_v2 = vmul.f32 %v3368_v56, %v682_v0  ;;  %v699_v31 = vmul.f32 %v3363_v59, %v683_v6  ;;  %v700_v37 = vmul.f32 %v3368_v56, %v684_v8 }
  0x87   : > { %v679_v30 = vmul.f32 %v3313_v36, %v3388_v25  ;;  %v680_v38 = vmul.f32 %v3326_v47, %v3390_v21  ;;  %v688_v33 = vadd.f32 %v672_v14, %v656_v43  ;;  %v701_v13 = vmul.f32 %v3363_v59, %v685_v3 }
  0x88   : > { %v689_v16 = vadd.f32 %v673_v55, %v657_v58  ;;  %v690_v23 = vadd.f32 %v674_v52, %v658_v60  ;;  %v691_v4 = vadd.f32 %v675_v20, %v659_v61  ;;  %v702_v10 = vmul.f32 %v3368_v56, %v686_v26 }
  0x89   : > { %v692_v11 = vadd.f32 %v676_v32, %v660_v62  ;;  %v693_v24 = vadd.f32 %v677_v39, %v661_v35  ;;  %v703_v28 = vmul.f32 %v3363_v59, %v687_v45  ;;  %v3410_v12 = vadd.f32 %v3386_v51, %v697_v50 }
  0x8a   : > { %v694_v17 = vadd.f32 %v678_v22, %v662_v15  ;;  %v3413_v53 = vadd.f32 %v3400_v29, %v698_v2  ;;  %v3416_v18 = vadd.f32 %v3386_v51, %v699_v31  ;;  %v3419_v63 = vadd.f32 %v3400_v29, %v700_v37 }
  0x8b   : > { %5486 = vst [vmem:[#allocation39_spill] sm:$0xff] %v3410_v12  ;;  %v695_v57 = vadd.f32 %v679_v30, %v663_v7  ;;  %v696_v41 = vadd.f32 %v680_v38, %v664_v42  ;;  %v704_v5 = vmul.f32 %v3368_v56, %v688_v33  ;;  %v3423_v27 = vadd.f32 %v3386_v51, %v701_v13 }
  0x8c   : > { %5487 = vst [vmem:[#allocation40_spill] sm:$0xff] %v3413_v53  ;;  %5488 = vst [vmem:[#allocation41_spill] sm:$0xff] %v3416_v18  ;;  %v705_v43 = vmul.f32 %v3363_v59, %v689_v16  ;;  %v706_v44 = vmul.f32 %v3368_v56, %v690_v23  ;;  %v707_v58 = vmul.f32 %v3363_v59, %v691_v4  ;;  %v5253_v35 = vmax.f32 %v3410_v12, 0.0  ;;  %v5507_v16 = vld [vmem:[#allocation8_spill] sm:$0xff] }
  0x8d   : > { %5489 = vst [vmem:[#allocation42_spill] sm:$0xff] %v3419_v63  ;;  %5490 = vst [vmem:[#allocation43_spill] sm:$0xff] %v3423_v27  ;;  %v3429_v60 = vadd.f32 %v3400_v29, %v702_v10  ;;  %v708_v61 = vmul.f32 %v3368_v56, %v692_v11  ;;  %v709_v34 = vmul.f32 %v3363_v59, %v693_v24  ;;  %v5252_v19 = vmax.f32 %v3413_v53, 0.0  ;;  %v3494_v11 = vld [vmem:[#allocation2 + $0x167] sm:$0xff]  ;;  %v3496_v24 = vld [vmem:[#allocation2 + $0x16f] sm:$0xff] }
  0x8e   : > { %v3434_v62 = vadd.f32 %v3386_v51, %v703_v28  ;;  %v710_v46 = vmul.f32 %v3368_v56, %v694_v17  ;;  %v5251_v15 = vmax.f32 %v3416_v18, 0.0  ;;  %v5250_v0 = vmax.f32 %v3419_v63, 0.0  ;;  %v3498_v28 = vld [vmem:[#allocation2 + $0x187] sm:$0xff]  ;;  %v3500_v17 = vld [vmem:[#allocation2 + $0x18f] sm:$0xff] }
  0x8f   : > { %5491 = vst [vmem:[#allocation44_spill] sm:$0xff] %v3429_v60  ;;  %v711_v6 = vmul.f32 %v3363_v59, %v695_v57  ;;  %v5249_v8 = vmax.f32 %v3423_v27, 0.0  ;;  %v712_v7 = vmul.f32 %v3368_v56, %v696_v41  ;;  %v3445_v42 = vadd.f32 %v3400_v29, %v704_v5  ;;  %v5502_v41 = vld [vmem:[#allocation7_spill] sm:$0xff]  ;;  %v5503_v5 = vld [vmem:[#allocation10_spill] sm:$0xff]  ;;  %v795_v63 = vld [vmem:[#allocation2 + $0x22f] sm:$0xff] }
  0x90   : > { %5492 = vst [vmem:[#allocation45_spill] sm:$0xff] %v3434_v62  ;;  %v3448_v14 = vadd.f32 %v3386_v51, %v705_v43  ;;  %v5248_v3 = vmax.f32 %v3429_v60, 0.0  ;;  %v3452_v55 = vadd.f32 %v3400_v29, %v706_v44  ;;  %v3455_v52 = vadd.f32 %v3386_v51, %v707_v58  ;;  %v5504_v44 = vld [vmem:[#allocation13_spill] sm:$0xff]  ;;  %v794_v27 = vld [vmem:[#allocation2 + $0x227] sm:$0xff] }
  0x91   : > { %5493 = vst [vmem:[#allocation46_spill] sm:$0xff] %v3445_v42  ;;  %v5246_v20 = vmax.f32 %v3434_v62, 0.0  ;;  %v761_v26 = vadd.f32 %v5251_v15, %v5253_v35  ;;  %v3463_v32 = vadd.f32 %v3400_v29, %v708_v61  ;;  %v3466_v39 = vadd.f32 %v3386_v51, %v709_v34  ;;  %v5505_v61 = vld [vmem:[#allocation14_spill] sm:$0xff]  ;;  %v792_v15 = vld [vmem:[#allocation2 + $0x207] sm:$0xff] }
  0x92   : > { %5494 = vst [vmem:[#allocation47_spill] sm:$0xff] %v3448_v14  ;;  %5495 = vst [vmem:[#allocation48_spill] sm:$0xff] %v3452_v55  ;;  %v3469_v45 = vadd.f32 %v3400_v29, %v710_v46  ;;  %v768_v50 = vadd.f32 %v5250_v0, %v5252_v19  ;;  %v3478_v2 = vadd.f32 %v3386_v51, %v711_v6  ;;  %v5247_v31 = vmax.f32 %v3445_v42, 0.0  ;;  %v3512_v6 = vld [vmem:[#allocation2 + $0x1a7] sm:$0xff]  ;;  %v793_v19 = vld [vmem:[#allocation2 + $0x20f] sm:$0xff] }
  0x93   : > { %5496 = vst [vmem:[#allocation49_spill] sm:$0xff] %v3455_v52  ;;  %5497 = vst [vmem:[#allocation50_spill] sm:$0xff] %v3463_v32  ;;  %v762_v22 = vadd.f32 %v761_v26, %v5249_v8  ;;  %v3484_v30 = vadd.f32 %v3400_v29, %v712_v7  ;;  %v5254_v38 = vmax.f32 %v3448_v14, 0.0  ;;  %v798_v57 = vmul.f32 %v3017_v40, %v2945_v54  ;;  %v3514_v7 = vld [vmem:[#allocation2 + $0x1af] sm:$0xff]  ;;  %v3516_v26 = vld [vmem:[#allocation2 + $0x1c7] sm:$0xff] }
  0x94   : > { %5498 = vst [vmem:[#allocation51_spill] sm:$0xff] %v3466_v39  ;;  %5499 = vst [vmem:[#allocation52_spill] sm:$0xff] %v3469_v45  ;;  %v769_v37 = vadd.f32 %v768_v50, %v5248_v3  ;;  %v799_v43 = vmul.f32 %v5503_v5, %v5502_v41  ;;  %v800_v58 = vmul.f32 %v5504_v44, %v2945_v54  ;;  %v5508_v14 = vld [vmem:[#allocation9_spill] sm:$0xff]  ;;  %v5509_v62 = vmax.f32 %v3452_v55, 0.0 }
  0x95   : > { %5500 = vst [vmem:[#allocation53_spill] sm:$0xff] %v3478_v2  ;;  %5501 = vst [vmem:[#allocation54_spill] sm:$0xff] %v3484_v30  ;;  %v763_v13 = vadd.f32 %v762_v22, %v5246_v20  ;;  %v801_v34 = vmul.f32 %v5505_v61, %v5502_v41  ;;  %v802_v40 = vmul.f32 %v3494_v11, %v2945_v54  ;;  %v789_v20 = vld [vmem:[#allocation2 + $0x1cf] sm:$0xff] }
  0x96   : > { %v770_v46 = vadd.f32 %v769_v37, %v5247_v31  ;;  %5506 = vst [vmem:[#allocation7_spill] sm:$0xff] %v3516_v26  ;;  %v803_v50 = vmul.f32 %v3496_v24, %v5502_v41  ;;  %v804_v22 = vmul.f32 %v3498_v28, %v2945_v54  ;;  %v790_v37 = vld [vmem:[#allocation2 + $0x1e7] sm:$0xff]  ;;  %v791_v31 = vld [vmem:[#allocation2 + $0x1ef] sm:$0xff]  ;;  %v805_v3 = vmul.f32 %v3500_v17, %v5502_v41 }
  0x97   : > { %v764_v5 = vadd.f32 %v763_v13, %v5254_v38  ;;  %v806_v8 = vmul.f32 %v3512_v6, %v2945_v54  ;;  %v807_v0 = vmul.f32 %v3514_v7, %v5502_v41  ;;  %v808_v35 = vmul.f32 %v3516_v26, %v2945_v54 }
  0x98   : > { %v809_v10 = vmul.f32 %v789_v20, %v5502_v41  ;;  %v810_v13 = vmul.f32 %v790_v37, %v2945_v54  ;;  %v811_v38 = vmul.f32 %v791_v31, %v5502_v41  ;;  %v812_v4 = vmul.f32 %v792_v15, %v2945_v54 }
  0x99   : > { %v813_v23 = vmul.f32 %v793_v19, %v5502_v41  ;;  %v830_v33 = vmul.f32 %v5507_v16, %v5504_v44  ;;  %v831_v42 = vmul.f32 %v5508_v14, %v5505_v61  ;;  %v3545_v60 = vadd.f32 %v770_v46, %v5509_v62 }
  0x9a   : > { %v832_v18 = vmul.f32 %v5507_v16, %v3494_v11  ;;  %v833_v54 = vmul.f32 %v5508_v14, %v3496_v24  ;;  %v834_v41 = vmul.f32 %v5507_v16, %v3498_v28  ;;  %v5511_v44 = vmax.f32 %v3455_v52, 0.0 }
  0x9b   : > { %5510 = vst [vmem:[#allocation10_spill] sm:$0xff] %v3545_v60  ;;  %v835_v61 = vmul.f32 %v5508_v14, %v3500_v17  ;;  %v836_v62 = vmul.f32 %v5507_v16, %v3512_v6  ;;  %v837_v46 = vmul.f32 %v5508_v14, %v3514_v7  ;;  %v838_v55 = vmul.f32 %v5507_v16, %v3516_v26  ;;  %v796_v26 = vld [vmem:[#allocation2 + $0x247] sm:$0xff] }
  0x9c   : > { %v3555_v53 = vadd.f32 %v764_v5, %v5511_v44  ;;  %v839_v12 = vmul.f32 %v5508_v14, %v789_v20  ;;  %v840_v45 = vmul.f32 %v5507_v16, %v790_v37  ;;  %v841_v52 = vmul.f32 %v5508_v14, %v791_v31 }
  0x9d   : > { %v842_v5 = vmul.f32 %v5507_v16, %v792_v15  ;;  %v843_v44 = vmul.f32 %v5508_v14, %v793_v19  ;;  %v845_v39 = vmul.f32 %v5508_v14, %v795_v63  ;;  %v846_v30 = vadd.f32 %v830_v33, %v798_v57  ;;  %v5513_v14 = vld [vmem:[#allocation11_spill] sm:$0xff] }
  0x9e   : > { %5512 = vst [vmem:[#allocation13_spill] sm:$0xff] %v3555_v53  ;;  %v844_v53 = vmul.f32 %v5507_v16, %v794_v27  ;;  %v847_v2 = vadd.f32 %v831_v42, %v799_v43  ;;  %v848_v60 = vadd.f32 %v832_v18, %v800_v58  ;;  %v849_v32 = vadd.f32 %v833_v54, %v801_v34  ;;  %v797_v16 = vld [vmem:[#allocation2 + $0x24f] sm:$0xff] }
  0x9f   : > { %v850_v29 = vadd.f32 %v834_v41, %v802_v40  ;;  %v851_v51 = vadd.f32 %v835_v61, %v803_v50  ;;  %v852_v56 = vadd.f32 %v836_v62, %v804_v22  ;;  %v853_v59 = vadd.f32 %v837_v46, %v805_v3  ;;  %v5514_v18 = vld [vmem:[#allocation12_spill] sm:$0xff]  ;;  %v5519_v50 = vld [vmem:[#allocation15_spill] sm:$0xff] }
  0xa0   : > { %v854_v47 = vadd.f32 %v838_v55, %v806_v8  ;;  %v855_v36 = vadd.f32 %v839_v12, %v807_v0  ;;  %v856_v9 = vadd.f32 %v840_v45, %v808_v35  ;;  %v857_v49 = vadd.f32 %v841_v52, %v809_v10  ;;  %v5515_v0 = vld [vmem:[#allocation7_spill] sm:$0xff]  ;;  %v3595_v34 = vld [vmem:[#allocation2 + $0x168] sm:$0xff] }
  0xa1   : > { %v858_v21 = vadd.f32 %v842_v5, %v810_v13  ;;  %v859_v25 = vadd.f32 %v843_v44, %v811_v38  ;;  %v860_v1 = vadd.f32 %v844_v53, %v812_v4  ;;  %v861_v48 = vadd.f32 %v845_v39, %v813_v23  ;;  %v3611_v40 = vld [vmem:[#allocation2 + $0x1e8] sm:$0xff] }
  0xa2   : > { %v862_v33 = vmul.f32 %v5513_v14, %v3494_v11  ;;  %v863_v42 = vmul.f32 %v5514_v18, %v3496_v24  ;;  %v864_v57 = vmul.f32 %v5513_v14, %v3498_v28  ;;  %v865_v12 = vmul.f32 %v5514_v18, %v3500_v17  ;;  %v5523_v13 = vld [vmem:[#allocation24_spill] sm:$0xff] }
  0xa3   : > { %v866_v35 = vmul.f32 %v5513_v14, %v3512_v6  ;;  %v867_v53 = vmul.f32 %v5514_v18, %v3514_v7  ;;  %v868_v8 = vmul.f32 %v5513_v14, %v5515_v0  ;;  %v869_v3 = vmul.f32 %v5514_v18, %v789_v20 }
  0xa4   : > { %v870_v55 = vmul.f32 %v5513_v14, %v790_v37  ;;  %v871_v52 = vmul.f32 %v5514_v18, %v791_v31  ;;  %v872_v39 = vmul.f32 %v5513_v14, %v792_v15  ;;  %v873_v45 = vmul.f32 %v5514_v18, %v793_v19  ;;  %v3597_v15 = vld [vmem:[#allocation2 + $0x170] sm:$0xff]  ;;  %v3599_v19 = vld [vmem:[#allocation2 + $0x188] sm:$0xff] }
  0xa5   : > { %v874_v38 = vmul.f32 %v5513_v14, %v794_v27  ;;  %v875_v23 = vmul.f32 %v5514_v18, %v795_v63  ;;  %v876_v4 = vmul.f32 %v5513_v14, %v796_v26  ;;  %v877_v10 = vmul.f32 %v5514_v18, %v797_v16  ;;  %v3601_v26 = vld [vmem:[#allocation2 + $0x190] sm:$0xff]  ;;  %v5520_v37 = vld [vmem:[#allocation20_spill] sm:$0xff] }
  0xa6   : > { %v878_v11 = vadd.f32 %v862_v33, %v846_v30  ;;  %v879_v24 = vadd.f32 %v863_v42, %v847_v2  ;;  %v880_v28 = vadd.f32 %v864_v57, %v848_v60  ;;  %v881_v20 = vadd.f32 %v865_v12, %v849_v32  ;;  %v3603_v30 = vld [vmem:[#allocation2 + $0x1a8] sm:$0xff]  ;;  %v3605_v60 = vld [vmem:[#allocation2 + $0x1b0] sm:$0xff] }
  0xa7   : > { %v882_v17 = vadd.f32 %v866_v35, %v850_v29  ;;  %v883_v43 = vadd.f32 %v867_v53, %v851_v51  ;;  %v884_v58 = vadd.f32 %v868_v8, %v852_v56  ;;  %v885_v31 = vadd.f32 %v869_v3, %v853_v59  ;;  %v3607_v32 = vld [vmem:[#allocation2 + $0x1c8] sm:$0xff]  ;;  %v3609_v2 = vld [vmem:[#allocation2 + $0x1d0] sm:$0xff] }
  0xa8   : > { %v886_v27 = vadd.f32 %v870_v55, %v854_v47  ;;  %v887_v63 = vadd.f32 %v871_v52, %v855_v36  ;;  %v888_v6 = vadd.f32 %v872_v39, %v856_v9  ;;  %v889_v7 = vadd.f32 %v873_v45, %v857_v49  ;;  %v3613_v47 = vld [vmem:[#allocation2 + $0x1f0] sm:$0xff]  ;;  %v3615_v9 = vld [vmem:[#allocation2 + $0x208] sm:$0xff]  ;;  %v5518_v36 = vld [vmem:[#allocation19_spill] sm:$0xff] }
  0xa9   : > { %v890_v29 = vadd.f32 %v874_v38, %v858_v21  ;;  %v891_v51 = vadd.f32 %v875_v23, %v859_v25  ;;  %v892_v56 = vadd.f32 %v876_v4, %v860_v1  ;;  %v893_v59 = vadd.f32 %v877_v10, %v861_v48  ;;  %5516 = vst [vmem:[#allocation14_spill] sm:$0xff] %v3615_v9  ;;  %v3617_v49 = vld [vmem:[#allocation2 + $0x210] sm:$0xff]  ;;  %v5521_v21 = vld [vmem:[#allocation16_spill] sm:$0xff]  ;;  %v5522_v1 = vld [vmem:[#allocation23_spill] sm:$0xff] }
  0xaa   : > { %5517 = vst [vmem:[#allocation8_spill] sm:$0xff] %v3617_v49  ;;  %v914_v22 = vmul.f32 %v5519_v50, %v5518_v36  ;;  %v915_v25 = vmul.f32 %v5521_v21, %v5520_v37  ;;  %v916_v48 = vmul.f32 %v5519_v50, %v5522_v1  ;;  %v917_v54 = vmul.f32 %v5521_v21, %v5523_v13 }
  0xab   : > { %v918_v41 = vmul.f32 %v5519_v50, %v3595_v34  ;;  %v919_v61 = vmul.f32 %v5521_v21, %v3597_v15  ;;  %v920_v62 = vmul.f32 %v5519_v50, %v3599_v19  ;;  %v921_v46 = vmul.f32 %v5521_v21, %v3601_v26 }
  0xac   : > { %v922_v5 = vmul.f32 %v5519_v50, %v3603_v30  ;;  %v923_v44 = vmul.f32 %v5521_v21, %v3605_v60  ;;  %v924_v16 = vmul.f32 %v5519_v50, %v3607_v32  ;;  %v925_v14 = vmul.f32 %v5521_v21, %v3609_v2 }
  0xad   : > { %v926_v33 = vmul.f32 %v5519_v50, %v3611_v40  ;;  %v927_v18 = vmul.f32 %v5521_v21, %v3613_v47  ;;  %v928_v42 = vmul.f32 %v5519_v50, %v3615_v9  ;;  %v929_v57 = vmul.f32 %v5521_v21, %v3617_v49  ;;  %v910_v50 = vld [vmem:[#allocation2 + $0x228] sm:$0xff]  ;;  %v911_v9 = vld [vmem:[#allocation2 + $0x230] sm:$0xff] }
  0xae   : > { %v930_v12 = vadd.f32 %v914_v22, %v878_v11  ;;  %v931_v35 = vadd.f32 %v915_v25, %v879_v24  ;;  %v932_v53 = vadd.f32 %v916_v48, %v880_v28  ;;  %v933_v0 = vadd.f32 %v917_v54, %v881_v20  ;;  %v5524_v21 = vld [vmem:[#allocation17_spill] sm:$0xff]  ;;  %v5525_v24 = vld [vmem:[#allocation18_spill] sm:$0xff] }
  0xaf   : > { %v934_v8 = vadd.f32 %v918_v41, %v882_v17  ;;  %v935_v3 = vadd.f32 %v919_v61, %v883_v43  ;;  %v936_v55 = vadd.f32 %v920_v62, %v884_v58  ;;  %v937_v52 = vadd.f32 %v921_v46, %v885_v31 }
  0xb0   : > { %v938_v39 = vadd.f32 %v922_v5, %v886_v27  ;;  %v939_v45 = vadd.f32 %v923_v44, %v887_v63  ;;  %v940_v38 = vadd.f32 %v924_v16, %v888_v6  ;;  %v941_v23 = vadd.f32 %v925_v14, %v889_v7 }
  0xb1   : > { %v942_v4 = vadd.f32 %v926_v33, %v890_v29  ;;  %v943_v10 = vadd.f32 %v927_v18, %v891_v51  ;;  %v944_v36 = vadd.f32 %v928_v42, %v892_v56  ;;  %v945_v37 = vadd.f32 %v929_v57, %v893_v59  ;;  %v5526_v51 = vld [vmem:[#allocation14_spill] sm:$0xff] }
  0xb2   : > { %v946_v11 = vmul.f32 %v5524_v21, %v5522_v1  ;;  %v947_v28 = vmul.f32 %v5525_v24, %v5523_v13  ;;  %v948_v20 = vmul.f32 %v5524_v21, %v3595_v34  ;;  %v949_v17 = vmul.f32 %v5525_v24, %v3597_v15 }
  0xb3   : > { %v950_v43 = vmul.f32 %v5524_v21, %v3599_v19  ;;  %v951_v58 = vmul.f32 %v5525_v24, %v3601_v26  ;;  %v952_v31 = vmul.f32 %v5524_v21, %v3603_v30  ;;  %v953_v27 = vmul.f32 %v5525_v24, %v3605_v60 }
  0xb4   : > { %v954_v63 = vmul.f32 %v5524_v21, %v3607_v32  ;;  %v955_v6 = vmul.f32 %v5525_v24, %v3609_v2  ;;  %v956_v7 = vmul.f32 %v5524_v21, %v3611_v40  ;;  %v957_v29 = vmul.f32 %v5525_v24, %v3613_v47 }
  0xb5   : > { %v958_v56 = vmul.f32 %v5524_v21, %v5526_v51  ;;  %v959_v59 = vmul.f32 %v5525_v24, %v3617_v49  ;;  %v960_v22 = vmul.f32 %v5524_v21, %v910_v50  ;;  %v961_v25 = vmul.f32 %v5525_v24, %v911_v9  ;;  %v912_v49 = vld [vmem:[#allocation2 + $0x248] sm:$0xff]  ;;  %v913_v21 = vld [vmem:[#allocation2 + $0x250] sm:$0xff] }
  0xb6   : > { %v962_v1 = vadd.f32 %v946_v11, %v930_v12  ;;  %v963_v48 = vadd.f32 %v947_v28, %v931_v35  ;;  %v964_v13 = vadd.f32 %v948_v20, %v932_v53  ;;  %v965_v54 = vadd.f32 %v949_v17, %v933_v0  ;;  %v5527_v24 = vld [vmem:[#allocation21_spill] sm:$0xff]  ;;  %v5528_v35 = vld [vmem:[#allocation22_spill] sm:$0xff] }
  0xb7   : > { %v966_v41 = vadd.f32 %v950_v43, %v934_v8  ;;  %v967_v61 = vadd.f32 %v951_v58, %v935_v3  ;;  %v968_v62 = vadd.f32 %v952_v31, %v936_v55  ;;  %v969_v46 = vadd.f32 %v953_v27, %v937_v52  ;;  %v3709_v11 = vld [vmem:[#allocation2 + $0x169] sm:$0xff]  ;;  %v3711_v28 = vld [vmem:[#allocation2 + $0x171] sm:$0xff] }
  0xb8   : > { %v970_v5 = vadd.f32 %v954_v63, %v938_v39  ;;  %v971_v44 = vadd.f32 %v955_v6, %v939_v45  ;;  %v972_v16 = vadd.f32 %v956_v7, %v940_v38  ;;  %v973_v14 = vadd.f32 %v957_v29, %v941_v23  ;;  %v5529_v39 = vld [vmem:[#allocation8_spill] sm:$0xff]  ;;  %v3715_v43 = vld [vmem:[#allocation2 + $0x191] sm:$0xff] }
  0xb9   : > { %v974_v33 = vadd.f32 %v958_v56, %v942_v4  ;;  %v975_v18 = vadd.f32 %v959_v59, %v943_v10  ;;  %v976_v42 = vadd.f32 %v960_v22, %v944_v36  ;;  %v977_v57 = vadd.f32 %v961_v25, %v945_v37  ;;  %v3713_v20 = vld [vmem:[#allocation2 + $0x189] sm:$0xff]  ;;  %v3719_v31 = vld [vmem:[#allocation2 + $0x1b1] sm:$0xff] }
  0xba   : > { %v978_v12 = vmul.f32 %v5527_v24, %v3595_v34  ;;  %v979_v53 = vmul.f32 %v5528_v35, %v3597_v15  ;;  %v980_v0 = vmul.f32 %v5527_v24, %v3599_v19  ;;  %v981_v8 = vmul.f32 %v5528_v35, %v3601_v26  ;;  %v3717_v58 = vld [vmem:[#allocation2 + $0x1a9] sm:$0xff]  ;;  %v3727_v59 = vld [vmem:[#allocation2 + $0x1f1] sm:$0xff] }
  0xbb   : > { %v982_v3 = vmul.f32 %v5527_v24, %v3603_v30  ;;  %v983_v55 = vmul.f32 %v5528_v35, %v3605_v60  ;;  %v984_v52 = vmul.f32 %v5527_v24, %v3607_v32  ;;  %v985_v34 = vmul.f32 %v5528_v35, %v3609_v2  ;;  %v3721_v29 = vld [vmem:[#allocation2 + $0x1c9] sm:$0xff]  ;;  %v3731_v25 = vld [vmem:[#allocation2 + $0x211] sm:$0xff] }
  0xbc   : > { %v986_v15 = vmul.f32 %v5527_v24, %v3611_v40  ;;  %v987_v19 = vmul.f32 %v5528_v35, %v3613_v47  ;;  %v988_v26 = vmul.f32 %v5527_v24, %v5526_v51  ;;  %v989_v30 = vmul.f32 %v5528_v35, %v5529_v39  ;;  %v3723_v51 = vld [vmem:[#allocation2 + $0x1d1] sm:$0xff]  ;;  %v3725_v56 = vld [vmem:[#allocation2 + $0x1e9] sm:$0xff] }
  0xbd   : > { %v990_v60 = vmul.f32 %v5527_v24, %v910_v50  ;;  %v991_v45 = vmul.f32 %v5528_v35, %v911_v9  ;;  %v992_v32 = vmul.f32 %v5527_v24, %v912_v49  ;;  %v993_v2 = vmul.f32 %v5528_v35, %v913_v21  ;;  %v3729_v22 = vld [vmem:[#allocation2 + $0x209] sm:$0xff] }
  0xbe   : > { %v994_v38 = vadd.f32 %v978_v12, %v962_v1  ;;  %v995_v23 = vadd.f32 %v979_v53, %v963_v48  ;;  %v996_v40 = vadd.f32 %v980_v0, %v964_v13  ;;  %v997_v4 = vadd.f32 %v981_v8, %v965_v54  ;;  %5530 = vst [vmem:[#allocation9_spill] sm:$0xff] %v3729_v22  ;;  %v5531_v1 = vld [vmem:[#allocation31_spill] sm:$0xff]  ;;  %v5532_v48 = vld [vmem:[#allocation25_spill] sm:$0xff]  ;;  %v5533_v54 = vld [vmem:[#allocation32_spill] sm:$0xff] }
  0xbf   : > { %v998_v10 = vadd.f32 %v982_v3, %v966_v41  ;;  %v999_v47 = vadd.f32 %v983_v55, %v967_v61  ;;  %v1000_v36 = vadd.f32 %v984_v52, %v968_v62  ;;  %v1001_v37 = vadd.f32 %v985_v34, %v969_v46  ;;  %v5534_v41 = vld [vmem:[#allocation26_spill] sm:$0xff]  ;;  %v5535_v62 = vld [vmem:[#allocation36_spill] sm:$0xff] }
  0xc0   : > { %v1002_v50 = vadd.f32 %v986_v15, %v970_v5  ;;  %v1003_v9 = vadd.f32 %v987_v19, %v971_v44  ;;  %v1004_v17 = vadd.f32 %v988_v26, %v972_v16  ;;  %v1005_v49 = vadd.f32 %v989_v30, %v973_v14  ;;  %v5536_v5 = vld [vmem:[#allocation37_spill] sm:$0xff] }
  0xc1   : > { %v1006_v27 = vadd.f32 %v990_v60, %v974_v33  ;;  %v1007_v63 = vadd.f32 %v991_v45, %v975_v18  ;;  %v1008_v6 = vadd.f32 %v992_v32, %v976_v42  ;;  %v1009_v7 = vadd.f32 %v993_v2, %v977_v57 }
  0xc2   : > { %v1030_v13 = vmul.f32 %v5532_v48, %v5531_v1  ;;  %v1031_v61 = vmul.f32 %v5534_v41, %v5533_v54  ;;  %v1032_v46 = vmul.f32 %v5532_v48, %v5535_v62  ;;  %v1033_v44 = vmul.f32 %v5534_v41, %v5536_v5 }
  0xc3   : > { %v1034_v16 = vmul.f32 %v5532_v48, %v3709_v11  ;;  %v1035_v14 = vmul.f32 %v5534_v41, %v3711_v28  ;;  %v1036_v33 = vmul.f32 %v5532_v48, %v3713_v20  ;;  %v1037_v18 = vmul.f32 %v5534_v41, %v3715_v43 }
  0xc4   : > { %v1038_v42 = vmul.f32 %v5532_v48, %v3717_v58  ;;  %v1039_v57 = vmul.f32 %v5534_v41, %v3719_v31  ;;  %v1040_v21 = vmul.f32 %v5532_v48, %v3721_v29  ;;  %v1041_v24 = vmul.f32 %v5534_v41, %v3723_v51 }
  0xc5   : > { %v1042_v12 = vmul.f32 %v5532_v48, %v3725_v56  ;;  %v1043_v35 = vmul.f32 %v5534_v41, %v3727_v59  ;;  %v1044_v53 = vmul.f32 %v5532_v48, %v3729_v22  ;;  %v1045_v0 = vmul.f32 %v5534_v41, %v3731_v25  ;;  %v1026_v48 = vld [vmem:[#allocation2 + $0x229] sm:$0xff]  ;;  %v1027_v22 = vld [vmem:[#allocation2 + $0x231] sm:$0xff]  ;;  %v5537_v41 = vld [vmem:[#allocation27_spill] sm:$0xff] }
  0xc6   : > { %v1046_v8 = vadd.f32 %v1030_v13, %v994_v38  ;;  %v1047_v3 = vadd.f32 %v1031_v61, %v995_v23  ;;  %v1048_v55 = vadd.f32 %v1032_v46, %v996_v40  ;;  %v1049_v52 = vadd.f32 %v1033_v44, %v997_v4  ;;  %v5538_v23 = vld [vmem:[#allocation28_spill] sm:$0xff] }
  0xc7   : > { %v1050_v34 = vadd.f32 %v1034_v16, %v998_v10  ;;  %v1051_v15 = vadd.f32 %v1035_v14, %v999_v47  ;;  %v1052_v19 = vadd.f32 %v1036_v33, %v1000_v36  ;;  %v1053_v26 = vadd.f32 %v1037_v18, %v1001_v37  ;;  %v5540_v14 = vld [vmem:[#allocation29_spill] sm:$0xff]  ;;  %v5541_v18 = vld [vmem:[#allocation30_spill] sm:$0xff] }
  0xc8   : > { %v1054_v39 = vadd.f32 %v1038_v42, %v1002_v50  ;;  %v1055_v30 = vadd.f32 %v1039_v57, %v1003_v9  ;;  %v1056_v60 = vadd.f32 %v1040_v21, %v1004_v17  ;;  %v1057_v45 = vadd.f32 %v1041_v24, %v1005_v49 }
  0xc9   : > { %v1058_v32 = vadd.f32 %v1042_v12, %v1006_v27  ;;  %v1059_v2 = vadd.f32 %v1043_v35, %v1007_v63  ;;  %v1060_v1 = vadd.f32 %v1044_v53, %v1008_v6  ;;  %v1061_v54 = vadd.f32 %v1045_v0, %v1009_v7  ;;  %v5539_v63 = vld [vmem:[#allocation9_spill] sm:$0xff] }
  0xca   : > { %v1062_v38 = vmul.f32 %v5537_v41, %v5535_v62  ;;  %v1063_v40 = vmul.f32 %v5538_v23, %v5536_v5  ;;  %v1064_v4 = vmul.f32 %v5537_v41, %v3709_v11  ;;  %v1065_v10 = vmul.f32 %v5538_v23, %v3711_v28 }
  0xcb   : > { %v1066_v47 = vmul.f32 %v5537_v41, %v3713_v20  ;;  %v1067_v36 = vmul.f32 %v5538_v23, %v3715_v43  ;;  %v1068_v37 = vmul.f32 %v5537_v41, %v3717_v58  ;;  %v1069_v50 = vmul.f32 %v5538_v23, %v3719_v31 }
  0xcc   : > { %v1070_v9 = vmul.f32 %v5537_v41, %v3721_v29  ;;  %v1071_v17 = vmul.f32 %v5538_v23, %v3723_v51  ;;  %v1072_v49 = vmul.f32 %v5537_v41, %v3725_v56  ;;  %v1073_v27 = vmul.f32 %v5538_v23, %v3727_v59 }
  0xcd   : > { %v1074_v6 = vmul.f32 %v5537_v41, %v5539_v63  ;;  %v1075_v7 = vmul.f32 %v5538_v23, %v3731_v25  ;;  %v1076_v13 = vmul.f32 %v5537_v41, %v1026_v48  ;;  %v1077_v61 = vmul.f32 %v5538_v23, %v1027_v22  ;;  %v1029_v41 = vld [vmem:[#allocation2 + $0x251] sm:$0xff] }
  0xce   : > { %v1078_v62 = vadd.f32 %v1062_v38, %v1046_v8  ;;  %v1079_v46 = vadd.f32 %v1063_v40, %v1047_v3  ;;  %v1080_v5 = vadd.f32 %v1064_v4, %v1048_v55  ;;  %v1081_v44 = vadd.f32 %v1065_v10, %v1049_v52  ;;  %v5542_v38 = vld [vmem:[#allocation33_spill] sm:$0xff]  ;;  %v5543_v40 = vld [vmem:[#allocation34_spill] sm:$0xff] }
  0xcf   : > { %v1082_v16 = vadd.f32 %v1066_v47, %v1050_v34  ;;  %v1094_v33 = vmul.f32 %v5540_v14, %v3709_v11  ;;  %v1095_v42 = vmul.f32 %v5541_v18, %v3711_v28  ;;  %v1096_v57 = vmul.f32 %v5540_v14, %v3713_v20 }
  0xd0   : > { %v1083_v21 = vadd.f32 %v1067_v36, %v1051_v15  ;;  %v1084_v24 = vadd.f32 %v1068_v37, %v1052_v19  ;;  %v1085_v12 = vadd.f32 %v1069_v50, %v1053_v26  ;;  %v1097_v35 = vmul.f32 %v5541_v18, %v3715_v43 }
  0xd1   : > { %v1086_v53 = vadd.f32 %v1070_v9, %v1054_v39  ;;  %v1087_v0 = vadd.f32 %v1071_v17, %v1055_v30  ;;  %v1098_v8 = vmul.f32 %v5540_v14, %v3717_v58  ;;  %v1099_v11 = vmul.f32 %v5541_v18, %v3719_v31  ;;  %v1028_v58 = vld [vmem:[#allocation2 + $0x249] sm:$0xff] }
  0xd2   : > { %v1088_v3 = vadd.f32 %v1072_v49, %v1056_v60  ;;  %v1089_v55 = vadd.f32 %v1073_v27, %v1057_v45  ;;  %v1090_v28 = vadd.f32 %v1074_v6, %v1058_v32  ;;  %v1100_v20 = vmul.f32 %v5540_v14, %v3721_v29 }
  0xd3   : > { %v1101_v52 = vmul.f32 %v5541_v18, %v3723_v51  ;;  %v1110_v34 = vadd.f32 %v1094_v33, %v1078_v62  ;;  %v1111_v15 = vadd.f32 %v1095_v42, %v1079_v46  ;;  %v1112_v43 = vadd.f32 %v1096_v57, %v1080_v5 }
  0xd4   : > { %v1091_v19 = vadd.f32 %v1075_v7, %v1059_v2  ;;  %v1092_v26 = vadd.f32 %v1076_v13, %v1060_v1  ;;  %v1093_v39 = vadd.f32 %v1077_v61, %v1061_v54  ;;  %v1113_v30 = vadd.f32 %v1097_v35, %v1081_v44  ;;  %v5546_v7 = vld [vmem:[#allocation38_spill] sm:$0xff] }
  0xd5   : > { %v1102_v31 = vmul.f32 %v5540_v14, %v3725_v56  ;;  %v1103_v60 = vmul.f32 %v5541_v18, %v3727_v59  ;;  %v1114_v45 = vadd.f32 %v1098_v8, %v1082_v16  ;;  %v1115_v29 = vadd.f32 %v1099_v11, %v1083_v21 }
  0xd6   : > { %v1104_v51 = vmul.f32 %v5540_v14, %v5539_v63  ;;  %v1105_v32 = vmul.f32 %v5541_v18, %v3731_v25  ;;  %v1106_v2 = vmul.f32 %v5540_v14, %v1026_v48  ;;  %v1116_v1 = vadd.f32 %v1100_v20, %v1084_v24 }
  0xd7   : > { %v1117_v54 = vadd.f32 %v1101_v52, %v1085_v12  ;;  %v1126_v23 = vmul.f32 %v5542_v38, %v1110_v34  ;;  %v1127_v4 = vmul.f32 %v5543_v40, %v1111_v15  ;;  %v1128_v56 = vmul.f32 %v5542_v38, %v1112_v43  ;;  %v5556_v52 = vld [vmem:[#allocation10_spill] sm:$0xff] }
  0xd8   : > { %v1107_v59 = vmul.f32 %v5541_v18, %v1027_v22  ;;  %v1108_v10 = vmul.f32 %v5540_v14, %v1028_v58  ;;  %v1109_v47 = vmul.f32 %v5541_v18, %v1029_v41  ;;  %v1129_v36 = vmul.f32 %v5543_v40, %v1113_v30  ;;  %v5544_v22 = vld [vmem:[#allocation35_spill] sm:$0xff] }
  0xd9   : > { %v1118_v37 = vadd.f32 %v1102_v31, %v1086_v53  ;;  %v1119_v25 = vadd.f32 %v1103_v60, %v1087_v0  ;;  %v1130_v48 = vmul.f32 %v5542_v38, %v1114_v45  ;;  %v1131_v50 = vmul.f32 %v5543_v40, %v1115_v29  ;;  %v5562_v29 = vld [vmem:[#allocation53_spill] sm:$0xff] }
  0xda   : > { %v1120_v9 = vadd.f32 %v1104_v51, %v1088_v3  ;;  %v1121_v17 = vadd.f32 %v1105_v32, %v1089_v55  ;;  %v1122_v49 = vadd.f32 %v1106_v2, %v1090_v28  ;;  %v1132_v27 = vmul.f32 %v5542_v38, %v1116_v1  ;;  %v5554_v28 = vld [vmem:[#allocation50_spill] sm:$0xff] }
  0xdb   : > { %v1133_v63 = vmul.f32 %v5543_v40, %v1117_v54  ;;  %v3832_v6 = vadd.f32 %v5544_v22, %v1126_v23  ;;  %v3835_v13 = vadd.f32 %v5546_v7, %v1127_v4  ;;  %v3838_v61 = vadd.f32 %v5544_v22, %v1128_v56  ;;  %v5566_v54 = vld [vmem:[#allocation54_spill] sm:$0xff]  ;;  %v3916_v56 = vld [vmem:[%s5205_s1 + $0x90] sm:$0xff] }
  0xdc   : > { %v1123_v62 = vadd.f32 %v1107_v59, %v1091_v19  ;;  %v1124_v46 = vadd.f32 %v1108_v10, %v1092_v26  ;;  %v1125_v5 = vadd.f32 %v1109_v47, %v1093_v39  ;;  %v3841_v44 = vadd.f32 %v5546_v7, %v1129_v36  ;;  %5567 = vst [vmem:[#allocation25_spill] sm:$0xff] %v3916_v56  ;;  %v3921_v59 = vld [vmem:[%s5205_s1 + $0x98] sm:$0xff]  ;;  %v1240_v10 = vld [vmem:[#allocation2 + $0x6] sm:$0xff] }
  0xdd   : > { %5545 = vst [vmem:[#allocation11_spill] sm:$0xff] %v3832_v6  ;;  %5547 = vst [vmem:[#allocation12_spill] sm:$0xff] %v3835_v13  ;;  %v1134_v16 = vmul.f32 %v5542_v38, %v1118_v37  ;;  %v1135_v14 = vmul.f32 %v5543_v40, %v1119_v25  ;;  %v3846_v33 = vadd.f32 %v5544_v22, %v1130_v48  ;;  %v5310_v35 = vmax.f32 %v3832_v6, 0.0  ;;  %v5569_v47 = vld [vmem:[#allocation51_spill] sm:$0xff]  ;;  %v5571_v37 = vld [vmem:[#allocation13_spill] sm:$0xff] }
  0xde   : > { %5548 = vst [vmem:[#allocation7_spill] sm:$0xff] %v3838_v61  ;;  %5549 = vst [vmem:[#allocation19_spill] sm:$0xff] %v3841_v44  ;;  %v3849_v18 = vadd.f32 %v5546_v7, %v1131_v50  ;;  %v1136_v42 = vmul.f32 %v5542_v38, %v1120_v9  ;;  %v1137_v57 = vmul.f32 %v5543_v40, %v1121_v17  ;;  %v5309_v53 = vmax.f32 %v3835_v13, 0.0  ;;  %v5572_v48 = vld [vmem:[#allocation52_spill] sm:$0xff] }
  0xdf   : > { %5550 = vst [vmem:[#allocation15_spill] sm:$0xff] %v3846_v33  ;;  %v1138_v21 = vmul.f32 %v5542_v38, %v1122_v49  ;;  %v3855_v24 = vadd.f32 %v5544_v22, %v1132_v27  ;;  %v3858_v12 = vadd.f32 %v5546_v7, %v1133_v63  ;;  %v5308_v0 = vmax.f32 %v3838_v61, 0.0  ;;  %5568 = vst [vmem:[#allocation32_spill] sm:$0xff] %v3921_v59  ;;  %v1241_v27 = vld [vmem:[#allocation2 + $0xe] sm:$0xff]  ;;  %v1242_v63 = vld [vmem:[#allocation2 + $0x26] sm:$0xff] }
  0xe0   : > { %5551 = vst [vmem:[#allocation20_spill] sm:$0xff] %v3849_v18  ;;  %v1139_v8 = vmul.f32 %v5543_v40, %v1123_v62  ;;  %v1140_v11 = vmul.f32 %v5542_v38, %v1124_v46  ;;  %v1141_v3 = vmul.f32 %v5543_v40, %v1125_v5  ;;  %v5307_v55 = vmax.f32 %v3841_v44, 0.0 }
  0xe1   : > { %5552 = vst [vmem:[#allocation16_spill] sm:$0xff] %v3855_v24  ;;  %5553 = vst [vmem:[#allocation23_spill] sm:$0xff] %v3858_v12  ;;  %v5555_v20 = vmax.f32 %v5554_v28, 0.0  ;;  %v3871_v15 = vadd.f32 %v5544_v22, %v1134_v16  ;;  %v5306_v43 = vmax.f32 %v3846_v33, 0.0  ;;  %v5305_v19 = vmax.f32 %v3849_v18, 0.0 }
  0xe2   : > { %v3876_v26 = vadd.f32 %v5546_v7, %v1135_v14  ;;  %v3879_v39 = vadd.f32 %v5544_v22, %v1136_v42  ;;  %v3882_v30 = vadd.f32 %v5546_v7, %v1137_v57  ;;  %v3885_v58 = vadd.f32 %v5544_v22, %v1138_v21  ;;  %v3946_v57 = vld [vmem:[%s5205_s1 + $0xc0] sm:$0xff]  ;;  %v3951_v21 = vld [vmem:[%s5205_s1 + $0xc8] sm:$0xff] }
  0xe3   : > { %v772_v34 = vadd.f32 %v5556_v52, %v5555_v20  ;;  %5557 = vst [vmem:[#allocation24_spill] sm:$0xff] %v3871_v15  ;;  %v5303_v41 = vmax.f32 %v3855_v24, 0.0  ;;  %v5302_v31 = vmax.f32 %v3858_v12, 0.0  ;;  %v1191_v60 = vadd.f32 %v5308_v0, %v5310_v35  ;;  %5574 = vst [vmem:[#allocation26_spill] sm:$0xff] %v3946_v57  ;;  %v1246_v52 = vld [vmem:[#allocation2 + $0x66] sm:$0xff]  ;;  %v1255_v0 = vld [vmem:[#allocation2 + $0xee] sm:$0xff] }
  0xe4   : > { %5558 = vst [vmem:[#allocation17_spill] sm:$0xff] %v3876_v26  ;;  %5559 = vst [vmem:[#allocation18_spill] sm:$0xff] %v3879_v39  ;;  %v1198_v45 = vadd.f32 %v5307_v55, %v5309_v53  ;;  %v3899_v32 = vadd.f32 %v5546_v7, %v1139_v8  ;;  %v3902_v2 = vadd.f32 %v5544_v22, %v1140_v11  ;;  %v5304_v23 = vmax.f32 %v3871_v15, 0.0  ;;  %v1243_v22 = vld [vmem:[#allocation2 + $0x2e] sm:$0xff]  ;;  %v1244_v8 = vld [vmem:[#allocation2 + $0x46] sm:$0xff] }
  0xe5   : > { %5560 = vst [vmem:[#allocation14_spill] sm:$0xff] %v3882_v30  ;;  %5561 = vst [vmem:[#allocation21_spill] sm:$0xff] %v3885_v58  ;;  %v3905_v1 = vadd.f32 %v5546_v7, %v1141_v3  ;;  %v1192_v40 = vadd.f32 %v1191_v60, %v5306_v43  ;;  %v5570_v36 = vmax.f32 %v5569_v47, 0.0  ;;  %v5573_v50 = vmax.f32 %v5572_v48, 0.0  ;;  %v1245_v11 = vld [vmem:[#allocation2 + $0x4e] sm:$0xff]  ;;  %v3956_v60 = vld [vmem:[#allocation2 + $0x86] sm:$0xff] }
  0xe6   : > { %5563 = vst [vmem:[#allocation22_spill] sm:$0xff] %v3899_v32  ;;  %5564 = vst [vmem:[#allocation8_spill] sm:$0xff] %v3902_v2  ;;  %v1199_v4 = vadd.f32 %v1198_v45, %v5305_v19  ;;  %v5311_v17 = vmax.f32 %v3876_v26, 0.0  ;;  %v5315_v49 = vmax.f32 %v3879_v39, 0.0  ;;  %v1264_v3 = vmul.f32 %v3916_v56, %v1240_v10  ;;  %v1252_v19 = vld [vmem:[#allocation2 + $0xc6] sm:$0xff]  ;;  %v3998_v39 = vld [vmem:[#allocation2 + $0x12e] sm:$0xff] }
  0xe7   : > { %5565 = vst [vmem:[#allocation31_spill] sm:$0xff] %v3905_v1  ;;  %v3926_v25 = vadd.f32 %v5571_v37, %v5570_v36  ;;  %v3930_v9 = vadd.f32 %v772_v34, %v5573_v50  ;;  %v1193_v46 = vadd.f32 %v1192_v40, %v5303_v41  ;;  %5575 = vst [vmem:[#allocation36_spill] sm:$0xff] %v3951_v21  ;;  %v1247_v34 = vld [vmem:[#allocation2 + $0x6e] sm:$0xff]  ;;  %v1250_v37 = vld [vmem:[#allocation2 + $0xa6] sm:$0xff]  ;;  %v5576_v15 = vmax.f32 %v3882_v30, 0.0 }
  0xe8   : > { %v1200_v5 = vadd.f32 %v1199_v4, %v5302_v31  ;;  %v1265_v45 = vmul.f32 %v3921_v59, %v1241_v27  ;;  %v1266_v40 = vmul.f32 %v3916_v56, %v1242_v63  ;;  %v1267_v4 = vmul.f32 %v3921_v59, %v1243_v22  ;;  %v1249_v36 = vld [vmem:[#allocation2 + $0x8e] sm:$0xff]  ;;  %v1254_v43 = vld [vmem:[#allocation2 + $0xe6] sm:$0xff]  ;;  %5580 = vst [vmem:[#allocation9_spill] sm:$0xff] %v3998_v39 }
  0xe9   : > { %v1194_v20 = vadd.f32 %v1193_v46, %v5304_v23  ;;  %v1251_v50 = vld [vmem:[#allocation2 + $0xae] sm:$0xff]  ;;  %v1268_v31 = vmul.f32 %v3916_v56, %v1244_v8  ;;  %v1269_v10 = vmul.f32 %v3921_v59, %v1245_v11  ;;  %v1270_v41 = vmul.f32 %v3916_v56, %v1246_v52 }
  0xea   : > { %v1271_v46 = vmul.f32 %v3921_v59, %v1247_v34  ;;  %v1201_v23 = vadd.f32 %v1200_v5, %v5311_v17  ;;  %v1253_v27 = vld [vmem:[#allocation2 + $0xce] sm:$0xff]  ;;  %v1272_v63 = vmul.f32 %v3916_v56, %v3956_v60  ;;  %v1273_v22 = vmul.f32 %v3921_v59, %v1249_v36 }
  0xeb   : > { %v1274_v55 = vmul.f32 %v3916_v56, %v1250_v37  ;;  %v1275_v53 = vmul.f32 %v3921_v59, %v1251_v50  ;;  %v1276_v35 = vmul.f32 %v3916_v56, %v1252_v19  ;;  %v1277_v42 = vmul.f32 %v3921_v59, %v1253_v27 }
  0xec   : > { %v1278_v14 = vmul.f32 %v3916_v56, %v1254_v43  ;;  %v1195_v5 = vadd.f32 %v1194_v20, %v5315_v49  ;;  %v1279_v17 = vmul.f32 %v3921_v59, %v1255_v0  ;;  %v1296_v38 = vmul.f32 %v3946_v57, %v1244_v8  ;;  %v3989_v20 = vld [vmem:[#allocation2 + $0x106] sm:$0xff]  ;;  %v4018_v59 = vld [vmem:[%s5205_s1 + $0xf0] sm:$0xff] }
  0xed   : > { %v1297_v51 = vmul.f32 %v3951_v21, %v1245_v11  ;;  %v1298_v16 = vmul.f32 %v3946_v57, %v1246_v52  ;;  %v1299_v62 = vmul.f32 %v3951_v21, %v1247_v34  ;;  %v1300_v7 = vmul.f32 %v3946_v57, %v3956_v60  ;;  %5577 = vst [vmem:[#allocation37_spill] sm:$0xff] %v3989_v20  ;;  %v3994_v52 = vld [vmem:[#allocation2 + $0x10e] sm:$0xff]  ;;  %v3996_v34 = vld [vmem:[#allocation2 + $0x126] sm:$0xff] }
  0xee   : > { %v1301_v26 = vmul.f32 %v3951_v21, %v1249_v36  ;;  %v3987_v12 = vadd.f32 %v1201_v23, %v5576_v15  ;;  %v1302_v49 = vmul.f32 %v3946_v57, %v1250_v37  ;;  %v1303_v8 = vmul.f32 %v3951_v21, %v1251_v50  ;;  %5578 = vst [vmem:[#allocation27_spill] sm:$0xff] %v3994_v52 }
  0xef   : > { %v1304_v11 = vmul.f32 %v3946_v57, %v1252_v19  ;;  %5579 = vst [vmem:[#allocation28_spill] sm:$0xff] %v3996_v34  ;;  %v1305_v24 = vmul.f32 %v3951_v21, %v1253_v27  ;;  %v1306_v30 = vmul.f32 %v3946_v57, %v1254_v43  ;;  %v1307_v15 = vmul.f32 %v3951_v21, %v1255_v0 }
  0xf0   : > { %v1308_v23 = vmul.f32 %v3946_v57, %v3989_v20  ;;  %v5581_v18 = vmax.f32 %v3885_v58, 0.0  ;;  %v1309_v44 = vmul.f32 %v3951_v21, %v3994_v52  ;;  %v1310_v61 = vmul.f32 %v3946_v57, %v3996_v34  ;;  %5583 = vst [vmem:[#allocation30_spill] sm:$0xff] %v4018_v59 }
  0xf1   : > { %v1311_v13 = vmul.f32 %v3951_v21, %v3998_v39  ;;  %v1312_v6 = vadd.f32 %v1296_v38, %v1264_v3  ;;  %v1313_v48 = vadd.f32 %v1297_v51, %v1265_v45  ;;  %v1314_v47 = vadd.f32 %v1298_v16, %v1266_v40 }
  0xf2   : > { %v4007_v33 = vadd.f32 %v1195_v5, %v5581_v18  ;;  %v1315_v28 = vadd.f32 %v1299_v62, %v1267_v4  ;;  %v4023_v18 = vld [vmem:[%s5205_s1 + $0xf8] sm:$0xff]  ;;  %v1316_v5 = vadd.f32 %v1300_v7, %v1268_v31  ;;  %v1317_v58 = vadd.f32 %v1301_v26, %v1269_v10  ;;  %v4030_v26 = vld [vmem:[#allocation2 + $0x146] sm:$0xff] }
  0xf3   : > { %5584 = vst [vmem:[#allocation33_spill] sm:$0xff] %v4023_v18  ;;  %v1318_v57 = vadd.f32 %v1302_v49, %v1270_v41  ;;  %v1319_v56 = vadd.f32 %v1303_v8, %v1271_v46  ;;  %v1320_v1 = vadd.f32 %v1304_v11, %v1272_v63  ;;  %v1321_v21 = vadd.f32 %v1305_v24, %v1273_v22  ;;  %v1360_v10 = vld [vmem:[#allocation2 + $0x8] sm:$0xff]  ;;  %v1361_v8 = vld [vmem:[#allocation2 + $0x10] sm:$0xff] }
  0xf4   : > { %5582 = vst [vmem:[#allocation29_spill] sm:$0xff] %v4007_v33  ;;  %v1322_v38 = vadd.f32 %v1306_v30, %v1274_v55  ;;  %v1323_v51 = vadd.f32 %v1307_v15, %v1275_v53  ;;  %v1324_v16 = vadd.f32 %v1308_v23, %v1276_v35  ;;  %v1325_v62 = vadd.f32 %v1309_v44, %v1277_v42  ;;  %v4038_v44 = vld [vmem:[#allocation2 + $0x166] sm:$0xff]  ;;  %v4040_v53 = vld [vmem:[#allocation2 + $0x16e] sm:$0xff] }
  0xf5   : > { %v1326_v3 = vadd.f32 %v1310_v61, %v1278_v14  ;;  %v1327_v45 = vadd.f32 %v1311_v13, %v1279_v17  ;;  %v1328_v40 = vmul.f32 %v4018_v59, %v3956_v60  ;;  %v1329_v4 = vmul.f32 %v4023_v18, %v1249_v36  ;;  %5585 = vst [vmem:[#allocation34_spill] sm:$0xff] %v4030_v26  ;;  %v4036_v13 = vld [vmem:[#allocation2 + $0x14e] sm:$0xff]  ;;  %v4061_v14 = vld [vmem:[%s5205_s1 + $0xa0] sm:$0xff] }
  0xf6   : > { %v1330_v33 = vmul.f32 %v4018_v59, %v1250_v37  ;;  %v1331_v31 = vmul.f32 %v4023_v18, %v1251_v50  ;;  %v1332_v41 = vmul.f32 %v4018_v59, %v1252_v19  ;;  %v1333_v24 = vmul.f32 %v4023_v18, %v1253_v27  ;;  %5586 = vst [vmem:[#allocation35_spill] sm:$0xff] %v4036_v13  ;;  %v4066_v42 = vld [vmem:[%s5205_s1 + $0xa8] sm:$0xff]  ;;  %v1363_v15 = vld [vmem:[#allocation2 + $0x30] sm:$0xff] }
  0xf7   : > { %v1334_v35 = vmul.f32 %v4018_v59, %v1254_v43  ;;  %v1335_v61 = vmul.f32 %v4023_v18, %v1255_v0  ;;  %5587 = vst [vmem:[#allocation38_spill] sm:$0xff] %v4038_v44  ;;  %5588 = vst [vmem:[#allocation10_spill] sm:$0xff] %v4040_v53  ;;  %v1336_v55 = vmul.f32 %v4018_v59, %v3989_v20  ;;  %v1362_v11 = vld [vmem:[#allocation2 + $0x28] sm:$0xff] }
  0xf8   : > { %v1337_v30 = vmul.f32 %v4023_v18, %v3994_v52  ;;  %v1338_v19 = vmul.f32 %v4018_v59, %v3996_v34  ;;  %v1339_v43 = vmul.f32 %v4023_v18, %v3998_v39  ;;  %v1340_v0 = vmul.f32 %v4018_v59, %v4030_v26  ;;  %5589 = vst [vmem:[#allocation13_spill] sm:$0xff] %v4061_v14 }
  0xf9   : > { %v1341_v17 = vmul.f32 %v4023_v18, %v4036_v13  ;;  %v1342_v49 = vmul.f32 %v4018_v59, %v4038_v44  ;;  %v1343_v7 = vmul.f32 %v4023_v18, %v4040_v53  ;;  %5590 = vst [vmem:[#allocation55_spill] sm:$0xff] %v4066_v42  ;;  %v1344_v60 = vadd.f32 %v1328_v40, %v1312_v6  ;;  %v1364_v44 = vld [vmem:[#allocation2 + $0x48] sm:$0xff]  ;;  %v1365_v13 = vld [vmem:[#allocation2 + $0x50] sm:$0xff] }
  0xfa   : > { %v1345_v36 = vadd.f32 %v1329_v4, %v1313_v48  ;;  %v1346_v37 = vadd.f32 %v1330_v33, %v1314_v47  ;;  %v1347_v50 = vadd.f32 %v1331_v31, %v1315_v28  ;;  %v1348_v46 = vadd.f32 %v1332_v41, %v1316_v5  ;;  %v1366_v33 = vld [vmem:[#allocation2 + $0x68] sm:$0xff]  ;;  %v1367_v28 = vld [vmem:[#allocation2 + $0x70] sm:$0xff] }
  0xfb   : > { %v1349_v27 = vadd.f32 %v1333_v24, %v1317_v58  ;;  %v1350_v63 = vadd.f32 %v1334_v35, %v1318_v57  ;;  %v1351_v22 = vadd.f32 %v1335_v61, %v1319_v56  ;;  %v1352_v23 = vadd.f32 %v1336_v55, %v1320_v1  ;;  %v4068_v47 = vld [vmem:[#allocation2 + $0x88] sm:$0xff]  ;;  %v4070_v58 = vld [vmem:[#allocation2 + $0x90] sm:$0xff] }
  0xfc   : > { %v1353_v18 = vadd.f32 %v1337_v30, %v1321_v21  ;;  %v1354_v59 = vadd.f32 %v1338_v19, %v1322_v38  ;;  %v1355_v53 = vadd.f32 %v1339_v43, %v1323_v51  ;;  %v1356_v26 = vadd.f32 %v1340_v0, %v1324_v16  ;;  %v4076_v5 = vld [vmem:[#allocation2 + $0xa8] sm:$0xff]  ;;  %v4078_v38 = vld [vmem:[#allocation2 + $0xb0] sm:$0xff] }
  0xfd   : > { %v1357_v39 = vadd.f32 %v1341_v17, %v1325_v62  ;;  %v1358_v6 = vadd.f32 %v1342_v49, %v1326_v3  ;;  %v1359_v48 = vadd.f32 %v1343_v7, %v1327_v45  ;;  %v1384_v56 = vmul.f32 %v4061_v14, %v1360_v10  ;;  %v4080_v51 = vld [vmem:[#allocation2 + $0xc8] sm:$0xff]  ;;  %v4086_v40 = vld [vmem:[#allocation2 + $0xd0] sm:$0xff] }
  0xfe   : > { %v1385_v57 = vmul.f32 %v4066_v42, %v1361_v8  ;;  %v1386_v1 = vmul.f32 %v4061_v14, %v1362_v11  ;;  %v1387_v21 = vmul.f32 %v4066_v42, %v1363_v15  ;;  %v1388_v16 = vmul.f32 %v4061_v14, %v1364_v44  ;;  %v4088_v4 = vld [vmem:[#allocation2 + $0xe8] sm:$0xff]  ;;  %v4090_v31 = vld [vmem:[#allocation2 + $0xf0] sm:$0xff]  ;;  %v4116_v8 = vld [vmem:[%s5205_s1 + $0xd8] sm:$0xff] }
  0xff   : > { %v1389_v62 = vmul.f32 %v4066_v42, %v1365_v13  ;;  %v1390_v3 = vmul.f32 %v4061_v14, %v1366_v33  ;;  %v1391_v45 = vmul.f32 %v4066_v42, %v1367_v28  ;;  %v1392_v41 = vmul.f32 %v4061_v14, %v4068_v47  ;;  %v4111_v10 = vld [vmem:[%s5205_s1 + $0xd0] sm:$0xff]  ;;  %5592 = vst [vmem:[#allocation57_spill] sm:$0xff] %v4116_v8 }
 0x100   : > { %v1393_v24 = vmul.f32 %v4066_v42, %v4070_v58  ;;  %v1394_v35 = vmul.f32 %v4061_v14, %v4076_v5  ;;  %v1395_v61 = vmul.f32 %v4066_v42, %v4078_v38  ;;  %v1396_v55 = vmul.f32 %v4061_v14, %v4080_v51  ;;  %5591 = vst [vmem:[#allocation56_spill] sm:$0xff] %v4111_v10 }
 0x101   : > { %v1397_v30 = vmul.f32 %v4066_v42, %v4086_v40  ;;  %v1398_v19 = vmul.f32 %v4061_v14, %v4088_v4  ;;  %v1399_v43 = vmul.f32 %v4066_v42, %v4090_v31  ;;  %v1400_v0 = vadd.f32 %v1384_v56, %v1344_v60 }
 0x102   : > { %v1401_v17 = vadd.f32 %v1385_v57, %v1345_v36  ;;  %v1402_v49 = vadd.f32 %v1386_v1, %v1346_v37  ;;  %v1403_v7 = vadd.f32 %v1387_v21, %v1347_v50  ;;  %v1404_v11 = vadd.f32 %v1388_v16, %v1348_v46  ;;  %v4122_v46 = vld [vmem:[#allocation2 + $0x108] sm:$0xff] }
 0x103   : > { %v1405_v15 = vadd.f32 %v1389_v62, %v1349_v27  ;;  %v1406_v14 = vadd.f32 %v1390_v3, %v1350_v63  ;;  %v1407_v34 = vadd.f32 %v1391_v45, %v1351_v22  ;;  %v1408_v52 = vadd.f32 %v1392_v41, %v1352_v23  ;;  %5593 = vst [vmem:[#allocation58_spill] sm:$0xff] %v4122_v46  ;;  %v4157_v41 = vld [vmem:[%s5205_s1 + $0x100] sm:$0xff] }
 0x104   : > { %v1409_v42 = vadd.f32 %v1393_v24, %v1353_v18  ;;  %v1410_v60 = vadd.f32 %v1394_v35, %v1354_v59  ;;  %v1411_v36 = vadd.f32 %v1395_v61, %v1355_v53  ;;  %v1412_v37 = vadd.f32 %v1396_v55, %v1356_v26  ;;  %v4132_v26 = vld [vmem:[#allocation2 + $0x110] sm:$0xff]  ;;  %5597 = vst [vmem:[#allocation62_spill] sm:$0xff] %v4157_v41  ;;  %v4162_v24 = vld [vmem:[%s5205_s1 + $0x108] sm:$0xff] }
 0x105   : > { %v1413_v50 = vadd.f32 %v1397_v30, %v1357_v39  ;;  %v1414_v56 = vadd.f32 %v1398_v19, %v1358_v6  ;;  %v1415_v57 = vadd.f32 %v1399_v43, %v1359_v48  ;;  %v1416_v1 = vmul.f32 %v4111_v10, %v1364_v44  ;;  %5594 = vst [vmem:[#allocation59_spill] sm:$0xff] %v4132_v26  ;;  %v4136_v44 = vld [vmem:[#allocation2 + $0x130] sm:$0xff] }
 0x106   : > { %v1417_v21 = vmul.f32 %v4116_v8, %v1365_v13  ;;  %v1418_v20 = vmul.f32 %v4111_v10, %v1366_v33  ;;  %v1419_v2 = vmul.f32 %v4116_v8, %v1367_v28  ;;  %v1420_v27 = vmul.f32 %v4111_v10, %v4068_v47  ;;  %v4134_v13 = vld [vmem:[#allocation2 + $0x128] sm:$0xff]  ;;  %5596 = vst [vmem:[#allocation61_spill] sm:$0xff] %v4136_v44 }
 0x107   : > { %v1421_v59 = vmul.f32 %v4116_v8, %v4070_v58  ;;  %v1422_v39 = vmul.f32 %v4111_v10, %v4076_v5  ;;  %v1423_v18 = vmul.f32 %v4116_v8, %v4078_v38  ;;  %5595 = vst [vmem:[#allocation60_spill] sm:$0xff] %v4134_v13  ;;  %v1424_v53 = vmul.f32 %v4111_v10, %v4080_v51 }
 0x108   : > { %v1425_v63 = vmul.f32 %v4116_v8, %v4086_v40  ;;  %v1426_v22 = vmul.f32 %v4111_v10, %v4088_v4  ;;  %v1427_v23 = vmul.f32 %v4116_v8, %v4090_v31  ;;  %v1428_v6 = vmul.f32 %v4111_v10, %v4122_v46  ;;  %5598 = vst [vmem:[#allocation63_spill] sm:$0xff] %v4162_v24 }
 0x109   : > { %v1429_v48 = vmul.f32 %v4116_v8, %v4132_v26  ;;  %v1430_v33 = vmul.f32 %v4111_v10, %v4134_v13  ;;  %v1431_v28 = vmul.f32 %v4116_v8, %v4136_v44  ;;  %v1432_v16 = vadd.f32 %v1416_v1, %v1400_v0  ;;  %v1484_v8 = vld [vmem:[#allocation2 + $0x4a] sm:$0xff]  ;;  %v1485_v10 = vld [vmem:[#allocation2 + $0x52] sm:$0xff] }
 0x10a   : > { %v1433_v62 = vadd.f32 %v1417_v21, %v1401_v17  ;;  %v1434_v3 = vadd.f32 %v1418_v20, %v1402_v49  ;;  %v1435_v45 = vadd.f32 %v1419_v2, %v1403_v7  ;;  %v1436_v35 = vadd.f32 %v1420_v27, %v1404_v11 }
 0x10b   : > { %v1437_v61 = vadd.f32 %v1421_v59, %v1405_v15  ;;  %v1438_v55 = vadd.f32 %v1422_v39, %v1406_v14  ;;  %v1439_v30 = vadd.f32 %v1423_v18, %v1407_v34  ;;  %v1440_v19 = vadd.f32 %v1424_v53, %v1408_v52  ;;  %v4180_v15 = vld [vmem:[#allocation2 + $0x148] sm:$0xff] }
 0x10c   : > { %v1441_v43 = vadd.f32 %v1425_v63, %v1409_v42  ;;  %v1442_v0 = vadd.f32 %v1426_v22, %v1410_v60  ;;  %v1443_v17 = vadd.f32 %v1427_v23, %v1411_v36  ;;  %v1444_v20 = vadd.f32 %v1428_v6, %v1412_v37  ;;  %5599 = vst [vmem:[#allocation64_spill] sm:$0xff] %v4180_v15  ;;  %v2797_v60 = vld [vmem:[#allocation2 + $0x168] sm:$0xff]  ;;  %v2798_v37 = vld [vmem:[#allocation2 + $0x170] sm:$0xff] }
 0x10d   : > { %v1445_v2 = vadd.f32 %v1429_v48, %v1413_v50  ;;  %v1446_v49 = vadd.f32 %v1430_v33, %v1414_v56  ;;  %v1447_v7 = vadd.f32 %v1431_v28, %v1415_v57  ;;  %v1448_v1 = vmul.f32 %v4157_v41, %v4068_v47  ;;  %v4201_v56 = vld [vmem:[%s5205_s1 + $0xb0] sm:$0xff]  ;;  %v4206_v57 = vld [vmem:[%s5205_s1 + $0xb8] sm:$0xff] }
 0x10e   : > { %v1449_v21 = vmul.f32 %v4162_v24, %v4070_v58  ;;  %v1450_v11 = vmul.f32 %v4157_v41, %v4076_v5  ;;  %v1451_v34 = vmul.f32 %v4162_v24, %v4078_v38  ;;  %v1452_v52 = vmul.f32 %v4157_v41, %v4080_v51  ;;  %v4182_v58 = vld [vmem:[#allocation2 + $0x150] sm:$0xff]  ;;  %5601 = vst [vmem:[#allocation66_spill] sm:$0xff] %v4201_v56 }
 0x10f   : > { %v1453_v14 = vmul.f32 %v4162_v24, %v4086_v40  ;;  %v1454_v42 = vmul.f32 %v4157_v41, %v4088_v4  ;;  %v1455_v47 = vmul.f32 %v4162_v24, %v4090_v31  ;;  %5600 = vst [vmem:[#allocation65_spill] sm:$0xff] %v4182_v58  ;;  %v1456_v5 = vmul.f32 %v4157_v41, %v4122_v46  ;;  %v1480_v53 = vld [vmem:[#allocation2 + $0xa] sm:$0xff]  ;;  %v1481_v48 = vld [vmem:[#allocation2 + $0x12] sm:$0xff] }
 0x110   : > { %v1457_v38 = vmul.f32 %v4162_v24, %v4132_v26  ;;  %v1458_v51 = vmul.f32 %v4157_v41, %v4134_v13  ;;  %v1459_v40 = vmul.f32 %v4162_v24, %v4136_v44  ;;  %v1460_v4 = vmul.f32 %v4157_v41, %v4180_v15  ;;  %5602 = vst [vmem:[#allocation67_spill] sm:$0xff] %v4206_v57  ;;  %v1482_v33 = vld [vmem:[#allocation2 + $0x2a] sm:$0xff]  ;;  %v1483_v28 = vld [vmem:[#allocation2 + $0x32] sm:$0xff] }
 0x111   : > { %v1461_v31 = vmul.f32 %v4162_v24, %v4182_v58  ;;  %v1462_v36 = vmul.f32 %v2797_v60, %v4157_v41  ;;  %v1463_v50 = vmul.f32 %v2798_v37, %v4162_v24  ;;  %v1464_v27 = vadd.f32 %v1448_v1, %v1432_v16  ;;  %v4208_v1 = vld [vmem:[#allocation2 + $0x8a] sm:$0xff] }
 0x112   : > { %v1465_v59 = vadd.f32 %v1449_v21, %v1433_v62  ;;  %v1466_v39 = vadd.f32 %v1450_v11, %v1434_v3  ;;  %v1467_v18 = vadd.f32 %v1451_v34, %v1435_v45  ;;  %v1468_v63 = vadd.f32 %v1452_v52, %v1436_v35  ;;  %v1486_v3 = vld [vmem:[#allocation2 + $0x6a] sm:$0xff]  ;;  %v1487_v45 = vld [vmem:[#allocation2 + $0x72] sm:$0xff] }
 0x113   : > { %v1469_v22 = vadd.f32 %v1453_v14, %v1437_v61  ;;  %v1470_v23 = vadd.f32 %v1454_v42, %v1438_v55  ;;  %v1471_v6 = vadd.f32 %v1455_v47, %v1439_v30  ;;  %v1472_v60 = vadd.f32 %v1456_v5, %v1440_v19  ;;  %v4210_v35 = vld [vmem:[#allocation2 + $0x92] sm:$0xff]  ;;  %v4228_v11 = vld [vmem:[#allocation2 + $0xea] sm:$0xff] }
 0x114   : > { %v1473_v37 = vadd.f32 %v1457_v38, %v1441_v43  ;;  %v1474_v24 = vadd.f32 %v1458_v51, %v1442_v0  ;;  %v1475_v41 = vadd.f32 %v1459_v40, %v1443_v17  ;;  %v1476_v58 = vadd.f32 %v1460_v4, %v1444_v20  ;;  %v4216_v43 = vld [vmem:[#allocation2 + $0xaa] sm:$0xff]  ;;  %v4218_v0 = vld [vmem:[#allocation2 + $0xb2] sm:$0xff] }
 0x115   : > { %v1477_v15 = vadd.f32 %v1461_v31, %v1445_v2  ;;  %v1478_v16 = vadd.f32 %v1462_v36, %v1446_v49  ;;  %v1479_v62 = vadd.f32 %v1463_v50, %v1447_v7  ;;  %v1504_v61 = vmul.f32 %v4201_v56, %v1480_v53  ;;  %v4220_v17 = vld [vmem:[#allocation2 + $0xca] sm:$0xff]  ;;  %v4226_v21 = vld [vmem:[#allocation2 + $0xd2] sm:$0xff]  ;;  %v4251_v53 = vld [vmem:[%s5205_s1 + $0xe0] sm:$0xff] }
 0x116   : > { %v1505_v55 = vmul.f32 %v4206_v57, %v1481_v48  ;;  %v1506_v30 = vmul.f32 %v4201_v56, %v1482_v33  ;;  %v1507_v19 = vmul.f32 %v4206_v57, %v1483_v28  ;;  %v1508_v20 = vmul.f32 %v4201_v56, %v1484_v8  ;;  %v4230_v34 = vld [vmem:[#allocation2 + $0xf2] sm:$0xff]  ;;  %5603 = vst [vmem:[#allocation68_spill] sm:$0xff] %v4251_v53  ;;  %v4256_v48 = vld [vmem:[%s5205_s1 + $0xe8] sm:$0xff] }
 0x117   : > { %v1509_v2 = vmul.f32 %v4206_v57, %v1485_v10  ;;  %v1510_v49 = vmul.f32 %v4201_v56, %v1486_v3  ;;  %v1511_v7 = vmul.f32 %v4206_v57, %v1487_v45  ;;  %v1512_v52 = vmul.f32 %v4201_v56, %v4208_v1  ;;  %5604 = vst [vmem:[#allocation69_spill] sm:$0xff] %v4256_v48 }
 0x118   : > { %v1513_v14 = vmul.f32 %v4206_v57, %v4210_v35  ;;  %v1514_v42 = vmul.f32 %v4201_v56, %v4216_v43  ;;  %v1515_v47 = vmul.f32 %v4206_v57, %v4218_v0  ;;  %v1516_v5 = vmul.f32 %v4201_v56, %v4220_v17 }
 0x119   : > { %v1517_v38 = vmul.f32 %v4206_v57, %v4226_v21  ;;  %v1518_v51 = vmul.f32 %v4201_v56, %v4228_v11  ;;  %v1519_v40 = vmul.f32 %v4206_v57, %v4230_v34  ;;  %v1520_v4 = vadd.f32 %v1504_v61, %v1464_v27 }
 0x11a   : > { %v1521_v31 = vadd.f32 %v1505_v55, %v1465_v59  ;;  %v1522_v36 = vadd.f32 %v1506_v30, %v1466_v39  ;;  %v1523_v50 = vadd.f32 %v1507_v19, %v1467_v18  ;;  %v1524_v33 = vadd.f32 %v1508_v20, %v1468_v63  ;;  %v4265_v63 = vld [vmem:[%s5205_s1 + $0x110] sm:$0xff] }
 0x11b   : > { %v1525_v28 = vadd.f32 %v1509_v2, %v1469_v22  ;;  %v1526_v56 = vadd.f32 %v1510_v49, %v1470_v23  ;;  %v1527_v44 = vadd.f32 %v1511_v7, %v1471_v6  ;;  %v1528_v13 = vadd.f32 %v1512_v52, %v1472_v60  ;;  %5605 = vst [vmem:[#allocation70_spill] sm:$0xff] %v4265_v63  ;;  %v4282_v22 = vld [vmem:[#allocation2 + $0x112] sm:$0xff]  ;;  %v4284_v23 = vld [vmem:[#allocation2 + $0x12a] sm:$0xff] }
 0x11c   : > { %v1529_v57 = vadd.f32 %v1513_v14, %v1473_v37  ;;  %v1530_v27 = vadd.f32 %v1514_v42, %v1474_v24  ;;  %v1531_v59 = vadd.f32 %v1515_v47, %v1475_v41  ;;  %v1532_v39 = vadd.f32 %v1516_v5, %v1476_v58  ;;  %v4270_v41 = vld [vmem:[%s5205_s1 + $0x118] sm:$0xff]  ;;  %v4272_v24 = vld [vmem:[#allocation2 + $0x10a] sm:$0xff]  ;;  %5608 = vst [vmem:[#allocation73_spill] sm:$0xff] %v4282_v22 }
 0x11d   : > { %v1533_v18 = vadd.f32 %v1517_v38, %v1477_v15  ;;  %v1534_v61 = vadd.f32 %v1518_v51, %v1478_v16  ;;  %v1535_v55 = vadd.f32 %v1519_v40, %v1479_v62  ;;  %v1536_v30 = vmul.f32 %v4251_v53, %v1484_v8  ;;  %5606 = vst [vmem:[#allocation71_spill] sm:$0xff] %v4270_v41  ;;  %v4286_v6 = vld [vmem:[#allocation2 + $0x132] sm:$0xff] }
 0x11e   : > { %v1537_v19 = vmul.f32 %v4256_v48, %v1485_v10  ;;  %v1538_v26 = vmul.f32 %v4251_v53, %v1486_v3  ;;  %v1539_v46 = vmul.f32 %v4256_v48, %v1487_v45  ;;  %5607 = vst [vmem:[#allocation72_spill] sm:$0xff] %v4272_v24  ;;  %v1540_v8 = vmul.f32 %v4251_v53, %v4208_v1 }
 0x11f   : > { %v1541_v10 = vmul.f32 %v4256_v48, %v4210_v35  ;;  %v1542_v15 = vmul.f32 %v4251_v53, %v4216_v43  ;;  %v1543_v58 = vmul.f32 %v4256_v48, %v4218_v0  ;;  %5609 = vst [vmem:[#allocation74_spill] sm:$0xff] %v4284_v23  ;;  %5610 = vst [vmem:[#allocation75_spill] sm:$0xff] %v4286_v6 }
 0x120   : > { %v1544_v60 = vmul.f32 %v4251_v53, %v4220_v17  ;;  %v1545_v37 = vmul.f32 %v4256_v48, %v4226_v21  ;;  %v1546_v16 = vmul.f32 %v4251_v53, %v4228_v11  ;;  %v1547_v62 = vmul.f32 %v4256_v48, %v4230_v34 }
 0x121   : > { %v1548_v3 = vmul.f32 %v4251_v53, %v4272_v24  ;;  %v1549_v45 = vmul.f32 %v4256_v48, %v4282_v22  ;;  %v1550_v20 = vmul.f32 %v4251_v53, %v4284_v23  ;;  %v1551_v2 = vmul.f32 %v4256_v48, %v4286_v6 }
 0x122   : > { %v1552_v49 = vadd.f32 %v1536_v30, %v1520_v4  ;;  %v1553_v7 = vadd.f32 %v1537_v19, %v1521_v31  ;;  %v1554_v52 = vadd.f32 %v1538_v26, %v1522_v36  ;;  %v1555_v14 = vadd.f32 %v1539_v46, %v1523_v50 }
 0x123   : > { %v1556_v42 = vadd.f32 %v1540_v8, %v1524_v33  ;;  %v1568_v47 = vmul.f32 %v4265_v63, %v4208_v1  ;;  %v1569_v5 = vmul.f32 %v4270_v41, %v4210_v35  ;;  %v1570_v38 = vmul.f32 %v4265_v63, %v4216_v43  ;;  %v4346_v8 = vld [vmem:[#allocation2 + $0x172] sm:$0xff] }
 0x124   : > { %v1557_v51 = vadd.f32 %v1541_v10, %v1525_v28  ;;  %v1558_v40 = vadd.f32 %v1542_v15, %v1526_v56  ;;  %v1559_v53 = vadd.f32 %v1543_v58, %v1527_v44  ;;  %v1571_v48 = vmul.f32 %v4270_v41, %v4218_v0  ;;  %v4330_v28 = vld [vmem:[#allocation2 + $0x14a] sm:$0xff]  ;;  %5616 = vst [vmem:[#allocation81_spill] sm:$0xff] %v4346_v8 }
 0x125   : > { %v1560_v4 = vadd.f32 %v1544_v60, %v1528_v13  ;;  %v1561_v31 = vadd.f32 %v1545_v37, %v1529_v57  ;;  %v1572_v46 = vmul.f32 %v4265_v63, %v4220_v17  ;;  %v1573_v26 = vmul.f32 %v4270_v41, %v4226_v21  ;;  %v4323_v13 = vld [vmem:[%s5205_s1 + $0x130] sm:$0xff]  ;;  %v4328_v57 = vld [vmem:[%s5205_s1 + $0x138] sm:$0xff]  ;;  %5613 = vst [vmem:[#allocation78_spill] sm:$0xff] %v4330_v28 }
 0x126   : > { %v1562_v1 = vadd.f32 %v1546_v16, %v1530_v27  ;;  %v1563_v36 = vadd.f32 %v1547_v62, %v1531_v59  ;;  %v1564_v35 = vadd.f32 %v1548_v3, %v1532_v39  ;;  %v1574_v43 = vmul.f32 %v4265_v63, %v4228_v11  ;;  %5611 = vst [vmem:[#allocation76_spill] sm:$0xff] %v4323_v13  ;;  %v4354_v37 = vld [vmem:[%s5205_s1 + $0x150] sm:$0xff]  ;;  %v4359_v16 = vld [vmem:[%s5205_s1 + $0x158] sm:$0xff] }
 0x127   : > { %v1575_v44 = vmul.f32 %v4270_v41, %v4230_v34  ;;  %v1584_v56 = vadd.f32 %v1568_v47, %v1552_v49  ;;  %v1585_v50 = vadd.f32 %v1569_v5, %v1553_v7  ;;  %v1586_v0 = vadd.f32 %v1570_v38, %v1554_v52  ;;  %5612 = vst [vmem:[#allocation77_spill] sm:$0xff] %v4328_v57 }
 0x128   : > { %v1565_v17 = vadd.f32 %v1549_v45, %v1533_v18  ;;  %v1566_v21 = vadd.f32 %v1550_v20, %v1534_v61  ;;  %v1567_v33 = vadd.f32 %v1551_v2, %v1535_v55  ;;  %v1587_v11 = vadd.f32 %v1571_v48, %v1555_v14  ;;  %v4342_v61 = vld [vmem:[#allocation2 + $0x152] sm:$0xff]  ;;  %v4344_v55 = vld [vmem:[#allocation2 + $0x16a] sm:$0xff]  ;;  %5617 = vst [vmem:[#allocation82_spill] sm:$0xff] %v4354_v37 }
 0x129   : > { %v1576_v34 = vmul.f32 %v4265_v63, %v4272_v24  ;;  %v1577_v27 = vmul.f32 %v4270_v41, %v4282_v22  ;;  %v1588_v59 = vadd.f32 %v1572_v46, %v1556_v42  ;;  %v1589_v39 = vadd.f32 %v1573_v26, %v1557_v51  ;;  %5614 = vst [vmem:[#allocation79_spill] sm:$0xff] %v4342_v61  ;;  %v1703_v22 = vld [vmem:[#allocation2 + $0x24e] sm:$0xff] }
 0x12a   : > { %v1578_v30 = vmul.f32 %v4265_v63, %v4284_v23  ;;  %v1579_v19 = vmul.f32 %v4270_v41, %v4286_v6  ;;  %v1580_v18 = vmul.f32 %v4265_v63, %v4330_v28  ;;  %v1590_v48 = vadd.f32 %v1574_v43, %v1558_v40  ;;  %5615 = vst [vmem:[#allocation80_spill] sm:$0xff] %v4344_v55  ;;  %v1702_v23 = vld [vmem:[#allocation2 + $0x246] sm:$0xff] }
 0x12b   : > { %v1591_v10 = vadd.f32 %v1575_v44, %v1559_v53  ;;  %v1600_v15 = vmul.f32 %v4323_v13, %v1584_v56  ;;  %v1601_v58 = vmul.f32 %v4328_v57, %v1585_v50  ;;  %v1602_v60 = vmul.f32 %v4323_v13, %v1586_v0  ;;  %5618 = vst [vmem:[#allocation83_spill] sm:$0xff] %v4359_v16 }
 0x12c   : > { %v1581_v62 = vmul.f32 %v4270_v41, %v4342_v61  ;;  %v1582_v53 = vmul.f32 %v4265_v63, %v4344_v55  ;;  %v1583_v3 = vmul.f32 %v4270_v41, %v4346_v8  ;;  %v1603_v45 = vmul.f32 %v4328_v57, %v1587_v11 }
 0x12d   : > { %v1592_v20 = vadd.f32 %v1576_v34, %v1560_v4  ;;  %v1593_v2 = vadd.f32 %v1577_v27, %v1561_v31  ;;  %v1604_v49 = vmul.f32 %v4323_v13, %v1588_v59  ;;  %v1605_v7 = vmul.f32 %v4328_v57, %v1589_v39 }
 0x12e   : > { %v1594_v52 = vadd.f32 %v1578_v30, %v1562_v1  ;;  %v1595_v14 = vadd.f32 %v1579_v19, %v1563_v36  ;;  %v1596_v42 = vadd.f32 %v1580_v18, %v1564_v35  ;;  %v1606_v47 = vmul.f32 %v4323_v13, %v1590_v48 }
 0x12f   : > { %v1607_v5 = vmul.f32 %v4328_v57, %v1591_v10  ;;  %v4373_v38 = vadd.f32 %v4354_v37, %v1600_v15  ;;  %v4376_v51 = vadd.f32 %v4359_v16, %v1601_v58  ;;  %v4379_v40 = vadd.f32 %v4354_v37, %v1602_v60 }
 0x130   : > { %v1597_v4 = vadd.f32 %v1581_v62, %v1565_v17  ;;  %v1598_v31 = vadd.f32 %v1582_v53, %v1566_v21  ;;  %v1599_v46 = vadd.f32 %v1583_v3, %v1567_v33  ;;  %v4382_v26 = vadd.f32 %v4359_v16, %v1603_v45 }
 0x131   : > { %5619 = vst [vmem:[#allocation84_spill] sm:$0xff] %v4373_v38  ;;  %5620 = vst [vmem:[#allocation85_spill] sm:$0xff] %v4376_v51  ;;  %v1608_v1 = vmul.f32 %v4323_v13, %v1592_v20  ;;  %v1609_v36 = vmul.f32 %v4328_v57, %v1593_v2  ;;  %v4387_v35 = vadd.f32 %v4354_v37, %v1604_v49  ;;  %v5391_v21 = vmax.f32 %v4373_v38, 0.0 }
 0x132   : > { %5621 = vst [vmem:[#allocation86_spill] sm:$0xff] %v4379_v40  ;;  %5622 = vst [vmem:[#allocation87_spill] sm:$0xff] %v4382_v26  ;;  %v4390_v43 = vadd.f32 %v4359_v16, %v1605_v7  ;;  %v1610_v44 = vmul.f32 %v4323_v13, %v1594_v52  ;;  %v1611_v56 = vmul.f32 %v4328_v57, %v1595_v14  ;;  %v5388_v33 = vmax.f32 %v4376_v51, 0.0  ;;  %v5659_v51 = vld [vmem:[#allocation26_spill] sm:$0xff] }
 0x133   : > { %5623 = vst [vmem:[#allocation88_spill] sm:$0xff] %v4387_v35  ;;  %v1612_v50 = vmul.f32 %v4323_v13, %v1596_v42  ;;  %v4396_v0 = vadd.f32 %v4354_v37, %v1606_v47  ;;  %v4399_v17 = vadd.f32 %v4359_v16, %v1607_v5  ;;  %v5387_v11 = vmax.f32 %v4379_v40, 0.0 }
 0x134   : > { %5624 = vst [vmem:[#allocation89_spill] sm:$0xff] %v4390_v43  ;;  %v1613_v34 = vmul.f32 %v4328_v57, %v1597_v4  ;;  %v1614_v27 = vmul.f32 %v4323_v13, %v1598_v31  ;;  %v1615_v59 = vmul.f32 %v4328_v57, %v1599_v46  ;;  %v5386_v39 = vmax.f32 %v4382_v26, 0.0  ;;  %v5640_v31 = vld [vmem:[#allocation8_spill] sm:$0xff] }
 0x135   : > { %5625 = vst [vmem:[#allocation90_spill] sm:$0xff] %v4396_v0  ;;  %5626 = vst [vmem:[#allocation91_spill] sm:$0xff] %v4399_v17  ;;  %v4409_v30 = vadd.f32 %v4354_v37, %v1608_v1  ;;  %v4412_v19 = vadd.f32 %v4359_v16, %v1609_v36  ;;  %v5385_v18 = vmax.f32 %v4387_v35, 0.0  ;;  %v5382_v48 = vmax.f32 %v4390_v43, 0.0  ;;  %v5642_v1 = vld [vmem:[#allocation29_spill] sm:$0xff] }
 0x136   : > { %v5629_v10 = vmax.f32 %v3899_v32, 0.0  ;;  %v4420_v58 = vadd.f32 %v4354_v37, %v1610_v44  ;;  %v4423_v60 = vadd.f32 %v4359_v16, %v1611_v56  ;;  %v4426_v62 = vadd.f32 %v4354_v37, %v1612_v50  ;;  %v5644_v44 = vld [vmem:[#allocation31_spill] sm:$0xff] }
 0x137   : > { %5627 = vst [vmem:[#allocation92_spill] sm:$0xff] %v4409_v30  ;;  %5628 = vst [vmem:[#allocation93_spill] sm:$0xff] %v4412_v19  ;;  %v5383_v53 = vmax.f32 %v4396_v0, 0.0  ;;  %v5384_v3 = vmax.f32 %v4399_v17, 0.0  ;;  %v1665_v45 = vadd.f32 %v5387_v11, %v5391_v21  ;;  %v5633_v20 = vmax.f32 %v5562_v29, 0.0  ;;  %v4496_v11 = vld [vmem:[#allocation2 + $0x1a6] sm:$0xff] }
 0x138   : > { %v1203_v15 = vadd.f32 %v3987_v12, %v5629_v10  ;;  %5630 = vst [vmem:[#allocation94_spill] sm:$0xff] %v4420_v58  ;;  %5631 = vst [vmem:[#allocation95_spill] sm:$0xff] %v4423_v60  ;;  %v1672_v12 = vadd.f32 %v5386_v39, %v5388_v33  ;;  %v4444_v49 = vadd.f32 %v4359_v16, %v1613_v34  ;;  %v5389_v14 = vmax.f32 %v4409_v30, 0.0  ;;  %v4494_v39 = vld [vmem:[#allocation2 + $0x18e] sm:$0xff] }
 0x139   : > { %5632 = vst [vmem:[#allocation96_spill] sm:$0xff] %v4426_v62  ;;  %v4441_v2 = vadd.f32 %v3926_v25, %v5633_v20  ;;  %v4447_v7 = vadd.f32 %v4354_v37, %v1614_v27  ;;  %v4450_v52 = vadd.f32 %v4359_v16, %v1615_v59  ;;  %v5390_v42 = vmax.f32 %v4412_v19, 0.0  ;;  %v4498_v33 = vld [vmem:[#allocation2 + $0x1ae] sm:$0xff]  ;;  %v5655_v20 = vld [vmem:[#allocation38_spill] sm:$0xff] }
 0x13a   : > { %5635 = vst [vmem:[#allocation98_spill] sm:$0xff] %v4444_v49  ;;  %v1666_v47 = vadd.f32 %v1665_v45, %v5385_v18  ;;  %v1673_v25 = vadd.f32 %v1672_v12, %v5382_v48  ;;  %v5638_v5 = vmax.f32 %v5566_v54, 0.0  ;;  %v5641_v46 = vmax.f32 %v5640_v31, 0.0  ;;  %v4488_v48 = vld [vmem:[#allocation2 + $0x186] sm:$0xff]  ;;  %v5656_v59 = vld [vmem:[#allocation10_spill] sm:$0xff]  ;;  %v1697_v31 = vld [vmem:[#allocation2 + $0x1ee] sm:$0xff] }
 0x13b   : > { %5634 = vst [vmem:[#allocation97_spill] sm:$0xff] %v4441_v2  ;;  %5636 = vst [vmem:[#allocation99_spill] sm:$0xff] %v4447_v7  ;;  %v5645_v56 = vmax.f32 %v5644_v44, 0.0  ;;  %v1694_v12 = vld [vmem:[#allocation2 + $0x1c6] sm:$0xff]  ;;  %v5657_v0 = vmax.f32 %v4420_v58, 0.0  ;;  %v5658_v35 = vmax.f32 %v4423_v60, 0.0 }
 0x13c   : > { %5637 = vst [vmem:[#allocation100_spill] sm:$0xff] %v4450_v52  ;;  %v4461_v4 = vadd.f32 %v3930_v9, %v5638_v5  ;;  %v4466_v36 = vadd.f32 %v5642_v1, %v5641_v46  ;;  %v1667_v10 = vadd.f32 %v1666_v47, %v5383_v53  ;;  %v1674_v9 = vadd.f32 %v1673_v25, %v5384_v3  ;;  %v5648_v5 = vld [vmem:[#allocation25_spill] sm:$0xff]  ;;  %v5649_v47 = vld [vmem:[#allocation27_spill] sm:$0xff]  ;;  %v5650_v53 = vld [vmem:[#allocation32_spill] sm:$0xff] }
 0x13d   : > { %v4470_v50 = vadd.f32 %v1203_v15, %v5645_v56  ;;  %v5647_v15 = vld [vmem:[#allocation37_spill] sm:$0xff]  ;;  %v1707_v25 = vmul.f32 %v5650_v53, %v5649_v47  ;;  %v5651_v3 = vld [vmem:[#allocation28_spill] sm:$0xff]  ;;  %v1712_v47 = vmul.f32 %v5648_v5, %v5655_v20  ;;  %v1713_v27 = vmul.f32 %v5650_v53, %v5656_v59 }
 0x13e   : > { %5639 = vst [vmem:[#allocation101_spill] sm:$0xff] %v4461_v4  ;;  %5643 = vst [vmem:[#allocation29_spill] sm:$0xff] %v4466_v36  ;;  %v1706_v46 = vmul.f32 %v5648_v5, %v5647_v15  ;;  %v1668_v1 = vadd.f32 %v1667_v10, %v5389_v14  ;;  %v1675_v56 = vadd.f32 %v1674_v9, %v5390_v42  ;;  %v5652_v15 = vld [vmem:[#allocation9_spill] sm:$0xff]  ;;  %v5653_v14 = vld [vmem:[#allocation34_spill] sm:$0xff]  ;;  %v5663_v36 = vmax.f32 %v4444_v49, 0.0 }
 0x13f   : > { %5646 = vst [vmem:[#allocation102_spill] sm:$0xff] %v4470_v50  ;;  %v1708_v18 = vmul.f32 %v5648_v5, %v5651_v3  ;;  %v1709_v10 = vmul.f32 %v5650_v53, %v5652_v15  ;;  %v1710_v9 = vmul.f32 %v5648_v5, %v5653_v14  ;;  %v5654_v42 = vld [vmem:[#allocation35_spill] sm:$0xff]  ;;  %v1695_v3 = vld [vmem:[#allocation2 + $0x1ce] sm:$0xff]  ;;  %v1714_v34 = vmul.f32 %v5648_v5, %v4488_v48 }
 0x140   : > { %v1711_v21 = vmul.f32 %v5650_v53, %v5654_v42  ;;  %v1696_v45 = vld [vmem:[#allocation2 + $0x1e6] sm:$0xff]  ;;  %v1715_v15 = vmul.f32 %v5650_v53, %v4494_v39  ;;  %v1716_v44 = vmul.f32 %v5648_v5, %v4496_v11  ;;  %v1717_v32 = vmul.f32 %v5650_v53, %v4498_v33  ;;  %v1701_v16 = vld [vmem:[#allocation2 + $0x22e] sm:$0xff] }
 0x141   : > { %v1718_v19 = vmul.f32 %v5648_v5, %v1694_v12  ;;  %v1719_v30 = vmul.f32 %v5650_v53, %v1695_v3  ;;  %v1720_v17 = vmul.f32 %v5648_v5, %v1696_v45  ;;  %v1669_v43 = vadd.f32 %v1668_v1, %v5657_v0  ;;  %v5660_v54 = vld [vmem:[#allocation36_spill] sm:$0xff] }
 0x142   : > { %v1676_v26 = vadd.f32 %v1675_v56, %v5658_v35  ;;  %v1721_v40 = vmul.f32 %v5650_v53, %v1697_v31  ;;  %v1738_v38 = vmul.f32 %v5659_v51, %v5653_v14  ;;  %v1739_v29 = vmul.f32 %v5660_v54, %v5654_v42  ;;  %v1698_v1 = vld [vmem:[#allocation2 + $0x206] sm:$0xff]  ;;  %v1699_v56 = vld [vmem:[#allocation2 + $0x20e] sm:$0xff] }
 0x143   : > { %v1740_v52 = vmul.f32 %v5659_v51, %v5655_v20  ;;  %v1741_v5 = vmul.f32 %v5660_v54, %v5656_v59  ;;  %v1742_v0 = vmul.f32 %v5659_v51, %v4488_v48  ;;  %v1743_v35 = vmul.f32 %v5660_v54, %v4494_v39  ;;  %v1700_v20 = vld [vmem:[#allocation2 + $0x226] sm:$0xff] }
 0x144   : > { %v1744_v53 = vmul.f32 %v5659_v51, %v4496_v11  ;;  %v1745_v14 = vmul.f32 %v5660_v54, %v4498_v33  ;;  %v1746_v42 = vmul.f32 %v5659_v51, %v1694_v12  ;;  %v1747_v60 = vmul.f32 %v5660_v54, %v1695_v3 }
 0x145   : > { %v1748_v59 = vmul.f32 %v5659_v51, %v1696_v45  ;;  %v1749_v58 = vmul.f32 %v5660_v54, %v1697_v31  ;;  %v1750_v7 = vmul.f32 %v5659_v51, %v1698_v1  ;;  %v5661_v50 = vmax.f32 %v4426_v62, 0.0 }
 0x146   : > { %v4553_v2 = vadd.f32 %v1676_v26, %v5663_v36  ;;  %v1751_v37 = vmul.f32 %v5660_v54, %v1699_v56  ;;  %v1752_v57 = vmul.f32 %v5659_v51, %v1700_v20  ;;  %v1753_v13 = vmul.f32 %v5660_v54, %v1701_v16  ;;  %v1704_v51 = vld [vmem:[#allocation2 + $0x266] sm:$0xff]  ;;  %v5665_v54 = vld [vmem:[#allocation30_spill] sm:$0xff] }
 0x147   : > { %v4549_v4 = vadd.f32 %v1669_v43, %v5661_v50  ;;  %v1754_v41 = vadd.f32 %v1738_v38, %v1706_v46  ;;  %v1755_v63 = vadd.f32 %v1739_v29, %v1707_v25  ;;  %v1756_v8 = vadd.f32 %v1740_v52, %v1708_v18  ;;  %v5666_v38 = vld [vmem:[#allocation33_spill] sm:$0xff] }
 0x148   : > { %5664 = vst [vmem:[#allocation25_spill] sm:$0xff] %v4553_v2  ;;  %v1757_v55 = vadd.f32 %v1741_v5, %v1709_v10  ;;  %v1758_v61 = vadd.f32 %v1742_v0, %v1710_v9  ;;  %v1759_v28 = vadd.f32 %v1743_v35, %v1711_v21  ;;  %v1760_v62 = vadd.f32 %v1744_v53, %v1712_v47  ;;  %v1705_v52 = vld [vmem:[#allocation2 + $0x26e] sm:$0xff] }
 0x149   : > { %5662 = vst [vmem:[#allocation37_spill] sm:$0xff] %v4549_v4  ;;  %v1761_v43 = vadd.f32 %v1745_v14, %v1713_v27  ;;  %v1762_v50 = vadd.f32 %v1746_v42, %v1714_v34  ;;  %v1763_v4 = vadd.f32 %v1747_v60, %v1715_v15  ;;  %v1764_v49 = vadd.f32 %v1748_v59, %v1716_v44  ;;  %v1809_v15 = vld [vmem:[#allocation2 + $0x170] sm:$0xff]  ;;  %v4578_v5 = vld [vmem:[#allocation2 + $0x188] sm:$0xff] }
 0x14a   : > { %v1765_v26 = vadd.f32 %v1749_v58, %v1717_v32  ;;  %v1766_v36 = vadd.f32 %v1750_v7, %v1718_v19  ;;  %v1767_v2 = vadd.f32 %v1751_v37, %v1719_v30  ;;  %v1768_v6 = vadd.f32 %v1752_v57, %v1720_v17  ;;  %v5674_v53 = vld [vmem:[#allocation65_spill] sm:$0xff]  ;;  %v4603_v59 = vld [vmem:[#allocation2 + $0x1e8] sm:$0xff] }
 0x14b   : > { %v1769_v24 = vadd.f32 %v1753_v13, %v1721_v40  ;;  %v1770_v29 = vmul.f32 %v5665_v54, %v4488_v48  ;;  %v1771_v18 = vmul.f32 %v5666_v38, %v4494_v39  ;;  %v1772_v21 = vmul.f32 %v5665_v54, %v4496_v11 }
 0x14c   : > { %v1773_v32 = vmul.f32 %v5666_v38, %v4498_v33  ;;  %v1774_v37 = vmul.f32 %v5665_v54, %v1694_v12  ;;  %v1775_v57 = vmul.f32 %v5666_v38, %v1695_v3  ;;  %v1776_v17 = vmul.f32 %v5665_v54, %v1696_v45  ;;  %v1808_v3 = vld [vmem:[#allocation2 + $0x168] sm:$0xff] }
 0x14d   : > { %v1777_v13 = vmul.f32 %v5666_v38, %v1697_v31  ;;  %v1778_v40 = vmul.f32 %v5665_v54, %v1698_v1  ;;  %v1779_v30 = vmul.f32 %v5666_v38, %v1699_v56  ;;  %v1780_v39 = vmul.f32 %v5665_v54, %v1700_v20  ;;  %v5673_v1 = vld [vmem:[#allocation64_spill] sm:$0xff]  ;;  %v4601_v20 = vld [vmem:[#allocation2 + $0x1d0] sm:$0xff] }
 0x14e   : > { %v1781_v11 = vmul.f32 %v5666_v38, %v1701_v16  ;;  %v1782_v19 = vmul.f32 %v5665_v54, %v1702_v23  ;;  %v1783_v33 = vmul.f32 %v5666_v38, %v1703_v22  ;;  %v1784_v48 = vmul.f32 %v5665_v54, %v1704_v51  ;;  %v4599_v56 = vld [vmem:[#allocation2 + $0x1c8] sm:$0xff]  ;;  %v4612_v51 = vld [vmem:[#allocation2 + $0x1f0] sm:$0xff] }
 0x14f   : > { %v1785_v58 = vmul.f32 %v5666_v38, %v1705_v52  ;;  %v1786_v60 = vadd.f32 %v1770_v29, %v1754_v41  ;;  %v1787_v7 = vadd.f32 %v1771_v18, %v1755_v63  ;;  %v1788_v44 = vadd.f32 %v1772_v21, %v1756_v8  ;;  %v5667_v41 = vld [vmem:[#allocation58_spill] sm:$0xff]  ;;  %v5668_v63 = vld [vmem:[#allocation13_spill] sm:$0xff] }
 0x150   : > { %v1789_v31 = vadd.f32 %v1773_v32, %v1757_v55  ;;  %v1790_v34 = vadd.f32 %v1774_v37, %v1758_v61  ;;  %v1791_v27 = vadd.f32 %v1775_v57, %v1759_v28  ;;  %v1792_v45 = vadd.f32 %v1776_v17, %v1760_v62  ;;  %v5669_v55 = vld [vmem:[#allocation59_spill] sm:$0xff]  ;;  %v5671_v62 = vld [vmem:[#allocation60_spill] sm:$0xff] }
 0x151   : > { %v1793_v12 = vadd.f32 %v1777_v13, %v1761_v43  ;;  %v1794_v46 = vadd.f32 %v1778_v40, %v1762_v50  ;;  %v1795_v25 = vadd.f32 %v1779_v30, %v1763_v4  ;;  %v1796_v10 = vadd.f32 %v1780_v39, %v1764_v49  ;;  %v5670_v61 = vld [vmem:[#allocation55_spill] sm:$0xff]  ;;  %v4586_v4 = vld [vmem:[#allocation2 + $0x190] sm:$0xff]  ;;  %v4588_v49 = vld [vmem:[#allocation2 + $0x1a8] sm:$0xff] }
 0x152   : > { %v1797_v16 = vadd.f32 %v1781_v11, %v1765_v26  ;;  %v1798_v9 = vadd.f32 %v1782_v19, %v1766_v36  ;;  %v1799_v23 = vadd.f32 %v1783_v33, %v1767_v2  ;;  %v1800_v47 = vadd.f32 %v1784_v48, %v1768_v6  ;;  %v4590_v2 = vld [vmem:[#allocation2 + $0x1b0] sm:$0xff] }
 0x153   : > { %v1801_v22 = vadd.f32 %v1785_v58, %v1769_v24  ;;  %v1826_v8 = vmul.f32 %v5668_v63, %v5667_v41  ;;  %v1827_v28 = vmul.f32 %v5670_v61, %v5669_v55  ;;  %v1828_v0 = vmul.f32 %v5668_v63, %v5671_v62  ;;  %v5672_v24 = vld [vmem:[#allocation61_spill] sm:$0xff] }
 0x154   : > { %v1829_v6 = vmul.f32 %v5670_v61, %v5672_v24  ;;  %v1830_v35 = vmul.f32 %v5668_v63, %v5673_v1  ;;  %v1831_v14 = vmul.f32 %v5670_v61, %v5674_v53  ;;  %v1832_v42 = vmul.f32 %v5668_v63, %v1808_v3 }
 0x155   : > { %v1833_v43 = vmul.f32 %v5670_v61, %v1809_v15  ;;  %v1834_v50 = vmul.f32 %v5668_v63, %v4578_v5  ;;  %v1835_v26 = vmul.f32 %v5670_v61, %v4586_v4  ;;  %v1836_v36 = vmul.f32 %v5668_v63, %v4588_v49 }
 0x156   : > { %v1837_v54 = vmul.f32 %v5670_v61, %v4590_v2  ;;  %v1838_v29 = vmul.f32 %v5668_v63, %v4599_v56  ;;  %v1839_v38 = vmul.f32 %v5670_v61, %v4601_v20  ;;  %v1840_v18 = vmul.f32 %v5668_v63, %v4603_v59  ;;  %v5675_v63 = vld [vmem:[#allocation56_spill] sm:$0xff] }
 0x157   : > { %v1841_v21 = vmul.f32 %v5670_v61, %v4612_v51  ;;  %v1842_v52 = vadd.f32 %v1826_v8, %v1786_v60  ;;  %v1843_v32 = vadd.f32 %v1827_v28, %v1787_v7  ;;  %v1844_v37 = vadd.f32 %v1828_v0, %v1788_v44  ;;  %v5676_v60 = vld [vmem:[#allocation57_spill] sm:$0xff] }
 0x158   : > { %v1845_v57 = vadd.f32 %v1829_v6, %v1789_v31  ;;  %v1846_v17 = vadd.f32 %v1830_v35, %v1790_v34  ;;  %v1847_v13 = vadd.f32 %v1831_v14, %v1791_v27  ;;  %v1848_v40 = vadd.f32 %v1832_v42, %v1792_v45 }
 0x159   : > { %v1849_v30 = vadd.f32 %v1833_v43, %v1793_v12  ;;  %v1850_v39 = vadd.f32 %v1834_v50, %v1794_v46  ;;  %v1851_v11 = vadd.f32 %v1835_v26, %v1795_v25  ;;  %v1852_v19 = vadd.f32 %v1836_v36, %v1796_v10  ;;  %v1818_v12 = vld [vmem:[#allocation2 + $0x208] sm:$0xff]  ;;  %v1819_v46 = vld [vmem:[#allocation2 + $0x210] sm:$0xff] }
 0x15a   : > { %v1853_v33 = vadd.f32 %v1837_v54, %v1797_v16  ;;  %v1854_v48 = vadd.f32 %v1838_v29, %v1798_v9  ;;  %v1855_v58 = vadd.f32 %v1839_v38, %v1799_v23  ;;  %v1856_v41 = vadd.f32 %v1840_v18, %v1800_v47  ;;  %v1820_v25 = vld [vmem:[#allocation2 + $0x228] sm:$0xff]  ;;  %v1821_v47 = vld [vmem:[#allocation2 + $0x230] sm:$0xff] }
 0x15b   : > { %v1857_v55 = vadd.f32 %v1841_v21, %v1801_v22  ;;  %v1858_v62 = vmul.f32 %v5675_v63, %v5673_v1  ;;  %v1859_v7 = vmul.f32 %v5676_v60, %v5674_v53  ;;  %v1860_v44 = vmul.f32 %v5675_v63, %v1808_v3  ;;  %v1822_v38 = vld [vmem:[#allocation2 + $0x248] sm:$0xff]  ;;  %v1823_v18 = vld [vmem:[#allocation2 + $0x250] sm:$0xff] }
 0x15c   : > { %v1861_v31 = vmul.f32 %v5676_v60, %v1809_v15  ;;  %v1862_v34 = vmul.f32 %v5675_v63, %v4578_v5  ;;  %v1863_v27 = vmul.f32 %v5676_v60, %v4586_v4  ;;  %v1864_v45 = vmul.f32 %v5675_v63, %v4588_v49  ;;  %v1824_v21 = vld [vmem:[#allocation2 + $0x268] sm:$0xff] }
 0x15d   : > { %v1865_v10 = vmul.f32 %v5676_v60, %v4590_v2  ;;  %v1866_v16 = vmul.f32 %v5675_v63, %v4599_v56  ;;  %v1867_v9 = vmul.f32 %v5676_v60, %v4601_v20  ;;  %v1868_v23 = vmul.f32 %v5675_v63, %v4603_v59 }
 0x15e   : > { %v1869_v22 = vmul.f32 %v5676_v60, %v4612_v51  ;;  %v1870_v3 = vmul.f32 %v5675_v63, %v1818_v12  ;;  %v1871_v15 = vmul.f32 %v5676_v60, %v1819_v46  ;;  %v1872_v8 = vmul.f32 %v5675_v63, %v1820_v25 }
 0x15f   : > { %v1873_v61 = vmul.f32 %v5676_v60, %v1821_v47  ;;  %v1874_v28 = vadd.f32 %v1858_v62, %v1842_v52  ;;  %v1875_v0 = vadd.f32 %v1859_v7, %v1843_v32  ;;  %v1876_v24 = vadd.f32 %v1860_v44, %v1844_v37  ;;  %v5677_v52 = vld [vmem:[#allocation62_spill] sm:$0xff]  ;;  %v5678_v37 = vld [vmem:[#allocation63_spill] sm:$0xff] }
 0x160   : > { %v1877_v6 = vadd.f32 %v1861_v31, %v1845_v57  ;;  %v1878_v1 = vadd.f32 %v1862_v34, %v1846_v17  ;;  %v1879_v35 = vadd.f32 %v1863_v27, %v1847_v13  ;;  %v1880_v53 = vadd.f32 %v1864_v45, %v1848_v40  ;;  %v1825_v13 = vld [vmem:[#allocation2 + $0x270] sm:$0xff] }
 0x161   : > { %v1881_v14 = vadd.f32 %v1865_v10, %v1849_v30  ;;  %v1882_v42 = vadd.f32 %v1866_v16, %v1850_v39  ;;  %v1883_v43 = vadd.f32 %v1867_v9, %v1851_v11  ;;  %v1884_v50 = vadd.f32 %v1868_v23, %v1852_v19  ;;  %v4674_v10 = vld [vmem:[#allocation2 + $0x18a] sm:$0xff]  ;;  %v5680_v9 = vld [vmem:[#allocation66_spill] sm:$0xff] }
 0x162   : > { %v1885_v26 = vadd.f32 %v1869_v22, %v1853_v33  ;;  %v1886_v36 = vadd.f32 %v1870_v3, %v1854_v48  ;;  %v1887_v54 = vadd.f32 %v1871_v15, %v1855_v58  ;;  %v1888_v29 = vadd.f32 %v1872_v8, %v1856_v41  ;;  %v5679_v16 = vld [vmem:[#allocation72_spill] sm:$0xff]  ;;  %v5682_v22 = vld [vmem:[#allocation67_spill] sm:$0xff]  ;;  %v5683_v15 = vld [vmem:[#allocation74_spill] sm:$0xff] }
 0x163   : > { %v1889_v63 = vadd.f32 %v1873_v61, %v1857_v55  ;;  %v1890_v32 = vmul.f32 %v5677_v52, %v4578_v5  ;;  %v1891_v57 = vmul.f32 %v5678_v37, %v4586_v4  ;;  %v1892_v17 = vmul.f32 %v5677_v52, %v4588_v49  ;;  %v1931_v61 = vld [vmem:[#allocation2 + $0x192] sm:$0xff] }
 0x164   : > { %v1893_v40 = vmul.f32 %v5678_v37, %v4590_v2  ;;  %v1894_v30 = vmul.f32 %v5677_v52, %v4599_v56  ;;  %v1895_v39 = vmul.f32 %v5678_v37, %v4601_v20  ;;  %v1896_v11 = vmul.f32 %v5677_v52, %v4603_v59 }
 0x165   : > { %v1897_v5 = vmul.f32 %v5678_v37, %v4612_v51  ;;  %v1898_v4 = vmul.f32 %v5677_v52, %v1818_v12  ;;  %v1899_v49 = vmul.f32 %v5678_v37, %v1819_v46  ;;  %v1900_v19 = vmul.f32 %v5677_v52, %v1820_v25 }
 0x166   : > { %v1901_v2 = vmul.f32 %v5678_v37, %v1821_v47  ;;  %v1902_v33 = vmul.f32 %v5677_v52, %v1822_v38  ;;  %v1903_v56 = vmul.f32 %v5678_v37, %v1823_v18  ;;  %v1904_v20 = vmul.f32 %v5677_v52, %v1824_v21  ;;  %v5681_v47 = vld [vmem:[#allocation73_spill] sm:$0xff] }
 0x167   : > { %v1905_v48 = vmul.f32 %v5678_v37, %v1825_v13  ;;  %v1906_v59 = vadd.f32 %v1890_v32, %v1874_v28  ;;  %v1907_v58 = vadd.f32 %v1891_v57, %v1875_v0  ;;  %v1908_v41 = vadd.f32 %v1892_v17, %v1876_v24  ;;  %v1932_v28 = vld [vmem:[#allocation2 + $0x1aa] sm:$0xff]  ;;  %v4682_v0 = vld [vmem:[#allocation2 + $0x1b2] sm:$0xff]  ;;  %v5684_v24 = vld [vmem:[#allocation75_spill] sm:$0xff] }
 0x168   : > { %v1909_v51 = vadd.f32 %v1893_v40, %v1877_v6  ;;  %v1910_v55 = vadd.f32 %v1894_v30, %v1878_v1  ;;  %v1911_v62 = vadd.f32 %v1895_v39, %v1879_v35  ;;  %v1912_v60 = vadd.f32 %v1896_v11, %v1880_v53  ;;  %v5685_v1 = vld [vmem:[#allocation78_spill] sm:$0xff]  ;;  %v5686_v53 = vld [vmem:[#allocation79_spill] sm:$0xff] }
 0x169   : > { %v1913_v7 = vadd.f32 %v1897_v5, %v1881_v14  ;;  %v1914_v44 = vadd.f32 %v1898_v4, %v1882_v42  ;;  %v1915_v31 = vadd.f32 %v1899_v49, %v1883_v43  ;;  %v1916_v34 = vadd.f32 %v1900_v19, %v1884_v50  ;;  %v5687_v42 = vld [vmem:[#allocation80_spill] sm:$0xff] }
 0x16a   : > { %v1917_v27 = vadd.f32 %v1901_v2, %v1885_v26  ;;  %v1918_v45 = vadd.f32 %v1902_v33, %v1886_v36  ;;  %v1919_v12 = vadd.f32 %v1903_v56, %v1887_v54  ;;  %v1920_v46 = vadd.f32 %v1904_v20, %v1888_v29  ;;  %v1934_v50 = vld [vmem:[#allocation2 + $0x1ca] sm:$0xff]  ;;  %v1935_v26 = vld [vmem:[#allocation2 + $0x1d2] sm:$0xff] }
 0x16b   : > { %v1921_v25 = vadd.f32 %v1905_v48, %v1889_v63  ;;  %v1946_v23 = vmul.f32 %v5680_v9, %v5679_v16  ;;  %v1947_v3 = vmul.f32 %v5682_v22, %v5681_v47  ;;  %v1948_v8 = vmul.f32 %v5680_v9, %v5683_v15  ;;  %v4692_v36 = vld [vmem:[#allocation2 + $0x1ea] sm:$0xff]  ;;  %v1937_v63 = vld [vmem:[#allocation2 + $0x1f2] sm:$0xff] }
 0x16c   : > { %v1949_v6 = vmul.f32 %v5682_v22, %v5684_v24  ;;  %v1950_v35 = vmul.f32 %v5680_v9, %v5685_v1  ;;  %v1951_v14 = vmul.f32 %v5682_v22, %v5686_v53  ;;  %v1952_v43 = vmul.f32 %v5680_v9, %v5687_v42  ;;  %v5688_v54 = vld [vmem:[#allocation81_spill] sm:$0xff] }
 0x16d   : > { %v1953_v29 = vmul.f32 %v5682_v22, %v5688_v54  ;;  %v1954_v38 = vmul.f32 %v5680_v9, %v4674_v10  ;;  %v1955_v18 = vmul.f32 %v5682_v22, %v1931_v61  ;;  %v1956_v21 = vmul.f32 %v5680_v9, %v1932_v28 }
 0x16e   : > { %v1957_v52 = vmul.f32 %v5682_v22, %v4682_v0  ;;  %v1958_v32 = vmul.f32 %v5680_v9, %v1934_v50  ;;  %v1959_v37 = vmul.f32 %v5682_v22, %v1935_v26  ;;  %v1960_v57 = vmul.f32 %v5680_v9, %v4692_v36  ;;  %v5689_v9 = vld [vmem:[#allocation68_spill] sm:$0xff] }
 0x16f   : > { %v1961_v17 = vmul.f32 %v5682_v22, %v1937_v63  ;;  %v1962_v13 = vadd.f32 %v1946_v23, %v1906_v59  ;;  %v1963_v40 = vadd.f32 %v1947_v3, %v1907_v58  ;;  %v1964_v30 = vadd.f32 %v1948_v8, %v1908_v41  ;;  %v5690_v59 = vld [vmem:[#allocation69_spill] sm:$0xff] }
 0x170   : > { %v1965_v39 = vadd.f32 %v1949_v6, %v1909_v51  ;;  %v1966_v11 = vadd.f32 %v1950_v35, %v1910_v55  ;;  %v1967_v5 = vadd.f32 %v1951_v14, %v1911_v62  ;;  %v1968_v4 = vadd.f32 %v1952_v43, %v1912_v60 }
 0x171   : > { %v1969_v49 = vadd.f32 %v1953_v29, %v1913_v7  ;;  %v1970_v19 = vadd.f32 %v1954_v38, %v1914_v44  ;;  %v1971_v2 = vadd.f32 %v1955_v18, %v1915_v31  ;;  %v1972_v33 = vadd.f32 %v1956_v21, %v1916_v34  ;;  %v1938_v7 = vld [vmem:[#allocation2 + $0x20a] sm:$0xff]  ;;  %v1939_v44 = vld [vmem:[#allocation2 + $0x212] sm:$0xff] }
 0x172   : > { %v1973_v56 = vadd.f32 %v1957_v52, %v1917_v27  ;;  %v1974_v20 = vadd.f32 %v1958_v32, %v1918_v45  ;;  %v1975_v48 = vadd.f32 %v1959_v37, %v1919_v12  ;;  %v1976_v16 = vadd.f32 %v1960_v57, %v1920_v46  ;;  %v1940_v31 = vld [vmem:[#allocation2 + $0x22a] sm:$0xff]  ;;  %v1941_v46 = vld [vmem:[#allocation2 + $0x232] sm:$0xff] }
 0x173   : > { %v1977_v47 = vadd.f32 %v1961_v17, %v1921_v25  ;;  %v1978_v15 = vmul.f32 %v5689_v9, %v5685_v1  ;;  %v1979_v58 = vmul.f32 %v5690_v59, %v5686_v53  ;;  %v1980_v41 = vmul.f32 %v5689_v9, %v5687_v42  ;;  %v5691_v53 = vld [vmem:[#allocation70_spill] sm:$0xff]  ;;  %v5692_v42 = vld [vmem:[#allocation71_spill] sm:$0xff] }
 0x174   : > { %v1981_v51 = vmul.f32 %v5690_v59, %v5688_v54  ;;  %v1982_v55 = vmul.f32 %v5689_v9, %v4674_v10  ;;  %v1983_v62 = vmul.f32 %v5690_v59, %v1931_v61  ;;  %v1984_v60 = vmul.f32 %v5689_v9, %v1932_v28 }
 0x175   : > { %v1985_v34 = vmul.f32 %v5690_v59, %v4682_v0  ;;  %v1986_v27 = vmul.f32 %v5689_v9, %v1934_v50  ;;  %v1987_v45 = vmul.f32 %v5690_v59, %v1935_v26  ;;  %v1988_v12 = vmul.f32 %v5689_v9, %v4692_v36 }
 0x176   : > { %v1989_v25 = vmul.f32 %v5690_v59, %v1937_v63  ;;  %v1990_v23 = vmul.f32 %v5689_v9, %v1938_v7  ;;  %v1991_v22 = vmul.f32 %v5690_v59, %v1939_v44  ;;  %v1992_v3 = vmul.f32 %v5689_v9, %v1940_v31 }
 0x177   : > { %v1993_v8 = vmul.f32 %v5690_v59, %v1941_v46  ;;  %v1994_v24 = vadd.f32 %v1978_v15, %v1962_v13  ;;  %v1995_v6 = vadd.f32 %v1979_v58, %v1963_v40  ;;  %v1996_v1 = vadd.f32 %v1980_v41, %v1964_v30  ;;  %v1945_v59 = vld [vmem:[#allocation2 + $0x272] sm:$0xff] }
 0x178   : > { %v1997_v35 = vadd.f32 %v1981_v51, %v1965_v39  ;;  %v2010_v14 = vmul.f32 %v5691_v53, %v4674_v10  ;;  %v2011_v43 = vmul.f32 %v5692_v42, %v1931_v61  ;;  %v2012_v54 = vmul.f32 %v5691_v53, %v1932_v28  ;;  %v5694_v58 = vld [vmem:[#allocation77_spill] sm:$0xff] }
 0x179   : > { %v1998_v29 = vadd.f32 %v1982_v55, %v1966_v11  ;;  %v1999_v38 = vadd.f32 %v1983_v62, %v1967_v5  ;;  %v2000_v18 = vadd.f32 %v1984_v60, %v1968_v4  ;;  %v2013_v21 = vmul.f32 %v5692_v42, %v4682_v0 }
 0x17a   : > { %v2001_v52 = vadd.f32 %v1985_v34, %v1969_v49  ;;  %v2002_v32 = vadd.f32 %v1986_v27, %v1970_v19  ;;  %v2014_v37 = vmul.f32 %v5691_v53, %v1934_v50  ;;  %v2015_v57 = vmul.f32 %v5692_v42, %v1935_v26  ;;  %v1942_v49 = vld [vmem:[#allocation2 + $0x24a] sm:$0xff]  ;;  %v1943_v19 = vld [vmem:[#allocation2 + $0x252] sm:$0xff] }
 0x17b   : > { %v2003_v17 = vadd.f32 %v1987_v45, %v1971_v2  ;;  %v2004_v13 = vadd.f32 %v1988_v12, %v1972_v33  ;;  %v2005_v40 = vadd.f32 %v1989_v25, %v1973_v56  ;;  %v2016_v10 = vmul.f32 %v5691_v53, %v4692_v36  ;;  %v1944_v50 = vld [vmem:[#allocation2 + $0x26a] sm:$0xff] }
 0x17c   : > { %v2017_v61 = vmul.f32 %v5692_v42, %v1937_v63  ;;  %v2026_v28 = vadd.f32 %v2010_v14, %v1994_v24  ;;  %v2027_v30 = vadd.f32 %v2011_v43, %v1995_v6  ;;  %v2028_v39 = vadd.f32 %v2012_v54, %v1996_v1 }
 0x17d   : > { %v2006_v11 = vadd.f32 %v1990_v23, %v1974_v20  ;;  %v2007_v5 = vadd.f32 %v1991_v22, %v1975_v48  ;;  %v2008_v0 = vadd.f32 %v1992_v3, %v1976_v16  ;;  %v2029_v4 = vadd.f32 %v2013_v21, %v1997_v35  ;;  %v5693_v48 = vld [vmem:[#allocation76_spill] sm:$0xff]  ;;  %v5695_v23 = vld [vmem:[#allocation82_spill] sm:$0xff]  ;;  %v5696_v3 = vld [vmem:[#allocation83_spill] sm:$0xff] }
 0x17e   : > { %v2018_v26 = vmul.f32 %v5691_v53, %v1938_v7  ;;  %v2019_v2 = vmul.f32 %v5692_v42, %v1939_v44  ;;  %v2030_v33 = vadd.f32 %v2014_v37, %v1998_v29  ;;  %v2031_v56 = vadd.f32 %v2015_v57, %v1999_v38 }
 0x17f   : > { %v2009_v9 = vadd.f32 %v1993_v8, %v1977_v47  ;;  %v2020_v36 = vmul.f32 %v5691_v53, %v1940_v31  ;;  %v2021_v63 = vmul.f32 %v5692_v42, %v1941_v46  ;;  %v2032_v15 = vadd.f32 %v2016_v10, %v2000_v18 }
 0x180   : > { %v2033_v20 = vadd.f32 %v2017_v61, %v2001_v52  ;;  %v2042_v16 = vmul.f32 %v5693_v48, %v2026_v28  ;;  %v2043_v41 = vmul.f32 %v5694_v58, %v2027_v30  ;;  %v2044_v51 = vmul.f32 %v5693_v48, %v2028_v39  ;;  %v2225_v61 = vld [vmem:[%s5206_s2 + $0x10] sm:$0xff]  ;;  %v2227_v28 = vld [vmem:[%s5206_s2 + $0x28] sm:$0xff] }
 0x181   : > { %v2022_v55 = vmul.f32 %v5691_v53, %v1942_v49  ;;  %v2023_v62 = vmul.f32 %v5692_v42, %v1943_v19  ;;  %v2024_v60 = vmul.f32 %v5691_v53, %v1944_v50  ;;  %v2045_v47 = vmul.f32 %v5694_v58, %v2029_v4  ;;  %v2224_v30 = vld [vmem:[%s5206_s2 + $0x8] sm:$0xff]  ;;  %v2226_v4 = vld [vmem:[%s5206_s2 + $0x20] sm:$0xff]  ;;  %v2231_v19 = vld [vmem:[%s5206_s2 + $0x58] sm:$0xff] }
 0x182   : > { %v2034_v7 = vadd.f32 %v2018_v26, %v2002_v32  ;;  %v2035_v44 = vadd.f32 %v2019_v2, %v2003_v17  ;;  %v2046_v31 = vmul.f32 %v5693_v48, %v2030_v33  ;;  %v2047_v34 = vmul.f32 %v5694_v58, %v2031_v56  ;;  %v2229_v49 = vld [vmem:[%s5206_s2 + $0x40] sm:$0xff] }
 0x183   : > { %v2025_v27 = vmul.f32 %v5692_v42, %v1945_v59  ;;  %v2036_v45 = vadd.f32 %v2020_v36, %v2004_v13  ;;  %v2037_v12 = vadd.f32 %v2021_v63, %v2005_v40  ;;  %v2048_v46 = vmul.f32 %v5693_v48, %v2032_v15  ;;  %v2228_v15 = vld [vmem:[%s5206_s2 + $0x38] sm:$0xff]  ;;  %v2230_v59 = vld [vmem:[%s5206_s2 + $0x50] sm:$0xff] }
 0x184   : > { %v2049_v25 = vmul.f32 %v5694_v58, %v2033_v20  ;;  %v4758_v22 = vadd.f32 %v5695_v23, %v2042_v16  ;;  %v4761_v8 = vadd.f32 %v5696_v3, %v2043_v41  ;;  %v4764_v24 = vadd.f32 %v5695_v23, %v2044_v51  ;;  %v2233_v41 = vld [vmem:[%s5206_s2 + $0x70] sm:$0xff]  ;;  %v2235_v51 = vld [vmem:[%s5206_s2 + $0x88] sm:$0xff] }
 0x185   : > { %v2038_v6 = vadd.f32 %v2022_v55, %v2006_v11  ;;  %v2039_v1 = vadd.f32 %v2023_v62, %v2007_v5  ;;  %v2040_v35 = vadd.f32 %v2024_v60, %v2008_v0  ;;  %v4767_v53 = vadd.f32 %v5696_v3, %v2045_v47 }
 0x186   : > { %v2050_v14 = vmul.f32 %v5693_v48, %v2034_v7  ;;  %v2051_v42 = vmul.f32 %v5694_v58, %v2035_v44  ;;  %v4772_v43 = vadd.f32 %v5695_v23, %v2046_v31  ;;  %v4775_v54 = vadd.f32 %v5696_v3, %v2047_v34 }
 0x187   : > { %v2041_v29 = vadd.f32 %v2025_v27, %v2009_v9  ;;  %v2052_v38 = vmul.f32 %v5693_v48, %v2036_v45  ;;  %v2053_v18 = vmul.f32 %v5694_v58, %v2037_v12  ;;  %v4780_v21 = vadd.f32 %v5695_v23, %v2048_v46 }
 0x188   : > { %v4783_v52 = vadd.f32 %v5696_v3, %v2049_v25  ;;  %v2074_v32 = vmax.f32 %v4758_v22, 0.0  ;;  %v2075_v37 = vmax.f32 %v4761_v8, 0.0  ;;  %v5450_v57 = vmax.f32 %v4764_v24, 0.0  ;;  %v2232_v25 = vld [vmem:[%s5206_s2 + $0x68] sm:$0xff] }
 0x189   : > { %v2054_v17 = vmul.f32 %v5693_v48, %v2038_v6  ;;  %v2055_v13 = vmul.f32 %v5694_v58, %v2039_v1  ;;  %v2056_v40 = vmul.f32 %v5693_v48, %v2040_v35  ;;  %v5449_v10 = vmax.f32 %v4767_v53, 0.0  ;;  %v5698_v6 = vld [vmem:[#allocation29_spill] sm:$0xff] }
 0x18a   : > { %v4802_v39 = vadd.f32 %v5695_v23, %v2050_v14  ;;  %v4805_v11 = vadd.f32 %v5696_v3, %v2051_v42  ;;  %v5448_v5 = vmax.f32 %v4772_v43, 0.0  ;;  %v5447_v0 = vmax.f32 %v4775_v54, 0.0  ;;  %v5699_v35 = vld [vmem:[#allocation101_spill] sm:$0xff]  ;;  %v5700_v14 = vld [vmem:[#allocation102_spill] sm:$0xff] }
 0x18b   : > { %v2057_v50 = vmul.f32 %v5694_v58, %v2041_v29  ;;  %v4820_v26 = vadd.f32 %v5695_v23, %v2052_v38  ;;  %v4823_v2 = vadd.f32 %v5696_v3, %v2053_v18  ;;  %v5446_v33 = vmax.f32 %v4780_v21, 0.0  ;;  %v5701_v29 = vld [vmem:[#allocation99_spill] sm:$0xff]  ;;  %v5703_v18 = vld [vmem:[#allocation37_spill] sm:$0xff] }
 0x18c   : > { %v5445_v56 = vmax.f32 %v4783_v52, 0.0  ;;  %v2107_v9 = vadd.f32 %v5450_v57, %v2074_v32  ;;  %v2114_v36 = vadd.f32 %v5449_v10, %v2075_v37  ;;  %v2748_v63 = vpack.c.bf16 %v2227_v28, %v2225_v61  ;;  %v5706_v61 = vld [vmem:[#allocation25_spill] sm:$0xff] }
 0x18d   : > { %v4842_v20 = vadd.f32 %v5695_v23, %v2054_v17  ;;  %v4845_v48 = vadd.f32 %v5696_v3, %v2055_v13  ;;  %v2750_v16 = vpack.c.bf16 %v2226_v4, %v2224_v30  ;;  %v2752_v58 = vpack.c.bf16 %v2231_v19, %v2229_v49  ;;  %v5704_v13 = vld [vmem:[#allocation100_spill] sm:$0xff]  ;;  %v2237_v30 = vld [vmem:[%s5206_s2 + $0xa0] sm:$0xff]  ;;  %v2239_v4 = vld [vmem:[%s5206_s2 + $0xb8] sm:$0xff] }
 0x18e   : > { %v5444_v55 = vmax.f32 %v4802_v39, 0.0  ;;  %v5443_v62 = vmax.f32 %v4805_v11, 0.0  ;;  %v2108_v60 = vadd.f32 %v2107_v9, %v5448_v5  ;;  %v2115_v47 = vadd.f32 %v2114_v36, %v5447_v0  ;;  %2749 = vmatprep.subr.bf16.mxu1 %v2748_v63  ;;  %v5763_v0 = vld [vmem:[#allocation96_spill] sm:$0xff]  ;;  %v5765_v5 = vld [vmem:[#allocation98_spill] sm:$0xff] }
 0x18f   : > { %v4860_v7 = vadd.f32 %v5695_v23, %v2056_v40  ;;  %v4863_v44 = vadd.f32 %v5696_v3, %v2057_v50  ;;  %v5442_v31 = vmax.f32 %v4820_v26, 0.0  ;;  %2751 = vmatpush1.bf16.msra.mxu1 %v2750_v16  ;;  %v2754_v34 = vpack.c.bf16 %v2230_v59, %v2228_v15  ;;  %v2234_v23 = vld [vmem:[%s5206_s2 + $0x80] sm:$0xff]  ;;  %v5697_v3 = vld [vmem:[#allocation97_spill] sm:$0xff] }
 0x190   : > { %v5441_v27 = vmax.f32 %v4823_v2, 0.0  ;;  %v2109_v45 = vadd.f32 %v2108_v60, %v5446_v33  ;;  %v2116_v12 = vadd.f32 %v2115_v47, %v5445_v56  ;;  %2753 = vmatprep.subr.bf16.mxu1 %v2752_v58  ;;  %v2756_v46 = vpack.c.bf16 %v2235_v51, %v2233_v41  ;;  %v2236_v41 = vld [vmem:[%s5206_s2 + $0x98] sm:$0xff]  ;;  %v2238_v51 = vld [vmem:[%s5206_s2 + $0xb0] sm:$0xff]  ;;  %v2243_v47 = vld [vmem:[%s5206_s2 + $0xe8] sm:$0xff] }
 0x191   : > { %v1205_v1 = vadd.f32 %v5698_v6, %v5697_v3  ;;  %v1206_v42 = vadd.f32 %v5700_v14, %v5699_v35  ;;  %v5702_v38 = vmax.f32 %v5701_v29, 0.0  ;;  %v5705_v40 = vmax.f32 %v5704_v13, 0.0  ;;  %v2241_v60 = vld [vmem:[%s5206_s2 + $0xd0] sm:$0xff]  ;;  %v2242_v35 = vld [vmem:[%s5206_s2 + $0xe0] sm:$0xff]  ;;  %v5759_v56 = vld [vmem:[#allocation94_spill] sm:$0xff] }
 0x192   : > { %v5440_v49 = vmax.f32 %v4842_v20, 0.0  ;;  %v5439_v19 = vmax.f32 %v4845_v48, 0.0  ;;  %v2110_v50 = vadd.f32 %v2109_v45, %v5444_v55  ;;  %v2117_v9 = vadd.f32 %v2116_v12, %v5443_v62  ;;  %v2245_v14 = vld [vmem:[%s5206_s2 + $0x100] sm:$0xff]  ;;  %v5755_v62 = vld [vmem:[#allocation92_spill] sm:$0xff]  ;;  %v5757_v55 = vld [vmem:[#allocation93_spill] sm:$0xff] }
 0x193   : > { %v1671_v17 = vadd.f32 %v5703_v18, %v5702_v38  ;;  %v1678_v28 = vadd.f32 %v5706_v61, %v5705_v40  ;;  %v5438_v36 = vmax.f32 %v4860_v7, 0.0  ;;  %2755 = vmatpush1.bf16.msra.mxu1 %v2754_v34  ;;  %v2758_v63 = vpack.c.bf16 %v2234_v23, %v2232_v25  ;;  %v5761_v33 = vld [vmem:[#allocation95_spill] sm:$0xff] }
 0x194   : > { %v5437_v15 = vmax.f32 %v4863_v44, 0.0  ;;  %v2111_v59 = vadd.f32 %v2110_v50, %v5442_v31  ;;  %v2118_v16 = vadd.f32 %v2117_v9, %v5441_v27  ;;  %2757 = vmatprep.subr.bf16.mxu1 %v2756_v46  ;;  %v2760_v58 = vpack.c.bf16 %v2239_v4, %v2237_v30  ;;  %v2246_v30 = vld [vmem:[%s5206_s2 + $0x110] sm:$0xff]  ;;  %v2251_v50 = vld [vmem:[%s5206_s2 + $0x148] sm:$0xff]  ;;  %v5751_v27 = vld [vmem:[#allocation90_spill] sm:$0xff] }
 0x195   : > { %v1679_v34 = vadd.f32 %v1671_v17, %v1205_v1  ;;  %v1680_v45 = vadd.f32 %v1678_v28, %v1206_v42  ;;  %v2762_v25 = vpack.c.bf16 %v2238_v51, %v2236_v41  ;;  %v2764_v6 = vpack.c.bf16 %v2243_v47, %v2241_v60  ;;  %v2240_v1 = vld [vmem:[%s5206_s2 + $0xc8] sm:$0xff]  ;;  %v2247_v42 = vld [vmem:[%s5206_s2 + $0x118] sm:$0xff]  ;;  %v2249_v4 = vld [vmem:[%s5206_s2 + $0x130] sm:$0xff] }
 0x196   : > { %v2112_v12 = vadd.f32 %v2111_v59, %v5440_v49  ;;  %v2119_v46 = vadd.f32 %v2118_v16, %v5439_v19  ;;  %v2766_v17 = vpack.c.bf16 %v2242_v35, %v2240_v1  ;;  %v2768_v61 = vpack.c.bf16 %v2247_v42, %v2245_v14  ;;  %v2244_v28 = vld [vmem:[%s5206_s2 + $0xf8] sm:$0xff]  ;;  %v2650_v35 = vld [vmem:[%s5205_s1 + $0x160] sm:$0x1]  ;;  %v2651_v42 = vld [vmem:[%s5205_s1 + $0x170] sm:$0x1] }
 0x197   : > { %2759 = vmatpush1.bf16.msra.mxu1 %v2758_v63  ;;  %v2770_v63 = vpack.c.bf16 %v2246_v30, %v2244_v28  ;;  %v2772_v16 = vpack.c.bf16 %v2251_v50, %v2249_v4  ;;  %v5747_v19 = vld [vmem:[#allocation88_spill] sm:$0xff]  ;;  %v5749_v49 = vld [vmem:[#allocation89_spill] sm:$0xff]  ;;  %v5753_v31 = vld [vmem:[#allocation91_spill] sm:$0xff]  ;;  %v5804_v22 = vmax.f32 %v4775_v54, 0.0  ;;  %v5805_v8 = vmax.f32 %v4780_v21, 0.0 }
 0x198   : > { %v2113_v23 = vadd.f32 %v2112_v12, %v5438_v36  ;;  %v2120_v3 = vadd.f32 %v2119_v46, %v5437_v15  ;;  %2761 = vmatprep.subr.bf16.mxu1 %v2760_v58  ;;  %v2253_v46 = vld [vmem:[%s5206_s2 + $0x160] sm:$0xff]  ;;  %v5743_v15 = vld [vmem:[#allocation86_spill] sm:$0xff]  ;;  %v5809_v54 = vmax.f32 %v4820_v26, 0.0  ;;  %v5810_v21 = vmax.f32 %v4823_v2, 0.0 }
 0x199   : > { %v5745_v36 = vld [vmem:[#allocation87_spill] sm:$0xff] }
 0x19a   : > { %v2121_v38 = vadd.f32 %v2113_v23, %v1679_v34  ;;  %v2122_v18 = vadd.f32 %v2120_v3, %v1680_v45  ;;  %v2248_v34 = vld [vmem:[%s5206_s2 + $0x128] sm:$0xff]  ;;  %v2250_v45 = vld [vmem:[%s5206_s2 + $0x140] sm:$0xff]  ;;  %v2252_v23 = vld [vmem:[%s5206_s2 + $0x158] sm:$0xff] }
 0x19b   : > { %2763 = vmatpush1.bf16.msra.mxu1 %v2762_v25  ;;  %v2774_v12 = vpack.c.bf16 %v2250_v45, %v2248_v34  ;;  %v2255_v25 = vld [vmem:[%s5206_s2 + $0x178] sm:$0xff]  ;;  %v2254_v3 = vld [vmem:[%s5206_s2 + $0x170] sm:$0xff] }
 0x19c   : > { %v2123_v40 = vadd.f32 %v2122_v18, %v2121_v38  ;;  %2765 = vmatprep.subr.bf16.mxu1 %v2764_v6  ;;  %v2776_v6 = vpack.c.bf16 %v2255_v25, %v2253_v46  ;;  %v2778_v1 = vpack.c.bf16 %v2254_v3, %v2252_v23 }
 0x19e   : > { %v2124_v9 = vrot.slane %v2123_v40, 4 }
 0x19f   : > { %2767 = vmatpush1.bf16.msra.mxu1 %v2766_v17 }
 0x1a0   : > { %v2125_v59 = vadd.f32 %v2124_v9, %v2123_v40  ;;  %2769 = vmatprep.subr.bf16.mxu1 %v2768_v61 }
 0x1a2   : > { %v2126_v58 = vrot.slane %v2125_v59, 2 }
 0x1a3   : > { %2771 = vmatpush1.bf16.msra.mxu1 %v2770_v63 }
 0x1a4   : > { %v2127_v41 = vadd.f32 %v2126_v58, %v2125_v59  ;;  %2773 = vmatprep.subr.bf16.mxu1 %v2772_v16 }
 0x1a6   : > { %v2128_v51 = vrot.slane %v2127_v41, 1 }
 0x1a7   : > { %2775 = vmatpush1.bf16.msra.mxu1 %v2774_v12 }
 0x1a8   : > { %v2129_v60 = vadd.f32 %v2128_v51, %v2127_v41  ;;  %2777 = vmatprep.subr.bf16.mxu1 %v2776_v6  ;;  %v2357_v41 = vlaneseq  ;;  %v5707_v6 = vld [vmem:[#allocation39_spill] sm:$0xff] }
 0x1aa   : > { %v2130_v47 = vmul.f32 0.00390625, %v2129_v60 }
 0x1ab   : > { %2779 = vmatpush1.bf16.msra.mxu1 %v2778_v1  ;;  %v5708_v1 = vmax.f32 %v5707_v6, 0.0 }
 0x1ac   : > { %2722 = vmatmul.mubr.f32.vlgmr.msra.gmra.mrb[0].mxu0 %v2130_v47  ;;  %v2358_v47 = vshrl.u32 %v2357_v41, 7 }
 0x1ae   : > { %v2359_v12 = vsub.s32 0, %v2358_v47 }
 0x27f   : > { %v2213_v14 = vpop.f32.mrb[0].mxu0 }
 0x280   : > { %v2221_v38 = vmul.f32 %v2650_v35, %v2213_v14  ;;  %v2723_v18 = vpop.f32.mrb[1].mxu0  ;;  %v5709_v14 = vld [vmem:[#allocation40_spill] sm:$0xff] }
 0x281   : > { %v5711_v18 = vld [vmem:[#allocation41_spill] sm:$0xff] }
 0x282   : > { %v2222_v17 = vadd.f32 %v2651_v42, %v2221_v38  ;;  %v5710_v42 = vmax.f32 %v5709_v14, 0.0  ;;  %v5727_v14 = vld [vmem:[#allocation49_spill] sm:$0xff] }
 0x284   : > { %v2223_v40 = vmax.f32 %v2222_v17, 0.0  ;;  %v5712_v17 = vmax.f32 %v5711_v18, 0.0 }
 0x286   : > { %2321 = vmatmul.mubr.f32.vlgmr.msra.gmra.mrb[0].mxu1 %v2223_v40 }
 0x359   : > { %v2322_v61 = vpop.f32.mrb[0].mxu1 }
 0x35a   : > { %v2324_v28 = vpop.f32.mrb[1].mxu1 }
 0x35b   : > { %v2327_v30 = vmax.f32 %v2322_v61, %v2324_v28 }
 0x35d   : > { %v2328_v4 = vsub.f32 %v2322_v61, %v2327_v30  ;;  %v2331_v50 = vsub.f32 %v2324_v28, %v2327_v30  ;;  %v5713_v61 = vld [vmem:[#allocation42_spill] sm:$0xff] }
 0x35e   : > { %v5714_v28 = vmax.f32 %v5713_v61, 0.0 }
 0x35f   : > { %v2329_v9 = vmul.f32 1.442695, %v2328_v4  ;;  %v2332_v63 = vmul.f32 1.442695, %v2331_v50  ;;  %v5715_v4 = vld [vmem:[#allocation43_spill] sm:$0xff] }
 0x360   : > { %v5716_v50 = vmax.f32 %v5715_v4, 0.0  ;;  %v5731_v4 = vld [vmem:[#allocation51_spill] sm:$0xff] }
 0x361   : > { %2791 = vpow2.f32 %v2329_v9 }
 0x362   : > { %2793 = vpow2.f32 %v2332_v63  ;;  %v5717_v63 = vld [vmem:[#allocation44_spill] sm:$0xff] }
 0x36b   : > { %v2792_v59 = vpop.eup %2791 }
 0x36c   : > { %v2794_v16 = vpop.eup %2793 }
 0x36d   : > { %v2334_v58 = vadd.f32 %v2794_v16, %v2792_v59 }
 0x36f   : > { %2795 = vrcp.f32 %v2334_v58 }
 0x379   : > { %v2796_v51 = vpop.eup %2795 }
 0x37a   : > { %v2336_v60 = vmul.f32 %v2796_v51, %v2334_v58  ;;  %v5719_v58 = vld [vmem:[#allocation45_spill] sm:$0xff] }
 0x37b   : > { %v5720_v41 = vmax.f32 %v5719_v58, 0.0 }
 0x37c   : > { %v2337_v34 = vsub.f32 2.0, %v2336_v60  ;;  %v5721_v60 = vld [vmem:[#allocation46_spill] sm:$0xff] }
 0x37d   : > { %v5722_v47 = vmax.f32 %v5721_v60, 0.0  ;;  %v5735_v60 = vld [vmem:[#allocation53_spill] sm:$0xff] }
 0x37e   : > { %v2338_v45 = vmul.f32 %v2796_v51, %v2337_v34 }
 0x380   : > { %v2339_v46 = vmul.f32 %v2792_v59, %v2338_v45  ;;  %v2340_v25 = vmul.f32 %v2794_v16, %v2338_v45  ;;  %v5718_v59 = vmax.f32 %v5717_v63, 0.0  ;;  %v5723_v45 = vld [vmem:[#allocation47_spill] sm:$0xff] }
 0x382   : > { %v4973_v23 = vrot.slane %v2339_v46, %v2359_v12  ;;  %v4975_v3 = vrot.slane %v2340_v25, %v2359_v12  ;;  %v5724_v12 = vmax.f32 %v5723_v45, 0.0  ;;  %v5725_v25 = vld [vmem:[#allocation48_spill] sm:$0xff] }
 0x383   : > { %v5726_v6 = vmax.f32 %v5725_v25, 0.0 }
 0x384   : > { %v2361_v35 = vmul.f32 %v4973_v23, %v5708_v1  ;;  %v2362_v38 = vmul.f32 %v4973_v23, %v5710_v42  ;;  %v2363_v40 = vmul.f32 %v4973_v23, %v5712_v17  ;;  %v2364_v30 = vmul.f32 %v4973_v23, %v5714_v28  ;;  %v5729_v17 = vld [vmem:[#allocation50_spill] sm:$0xff] }
 0x385   : > { %v2365_v9 = vmul.f32 %v4973_v23, %v5716_v50  ;;  %v2366_v16 = vmul.f32 %v4973_v23, %v5718_v59  ;;  %v2367_v51 = vmul.f32 %v4973_v23, %v5720_v41  ;;  %v2368_v34 = vmul.f32 %v4973_v23, %v5722_v47  ;;  %v5733_v59 = vld [vmem:[#allocation52_spill] sm:$0xff] }
 0x386   : > { %v2369_v46 = vmul.f32 %v4973_v23, %v5724_v12  ;;  %v2370_v1 = vmul.f32 %v4973_v23, %v5726_v6  ;;  %v5728_v42 = vmax.f32 %v5727_v14, 0.0  ;;  %v5730_v61 = vmax.f32 %v5729_v17, 0.0  ;;  %v5737_v12 = vld [vmem:[#allocation54_spill] sm:$0xff]  ;;  %v5739_v14 = vld [vmem:[#allocation84_spill] sm:$0xff] }
 0x387   : > { %v5732_v50 = vmax.f32 %v5731_v4, 0.0  ;;  %v5734_v58 = vmax.f32 %v5733_v59, 0.0  ;;  %v5736_v47 = vmax.f32 %v5735_v60, 0.0  ;;  %v5738_v25 = vmax.f32 %v5737_v12, 0.0 }
 0x388   : > { %v2371_v18 = vmul.f32 %v4973_v23, %v5728_v42  ;;  %v2372_v28 = vmul.f32 %v4973_v23, %v5730_v61  ;;  %v5740_v42 = vmax.f32 %v5739_v14, 0.0  ;;  %v5741_v61 = vld [vmem:[#allocation85_spill] sm:$0xff]  ;;  %v5744_v59 = vmax.f32 %v5743_v15, 0.0 }
 0x389   : > { %v2373_v63 = vmul.f32 %v4973_v23, %v5732_v50  ;;  %v2374_v41 = vmul.f32 %v4973_v23, %v5734_v58  ;;  %v2375_v45 = vmul.f32 %v4973_v23, %v5736_v47  ;;  %v2376_v6 = vmul.f32 %v4973_v23, %v5738_v25 }
 0x38a   : > { %v2397_v17 = vmul.f32 %v4975_v3, %v5740_v42  ;;  %v5742_v4 = vmax.f32 %v5741_v61, 0.0  ;;  %v2399_v58 = vmul.f32 %v4975_v3, %v5744_v59  ;;  %v5746_v60 = vmax.f32 %v5745_v36, 0.0 }
 0x38b   : > { %v5748_v12 = vmax.f32 %v5747_v19, 0.0  ;;  %v5750_v14 = vmax.f32 %v5749_v49, 0.0  ;;  %v5752_v61 = vmax.f32 %v5751_v27, 0.0  ;;  %v5754_v15 = vmax.f32 %v5753_v31, 0.0 }
 0x38c   : > { %v2398_v50 = vmul.f32 %v4975_v3, %v5742_v4  ;;  %v2400_v47 = vmul.f32 %v4975_v3, %v5746_v60  ;;  %v5756_v36 = vmax.f32 %v5755_v62, 0.0  ;;  %v5758_v19 = vmax.f32 %v5757_v55, 0.0 }
 0x38d   : > { %v2401_v25 = vmul.f32 %v4975_v3, %v5748_v12  ;;  %v2402_v42 = vmul.f32 %v4975_v3, %v5750_v14  ;;  %v2403_v4 = vmul.f32 %v4975_v3, %v5752_v61  ;;  %v2404_v59 = vmul.f32 %v4975_v3, %v5754_v15 }
 0x38e   : > { %v2405_v60 = vmul.f32 %v4975_v3, %v5756_v36  ;;  %v2406_v12 = vmul.f32 %v4975_v3, %v5758_v19  ;;  %v5760_v49 = vmax.f32 %v5759_v56, 0.0  ;;  %v5762_v27 = vmax.f32 %v5761_v33, 0.0 }
 0x38f   : > { %v5764_v31 = vmax.f32 %v5763_v0, 0.0  ;;  %v5766_v62 = vmax.f32 %v5765_v5, 0.0  ;;  %v5767_v55 = vmax.f32 %v5701_v29, 0.0  ;;  %v5768_v19 = vmax.f32 %v5704_v13, 0.0 }
 0x390   : > { %v2407_v14 = vmul.f32 %v4975_v3, %v5760_v49  ;;  %v2408_v61 = vmul.f32 %v4975_v3, %v5762_v27  ;;  %v2413_v49 = vadd.f32 %v2397_v17, %v2361_v35  ;;  %v2414_v0 = vadd.f32 %v2398_v50, %v2362_v38  ;;  %v5779_v50 = vld [vmem:[#allocation20_spill] sm:$0xff] }
 0x391   : > { %v2409_v15 = vmul.f32 %v4975_v3, %v5764_v31  ;;  %v2410_v36 = vmul.f32 %v4975_v3, %v5766_v62  ;;  %v2411_v56 = vmul.f32 %v4975_v3, %v5767_v55  ;;  %v2412_v33 = vmul.f32 %v4975_v3, %v5768_v19 }
 0x392   : > { %v2415_v27 = vadd.f32 %v2399_v58, %v2363_v40  ;;  %v2416_v31 = vadd.f32 %v2400_v47, %v2364_v30  ;;  %v2417_v10 = vadd.f32 %v2401_v25, %v2365_v9  ;;  %v2418_v5 = vadd.f32 %v2402_v42, %v2366_v16  ;;  %2429 = vst [vmem:[%s2857_s21] sm:$0xff] %v2413_v49  ;;  %v5769_v9 = vld [vmem:[#allocation11_spill] sm:$0xff]  ;;  %v5781_v25 = vld [vmem:[#allocation16_spill] sm:$0xff]  ;;  %v5789_v49 = vld [vmem:[#allocation18_spill] sm:$0xff] }
 0x393   : > { %v2419_v62 = vadd.f32 %v2403_v4, %v2367_v51  ;;  %v2420_v29 = vadd.f32 %v2404_v59, %v2368_v34  ;;  %v2421_v57 = vadd.f32 %v2405_v60, %v2369_v46  ;;  %v2422_v55 = vadd.f32 %v2406_v12, %v2370_v1  ;;  %2430 = vst [vmem:[%s2857_s21 + $0x8] sm:$0xff] %v2414_v0  ;;  %v5771_v34 = vld [vmem:[#allocation12_spill] sm:$0xff]  ;;  %v5783_v59 = vld [vmem:[#allocation23_spill] sm:$0xff] }
 0x394   : > { %v2423_v13 = vadd.f32 %v2407_v14, %v2371_v18  ;;  %v2424_v19 = vadd.f32 %v2408_v61, %v2372_v28  ;;  %2431 = vst [vmem:[%s2857_s21 + $0x10] sm:$0xff] %v2415_v27  ;;  %2432 = vst [vmem:[%s2857_s21 + $0x18] sm:$0xff] %v2416_v31  ;;  %v2425_v35 = vadd.f32 %v2409_v15, %v2373_v63  ;;  %v5770_v16 = vmax.f32 %v5769_v9, 0.0  ;;  %v5773_v18 = vld [vmem:[#allocation7_spill] sm:$0xff]  ;;  %v5785_v14 = vld [vmem:[#allocation24_spill] sm:$0xff] }
 0x395   : > { %v2426_v38 = vadd.f32 %v2410_v36, %v2374_v41  ;;  %v2427_v40 = vadd.f32 %v2411_v56, %v2375_v45  ;;  %v2428_v30 = vadd.f32 %v2412_v33, %v2376_v6  ;;  %2433 = vst [vmem:[%s2857_s21 + $0x20] sm:$0xff] %v2417_v10  ;;  %2434 = vst [vmem:[%s2857_s21 + $0x28] sm:$0xff] %v2418_v5  ;;  %v5772_v46 = vmax.f32 %v5771_v34, 0.0  ;;  %v5775_v10 = vld [vmem:[#allocation19_spill] sm:$0xff]  ;;  %v5787_v36 = vld [vmem:[#allocation17_spill] sm:$0xff] }
 0x396   : > { %2435 = vst [vmem:[%s2857_s21 + $0x30] sm:$0xff] %v2419_v62  ;;  %2436 = vst [vmem:[%s2857_s21 + $0x38] sm:$0xff] %v2420_v29  ;;  %v2461_v51 = vmul.f32 %v4973_v23, %v5770_v16  ;;  %v5774_v28 = vmax.f32 %v5773_v18, 0.0  ;;  %v5776_v41 = vmax.f32 %v5775_v10, 0.0  ;;  %v5780_v58 = vmax.f32 %v5779_v50, 0.0  ;;  %v5791_v31 = vld [vmem:[#allocation14_spill] sm:$0xff] }
 0x397   : > { %2437 = vst [vmem:[%s2857_s21 + $0x40] sm:$0xff] %v2421_v57  ;;  %2438 = vst [vmem:[%s2857_s21 + $0x48] sm:$0xff] %v2422_v55  ;;  %v2462_v1 = vmul.f32 %v4973_v23, %v5772_v46  ;;  %v5777_v57 = vld [vmem:[#allocation15_spill] sm:$0xff]  ;;  %v5782_v42 = vmax.f32 %v5781_v25, 0.0  ;;  %v5784_v60 = vmax.f32 %v5783_v59, 0.0  ;;  %v5786_v61 = vmax.f32 %v5785_v14, 0.0 }
 0x398   : > { %2439 = vst [vmem:[%s2857_s21 + $0x50] sm:$0xff] %v2423_v13  ;;  %2440 = vst [vmem:[%s2857_s21 + $0x58] sm:$0xff] %v2424_v19  ;;  %v2463_v63 = vmul.f32 %v4973_v23, %v5774_v28  ;;  %v2464_v45 = vmul.f32 %v4973_v23, %v5776_v41  ;;  %v5778_v6 = vmax.f32 %v5777_v57, 0.0  ;;  %v2466_v47 = vmul.f32 %v4973_v23, %v5780_v58  ;;  %v5793_v29 = vld [vmem:[#allocation21_spill] sm:$0xff]  ;;  %v5795_v19 = vld [vmem:[#allocation22_spill] sm:$0xff] }
 0x399   : > { %2441 = vst [vmem:[%s2857_s21 + $0x60] sm:$0xff] %v2425_v35  ;;  %2442 = vst [vmem:[%s2857_s21 + $0x68] sm:$0xff] %v2426_v38  ;;  %v2467_v4 = vmul.f32 %v4973_v23, %v5782_v42  ;;  %v2468_v12 = vmul.f32 %v4973_v23, %v5784_v60  ;;  %v2469_v15 = vmul.f32 %v4973_v23, %v5786_v61  ;;  %v5788_v56 = vmax.f32 %v5787_v36, 0.0  ;;  %v5799_v16 = vld [vmem:[#allocation31_spill] sm:$0xff] }
 0x39a   : > { %2443 = vst [vmem:[%s2857_s21 + $0x70] sm:$0xff] %v2427_v40  ;;  %2444 = vst [vmem:[%s2857_s21 + $0x78] sm:$0xff] %v2428_v30  ;;  %v2465_v17 = vmul.f32 %v4973_v23, %v5778_v6  ;;  %v5790_v0 = vmax.f32 %v5789_v49, 0.0  ;;  %v5792_v5 = vmax.f32 %v5791_v31, 0.0  ;;  %v5794_v55 = vmax.f32 %v5793_v29, 0.0  ;;  %v5797_v40 = vld [vmem:[#allocation8_spill] sm:$0xff] }
 0x39b   : > { %v2470_v33 = vmul.f32 %v4973_v23, %v5788_v56  ;;  %v5796_v35 = vmax.f32 %v5795_v19, 0.0  ;;  %v5798_v30 = vmax.f32 %v5797_v40, 0.0  ;;  %v5800_v34 = vmax.f32 %v5799_v16, 0.0 }
 0x39c   : > { %v2471_v27 = vmul.f32 %v4973_v23, %v5790_v0  ;;  %v2472_v62 = vmul.f32 %v4973_v23, %v5792_v5  ;;  %v2473_v13 = vmul.f32 %v4973_v23, %v5794_v55  ;;  %v2493_v18 = vmul.f32 %v4975_v3, %v2074_v32 }
 0x39d   : > { %v2474_v38 = vmul.f32 %v4973_v23, %v5796_v35  ;;  %v2475_v9 = vmul.f32 %v4973_v23, %v5798_v30  ;;  %v2476_v46 = vmul.f32 %v4973_v23, %v5800_v34  ;;  %v2494_v28 = vmul.f32 %v4975_v3, %v2075_v37 }
 0x39e   : > { %v5801_v10 = vmax.f32 %v4764_v24, 0.0  ;;  %v5802_v57 = vmax.f32 %v4767_v53, 0.0  ;;  %v5803_v50 = vmax.f32 %v4772_v43, 0.0  ;;  %v2498_v32 = vmul.f32 %v4975_v3, %v5804_v22 }
 0x39f   : > { %v2499_v37 = vmul.f32 %v4975_v3, %v5805_v8  ;;  %v5806_v24 = vmax.f32 %v4783_v52, 0.0  ;;  %v5807_v53 = vmax.f32 %v4802_v39, 0.0  ;;  %v5808_v43 = vmax.f32 %v4805_v11, 0.0 }
 0x3a0   : > { %v2495_v41 = vmul.f32 %v4975_v3, %v5801_v10  ;;  %v2496_v6 = vmul.f32 %v4975_v3, %v5802_v57  ;;  %v2497_v23 = vmul.f32 %v4975_v3, %v5803_v50  ;;  %v2503_v59 = vmul.f32 %v4975_v3, %v5809_v54 }
 0x3a1   : > { %v2500_v58 = vmul.f32 %v4975_v3, %v5806_v24  ;;  %v2501_v25 = vmul.f32 %v4975_v3, %v5807_v53  ;;  %v2502_v42 = vmul.f32 %v4975_v3, %v5808_v43  ;;  %v2504_v60 = vmul.f32 %v4975_v3, %v5810_v21 }
 0x3a2   : > { %v5811_v52 = vmax.f32 %v4842_v20, 0.0  ;;  %v5812_v39 = vmax.f32 %v4845_v48, 0.0  ;;  %v5813_v11 = vmax.f32 %v4860_v7, 0.0  ;;  %v5814_v36 = vmax.f32 %v4863_v44, 0.0 }
 0x3a3   : > { %v2509_v56 = vadd.f32 %v2493_v18, %v2461_v51  ;;  %v2510_v20 = vadd.f32 %v2494_v28, %v2462_v1  ;;  %v2511_v49 = vadd.f32 %v2495_v41, %v2463_v63  ;;  %v2512_v0 = vadd.f32 %v2496_v6, %v2464_v45 }
 0x3a4   : > { %v2505_v14 = vmul.f32 %v4975_v3, %v5811_v52  ;;  %v2506_v61 = vmul.f32 %v4975_v3, %v5812_v39  ;;  %v2507_v26 = vmul.f32 %v4975_v3, %v5813_v11  ;;  %v2508_v2 = vmul.f32 %v4975_v3, %v5814_v36 }
 0x3a5   : > { %v2513_v31 = vadd.f32 %v2497_v23, %v2465_v17  ;;  %v2514_v48 = vadd.f32 %v2498_v32, %v2466_v47  ;;  %v2515_v5 = vadd.f32 %v2499_v37, %v2467_v4  ;;  %v2516_v7 = vadd.f32 %v2500_v58, %v2468_v12  ;;  %2652 = vst [vmem:[%s2857_s21 + $0x80] sm:$0xff] %v2509_v56 }
 0x3a6   : > { %v2517_v29 = vadd.f32 %v2501_v25, %v2469_v15  ;;  %v2518_v55 = vadd.f32 %v2502_v42, %v2470_v33  ;;  %v2519_v44 = vadd.f32 %v2503_v59, %v2471_v27  ;;  %v2520_v3 = vadd.f32 %v2504_v60, %v2472_v62  ;;  %2653 = vst [vmem:[%s2857_s21 + $0x88] sm:$0xff] %v2510_v20 }
 0x3a7   : > { %2654 = vst [vmem:[%s2857_s21 + $0x90] sm:$0xff] %v2511_v49  ;;  %2655 = vst [vmem:[%s2857_s21 + $0x98] sm:$0xff] %v2512_v0  ;;  %v2521_v51 = vadd.f32 %v2505_v14, %v2473_v13  ;;  %v2522_v1 = vadd.f32 %v2506_v61, %v2474_v38  ;;  %v2523_v63 = vadd.f32 %v2507_v26, %v2475_v9 }
 0x3a8   : > { %v2524_v45 = vadd.f32 %v2508_v2, %v2476_v46  ;;  %2656 = vst [vmem:[%s2857_s21 + $0xa0] sm:$0xff] %v2513_v31  ;;  %2657 = vst [vmem:[%s2857_s21 + $0xa8] sm:$0xff] %v2514_v48 }
 0x3a9   : > { %2658 = vst [vmem:[%s2857_s21 + $0xb0] sm:$0xff] %v2515_v5  ;;  %2659 = vst [vmem:[%s2857_s21 + $0xb8] sm:$0xff] %v2516_v7 }
 0x3aa   : > { %2660 = vst [vmem:[%s2857_s21 + $0xc0] sm:$0xff] %v2517_v29  ;;  %2661 = vst [vmem:[%s2857_s21 + $0xc8] sm:$0xff] %v2518_v55 }
 0x3ab   : > { %2662 = vst [vmem:[%s2857_s21 + $0xd0] sm:$0xff] %v2519_v44  ;;  %2663 = vst [vmem:[%s2857_s21 + $0xd8] sm:$0xff] %v2520_v3 }
 0x3ac   : > { %2664 = vst [vmem:[%s2857_s21 + $0xe0] sm:$0xff] %v2521_v51  ;;  %2665 = vst [vmem:[%s2857_s21 + $0xe8] sm:$0xff] %v2522_v1 }
 0x3ad   : > { %2666 = vst [vmem:[%s2857_s21 + $0xf0] sm:$0xff] %v2523_v63  ;;  %2667 = vst [vmem:[%s2857_s21 + $0xf8] sm:$0xff] %v2524_v45 }
 0x3ae PF: > { %s13_s12 = sadd.s32 1, %s2807_s12  }
 0x3af   : > { %p10_p4 = scmp.ge.s32.totalorder %s13_s12, 4  }
 0x3b1   :  { %12 = sbr.rel (!%p10_p4) target bundleno = 1 (0x1), region = 131 }
 0x3b8   :  { %2563 = vsyncmov [#allocation4] }
 0x3bb   :  { %s2564_s8 = vpop.sfrf %2563 }
 0x3bc   :  { %p2670_p5 = scmp.ne.s32.totalorder %s2564_s8, 0 }
 0x3be   :  { %2568 = shalt.err (%p2670_p5)  }

</bundles_post_ra>
